<compile_context>
chip_gen: v5e
topology: v5e:2x2
jax: 0.10.0
libtpu: 0.0.40
codegen_flags: <defaults>
</compile_context>

<pallas_src>
import functools

import jax
import jax.numpy as jnp
from jax import lax
from jax.experimental import pallas as pl
from jax.experimental.pallas import tpu as pltpu


# ---------------------------------------------------------------------------
# Fused Pallas kernel: embedded tokens -> n_layers x (bi)LSTM -> Linear
# ---------------------------------------------------------------------------
def _make_fused_rnn_kernel(T, B, E, H, n_layers, num_dirs, mxu_dtype):
    """Builds the fused kernel closure.

    Kernel ref order:
      x_ref (T*B, E) f32,
      [wih_comb (in, G8), whh_blockdiag (DH, G8), bias (1, G8)] per layer,
      fc_w_t (DH, 128), fc_b (1, 128),
      out_ref (B, 128) f32,
      gates scratch (T*B, G8) f32,
      seq scratch (T*B, H) mxu_dtype per direction.
    """
    G = 4 * H                    # per-direction gate width
    G8 = num_dirs * G            # combined gate width (256 for bi, H=32)
    bidir = (num_dirs == 2)

    def kernel(*refs):
        idx = 0
        x_ref = refs[idx]; idx += 1
        layers = []
        for _ in range(n_layers):
            layers.append((refs[idx], refs[idx + 1], refs[idx + 2]))
            idx += 3
        fcw_ref = refs[idx]; fcb_ref = refs[idx + 1]; idx += 2
        out_ref = refs[idx]; idx += 1
        gates_scr = refs[idx]; idx += 1
        seq_scr = list(refs[idx:idx + num_dirs]); idx += num_dirs

        unroll_amt = True if T <= 16 else 8
        h_fc = None

        for l in range(n_layers):
            wih_ref, whh_ref, b_ref = layers[l]

            # ---- Phase 1: input projection, ALL timesteps & BOTH dirs ------
            # One (T*B, in) @ (in, G8) matmul per layer; removes x @ W_ih from
            # the serial chain and fills the 256-wide MXU output on v6e/v7x.
            if l == 0:
                xin = x_ref[...].astype(mxu_dtype)                # (T*B, E)
            elif bidir:
                xin = jnp.concatenate(
                    [seq_scr[0][...], seq_scr[1][...]], axis=1)   # (T*B, 2H) bf16
            else:
                xin = seq_scr[0][...]                             # (T*B, H) bf16
            gates_scr[...] = (
                jnp.dot(xin, wih_ref[...], preferred_element_type=jnp.float32)
                + b_ref[...].astype(jnp.float32))                 # fused b_ih+b_hh

            # ---- Phase 2: fused fwd/bwd recurrence ------------------------
            whh = whh_ref[...]                                    # (DH, G8) bf16
            store_seq = (l < n_layers - 1)       # last layer: only final h needed

            def step(i, carry, whh=whh, store_seq=store_seq):
                rf = pl.multiple_of(i * B, B)
                row_f = gates_scr[pl.ds(rf, B), :]                # (B, G8)
                if bidir:
                    h_f, c_f, h_b, c_b = carry
                    rb = pl.multiple_of((T - 1 - i) * B, B)       # index reversal
                    row_b = gates_scr[pl.ds(rb, B), :]
                    gin = jnp.concatenate([row_f[:, :G], row_b[:, G:]], axis=1)
                    h_cat = jnp.concatenate([h_f, h_b], axis=1)   # (B, 2H)
                else:
                    h_f, c_f = carry
                    gin = row_f
                    h_cat = h_f
                # One block-diagonal N=G8 dot covers both directions.
                gates = gin + jnp.dot(h_cat.astype(mxu_dtype), whh,
                                      preferred_element_type=jnp.float32)
                # Full-width activations: 1 sigmoid + 1 tanh on the whole slab.
                sig = jax.nn.sigmoid(gates)
                tnh = jnp.tanh(gates)
                # forward direction state update
                c_f = sig[:, H:2 * H] * c_f + sig[:, 0:H] * tnh[:, 2 * H:3 * H]
                h_f = sig[:, 3 * H:4 * H] * jnp.tanh(c_f)
                if store_seq:
                    seq_scr[0][pl.ds(rf, B), :] = h_f.astype(mxu_dtype)
                if bidir:
                    c_b = (sig[:, 5 * H:6 * H] * c_b
                           + sig[:, 4 * H:5 * H] * tnh[:, 6 * H:7 * H])
                    h_b = sig[:, 7 * H:8 * H] * jnp.tanh(c_b)
                    if store_seq:
                        seq_scr[1][pl.ds(rb, B), :] = h_b.astype(mxu_dtype)
                    return (h_f, c_f, h_b, c_b)
                return (h_f, c_f)

            z = jnp.zeros((B, H), jnp.float32)
            init = (z, z, z, z) if bidir else (z, z)
            carry = lax.fori_loop(0, T, step, init, unroll=unroll_amt)
            if bidir:
                # PyTorch: cat(hidden[-2], hidden[-1]) = [fwd final | bwd final]
                h_fc = jnp.concatenate([carry[0], carry[2]], axis=1)
            else:
                h_fc = carry[0]

        # ---- Fused final Linear (output padded to 128 lanes -> dense vst) --
        logits = (jnp.dot(h_fc.astype(mxu_dtype), fcw_ref[...],
                          preferred_element_type=jnp.float32)
                  + fcb_ref[...].astype(jnp.float32))
        out_ref[...] = logits.astype(out_ref.dtype)

    return kernel


def rnn_forward(tokens, params, *, n_layers, bidirectional):
    """tokens: (T, B) int32 -> logits (B, O) float32 (eval-mode forward)."""
    num_dirs = 2 if bidirectional else 1
    T, B = tokens.shape
    emb_table = params["embedding"]
    E = emb_table.shape[1]
    wih0, whh0, _ = params["lstm"][0]
    DH = whh0.shape[0]
    G8 = whh0.shape[1]
    H = DH // num_dirs
    O = params["out_dim"]
    O_pad = params["fc_w_t"].shape[1]
    mxu_dtype = params["fc_w_t"].dtype

    # Embedding gather (frozen "pretrained" table) -- plain-JAX glue.
    # TODO(synk): dropout omitted (eval-mode identity).
    x = emb_table[tokens]                                   # (T, B, E) f32

    # Pad batch to 8-sublane granularity: dense vregs / MXU rows / stores.
    B_pad = max(8, -(-B // 8) * 8)
    if B_pad != B:
        x = jnp.pad(x, ((0, 0), (0, B_pad - B), (0, 0)))
    # Flatten to (T*B, E) in the wrapper (no in-kernel relayout).
    x2d = x.reshape(T * B_pad, E)

    kernel = _make_fused_rnn_kernel(T, B_pad, E, H, n_layers, num_dirs,
                                    mxu_dtype)

    args = [x2d]
    for l in range(n_layers):
        args.extend(params["lstm"][l])
    args.extend([params["fc_w_t"], params["fc_b"]])

    scratch = [pltpu.VMEM((T * B_pad, G8), jnp.float32)]
    scratch += [pltpu.VMEM((T * B_pad, H), mxu_dtype) for _ in range(num_dirs)]

    # Explicit VMEM budget: resident inputs + output + scratch, with headroom.
    def _nbytes(a):
        return int(a.size) * a.dtype.itemsize
    scratch_bytes = (T * B_pad * G8 * 4
                     + num_dirs * T * B_pad * H * jnp.dtype(mxu_dtype).itemsize)
    total = sum(_nbytes(a) for a in args) + B_pad * O_pad * 4 + scratch_bytes
    vmem_limit = min(max(2 * total + (4 << 20), 16 << 20), 64 << 20)

    # Single grid-less invocation: all weights, activations and gate slabs fit
    # comfortably in VMEM, so there is no HBM traffic between layers/dirs.
    # TODO(synk): on v7x a direction-parallel grid axis could place fwd/bwd on
    # the two TensorCores; here both dirs are fused into one recurrence.
    logits = pl.pallas_call(
        kernel,
        out_shape=jax.ShapeDtypeStruct((B_pad, O_pad), jnp.float32),
        scratch_shapes=scratch,
        compiler_params=pltpu.CompilerParams(vmem_limit_bytes=int(vmem_limit)),
    )(*args)
    return logits[:B, :O]


# ---------------------------------------------------------------------------
# Parameter init (combined/transposed layouts; MXU operands in bf16)
# ---------------------------------------------------------------------------
def init_params(key, vocab_size, embedding_dim, hidden_dim, output_dim,
                n_layers, bidirectional, param_dtype=jnp.bfloat16):
    num_dirs = 2 if bidirectional else 1
    H = hidden_dim
    G = 4 * H
    n_keys = 3 + 4 * n_layers * num_dirs
    keys = jax.random.split(key, n_keys)
    ki = iter(range(n_keys))

    params = {
        # Stand-in for the frozen pretrained embedding table.
        "embedding": jax.random.normal(
            keys[next(ki)], (vocab_size, embedding_dim), jnp.float32) * 0.1,
        "lstm": {},
        "out_dim": output_dim,
    }
    for layer in range(n_layers):
        in_size = embedding_dim if layer == 0 else H * num_dirs
        s = 1.0 / float(H) ** 0.5
        wih_cols, bias_cols = [], []
        whh_bd = jnp.zeros((num_dirs * H, num_dirs * G), jnp.float32)
        for d in range(num_dirs):
            w_ih = jax.random.uniform(
                keys[next(ki)], (G, in_size), jnp.float32, -s, s)
            w_hh = jax.random.uniform(
                keys[next(ki)], (G, H), jnp.float32, -s, s)
            b_ih = jax.random.uniform(keys[next(ki)], (G,), jnp.float32, -s, s)
            b_hh = jax.random.uniform(keys[next(ki)], (G,), jnp.float32, -s, s)
            wih_cols.append(jnp.transpose(w_ih))              # (in, 4H)
            bias_cols.append(b_ih + b_hh)
            whh_bd = whh_bd.at[d * H:(d + 1) * H,
                               d * G:(d + 1) * G].set(jnp.transpose(w_hh))
        params["lstm"][layer] = (
            jnp.concatenate(wih_cols, axis=1).astype(param_dtype),  # (in, G8)
            whh_bd.astype(param_dtype),                             # (DH, G8) block-diag
            jnp.concatenate(bias_cols)[None, :],                     # (1, G8) f32
        )

    fc_in = H * num_dirs
    s = 1.0 / float(fc_in) ** 0.5
    fc_w = jax.random.uniform(keys[next(ki)], (output_dim, fc_in),
                              jnp.float32, -s, s)
    fc_b = jax.random.uniform(keys[next(ki)], (output_dim,),
                              jnp.float32, -s, s)
    O_pad = max(128, -(-output_dim // 128) * 128)           # lane-dense output
    fc_w_t = jnp.zeros((fc_in, O_pad), jnp.float32).at[:, :output_dim].set(
        jnp.transpose(fc_w))
    fc_b_p = jnp.zeros((1, O_pad), jnp.float32).at[:, :output_dim].set(fc_b)
    params["fc_w_t"] = fc_w_t.astype(param_dtype)            # (fc_in, O_pad)
    params["fc_b"] = fc_b_p                                   # (1, O_pad) f32
    return params


# ---------------------------------------------------------------------------
# Pure-JAX reference (mirrors the kernel math: bf16 MXU operands, f32 state)
# ---------------------------------------------------------------------------
def _ref_lstm_dir(x, w_ih_t, w_hh_t, bias, reverse):
    T_, B_, in_dim = x.shape
    H = w_hh_t.shape[0]
    mxu = w_ih_t.dtype
    gin = jnp.dot(x.reshape(T_ * B_, in_dim).astype(mxu), w_ih_t,
                  preferred_element_type=jnp.float32)
    gin = (gin + bias.astype(jnp.float32)).reshape(T_, B_, 4 * H)
    gin_ord = gin[::-1] if reverse else gin

    def step(carry, g_t):
        h, c = carry
        gates = g_t + jnp.dot(h.astype(mxu), w_hh_t,
                              preferred_element_type=jnp.float32)
        i = jax.nn.sigmoid(gates[:, 0 * H:1 * H])
        f = jax.nn.sigmoid(gates[:, 1 * H:2 * H])
        g = jnp.tanh(gates[:, 2 * H:3 * H])
        o = jax.nn.sigmoid(gates[:, 3 * H:4 * H])
        c = f * c + i * g
        h = o * jnp.tanh(c)
        return (h, c), h

    init = (jnp.zeros((B_, H), jnp.float32), jnp.zeros((B_, H), jnp.float32))
    (h_last, _), hs = jax.lax.scan(step, init, gin_ord)
    if reverse:
        hs = hs[::-1]
    return hs, h_last


def ref_forward(tokens, params, *, n_layers, bidirectional):
    num_dirs = 2 if bidirectional else 1
    _, whh0, _ = params["lstm"][0]
    H = whh0.shape[0] // num_dirs
    G = 4 * H
    O = params["out_dim"]
    x = params["embedding"][tokens]
    last_h = [None] * num_dirs
    for layer in range(n_layers):
        wih_comb, whh_bd, bias_comb = params["lstm"][layer]
        # bf16 cast of h in the next layer is equivalent to the kernel's bf16
        # seq scratch (values are produced in f32 then rounded once).
        outs = []
        for d in range(num_dirs):
            w_ih_t = wih_comb[:, d * G:(d + 1) * G]
            w_hh_t = whh_bd[d * H:(d + 1) * H, d * G:(d + 1) * G]
            bias = bias_comb[:, d * G:(d + 1) * G]
            hs, h_last = _ref_lstm_dir(x, w_ih_t, w_hh_t, bias,
                                       reverse=(d == 1))
            outs.append(hs)
            last_h[d] = h_last
        x = jnp.concatenate(outs, axis=-1) if num_dirs == 2 else outs[0]
    hidden = (jnp.concatenate(last_h, axis=-1)
              if bidirectional else last_h[0])
    mxu = params["fc_w_t"].dtype
    return (jnp.dot(hidden.astype(mxu), params["fc_w_t"][:, :O],
                    preferred_element_type=jnp.float32)
            + params["fc_b"][:, :O].astype(jnp.float32))


# ---------------------------------------------------------------------------
if __name__ == "__main__":
    VOCAB = 50
    EMB = 32
    HID = 32
    OUT = 3
    N_LAYERS = 2
    BIDIR = True
    SEQ = 8
    BATCH = 2

    key = jax.random.PRNGKey(0)
    k_tok, k_par = jax.random.split(key)

    tokens = jax.random.randint(k_tok, (SEQ, BATCH), 0, VOCAB, dtype=jnp.int32)
    params = init_params(k_par, VOCAB, EMB, HID, OUT, N_LAYERS, BIDIR)

    fwd = functools.partial(rnn_forward, n_layers=N_LAYERS, bidirectional=BIDIR)
    logits = jax.block_until_ready(fwd(tokens, params))

    ref = ref_forward(tokens, params, n_layers=N_LAYERS, bidirectional=BIDIR)
    assert logits.shape == (BATCH, OUT), logits.shape
    assert jnp.allclose(logits, ref, rtol=2e-2, atol=2e-3), (logits, ref)

    print("KERNEL_OK")
</pallas_src>

<mosaic_0001>
module attributes {stable_mosaic.version = 11 : i64} {
  func.func @kernel(%arg0: memref<64x32xf32, #tpu.memory_space<vmem>>, %arg1: memref<32x256xbf16, #tpu.memory_space<vmem>>, %arg2: memref<64x256xbf16, #tpu.memory_space<vmem>>, %arg3: memref<1x256xf32, #tpu.memory_space<vmem>>, %arg4: memref<64x256xbf16, #tpu.memory_space<vmem>>, %arg5: memref<64x256xbf16, #tpu.memory_space<vmem>>, %arg6: memref<1x256xf32, #tpu.memory_space<vmem>>, %arg7: memref<64x128xbf16, #tpu.memory_space<vmem>>, %arg8: memref<1x128xf32, #tpu.memory_space<vmem>>, %arg9: memref<8x128xf32, #tpu.memory_space<vmem>>, %arg10: memref<64x256xf32, #tpu.memory_space<vmem>>, %arg11: memref<64x32xbf16, #tpu.memory_space<vmem>>, %arg12: memref<64x32xbf16, #tpu.memory_space<vmem>>) attributes {dimension_semantics = [], scalar_prefetch = 0 : i64, scratch_operands = 3 : i64, tpu.core_type = #tpu.core_type<tc>} {
    %c0 = arith.constant 0 : index
    %c0_0 = arith.constant 0 : index
    %0 = vector.load %arg0[%c0, %c0_0] : memref<64x32xf32, #tpu.memory_space<vmem>>, vector<64x32xf32>
    %1 = arith.truncf %0 : vector<64x32xf32> to vector<64x32xbf16>
    %c0_1 = arith.constant 0 : index
    %c0_2 = arith.constant 0 : index
    %2 = vector.load %arg1[%c0_1, %c0_2] : memref<32x256xbf16, #tpu.memory_space<vmem>>, vector<32x256xbf16>
    %cst = arith.constant dense<0.000000e+00> : vector<64x256xf32>
    %3 = tpu.matmul %1, %2, %cst {dimension_numbers = #tpu.dot_dimension_numbers<[1], [0], [0], [1], [0, 0, 1, 1], [], []>} : vector<64x32xbf16>, vector<32x256xbf16>, vector<64x256xf32> -> vector<64x256xf32>
    %c0_3 = arith.constant 0 : index
    %c0_4 = arith.constant 0 : index
    %4 = vector.load %arg3[%c0_3, %c0_4] : memref<1x256xf32, #tpu.memory_space<vmem>>, vector<1x256xf32>
    %5 = vector.broadcast %4 : vector<1x256xf32> to vector<64x256xf32>
    %6 = arith.addf %3, %5 : vector<64x256xf32>
    %c0_5 = arith.constant 0 : index
    %c0_6 = arith.constant 0 : index
    %7 = vector.load %arg10[%c0_5, %c0_6] : memref<64x256xf32, #tpu.memory_space<vmem>>, vector<64x256xf32>
    tpu.vector_store %arg10[%c0_5, %c0_6], %6 {strides = array<i32>} : memref<64x256xf32, #tpu.memory_space<vmem>>, vector<64x256xf32>,
    %c0_7 = arith.constant 0 : index
    %c0_8 = arith.constant 0 : index
    %8 = vector.load %arg2[%c0_7, %c0_8] : memref<64x256xbf16, #tpu.memory_space<vmem>>, vector<64x256xbf16>
    %cst_9 = arith.constant 0.000000e+00 : f32
    %9 = vector.broadcast %cst_9 : f32 to vector<8x32xf32>
    %c0_i32 = arith.constant 0 : i32
    %c8_i32 = arith.constant 8 : i32
    %10 = arith.muli %c0_i32, %c8_i32 : i32
    %11 = tpu.assume_multiple %10, 8 : i32
    %12 = arith.index_cast %11 : i32 to index
    %c0_10 = arith.constant 0 : index
    %13 = vector.load %arg10[%12, %c0_10] : memref<64x256xf32, #tpu.memory_space<vmem>>, vector<8x256xf32>
    %c7_i32 = arith.constant 7 : i32
    %14 = arith.subi %c7_i32, %c0_i32 : i32
    %c8_i32_11 = arith.constant 8 : i32
    %15 = arith.muli %14, %c8_i32_11 : i32
    %16 = tpu.assume_multiple %15, 8 : i32
    %17 = arith.index_cast %16 : i32 to index
    %c0_12 = arith.constant 0 : index
    %18 = vector.load %arg10[%17, %c0_12] : memref<64x256xf32, #tpu.memory_space<vmem>>, vector<8x256xf32>
    %19 = vector.extract_strided_slice %13 {offsets = [0, 0], sizes = [8, 128], strides = [1, 1]} : vector<8x256xf32> to vector<8x128xf32>
    %20 = vector.extract_strided_slice %18 {offsets = [0, 128], sizes = [8, 128], strides = [1, 1]} : vector<8x256xf32> to vector<8x128xf32>
    %21 = tpu.concatenate %19, %20 in 1 : vector<8x128xf32>, vector<8x128xf32> -> vector<8x256xf32>
    %22 = tpu.concatenate %9, %9 in 1 : vector<8x32xf32>, vector<8x32xf32> -> vector<8x64xf32>
    %23 = arith.truncf %22 : vector<8x64xf32> to vector<8x64xbf16>
    %cst_13 = arith.constant dense<0.000000e+00> : vector<8x256xf32>
    %24 = tpu.matmul %23, %8, %cst_13 {dimension_numbers = #tpu.dot_dimension_numbers<[1], [0], [0], [1], [0, 0, 1, 1], [], []>} : vector<8x64xbf16>, vector<64x256xbf16>, vector<8x256xf32> -> vector<8x256xf32>
    %25 = arith.addf %21, %24 : vector<8x256xf32>
    %26 = arith.negf %25 : vector<8x256xf32>
    %27 = math.exp %26 : vector<8x256xf32>
    %cst_14 = arith.constant 1.000000e+00 : f32
    %28 = vector.broadcast %cst_14 : f32 to vector<8x256xf32>
    %29 = arith.addf %28, %27 : vector<8x256xf32>
    %30 = arith.divf %28, %29 : vector<8x256xf32>
    %31 = math.tanh %25 : vector<8x256xf32>
    %32 = vector.extract_strided_slice %30 {offsets = [0, 32], sizes = [8, 32], strides = [1, 1]} : vector<8x256xf32> to vector<8x32xf32>
    %33 = arith.mulf %32, %9 : vector<8x32xf32>
    %34 = vector.extract_strided_slice %30 {offsets = [0, 0], sizes = [8, 32], strides = [1, 1]} : vector<8x256xf32> to vector<8x32xf32>
    %35 = vector.extract_strided_slice %31 {offsets = [0, 64], sizes = [8, 32], strides = [1, 1]} : vector<8x256xf32> to vector<8x32xf32>
    %36 = arith.mulf %34, %35 : vector<8x32xf32>
    %37 = arith.addf %33, %36 : vector<8x32xf32>
    %38 = vector.extract_strided_slice %30 {offsets = [0, 96], sizes = [8, 32], strides = [1, 1]} : vector<8x256xf32> to vector<8x32xf32>
    %39 = math.tanh %37 : vector<8x32xf32>
    %40 = arith.mulf %38, %39 : vector<8x32xf32>
    %41 = arith.truncf %40 : vector<8x32xf32> to vector<8x32xbf16>
    %42 = arith.index_cast %11 : i32 to index
    %c0_15 = arith.constant 0 : index
    %43 = vector.load %arg11[%42, %c0_15] : memref<64x32xbf16, #tpu.memory_space<vmem>>, vector<8x32xbf16>
    tpu.vector_store %arg11[%42, %c0_15], %41 {strides = array<i32>} : memref<64x32xbf16, #tpu.memory_space<vmem>>, vector<8x32xbf16>,
    %44 = vector.extract_strided_slice %30 {offsets = [0, 160], sizes = [8, 32], strides = [1, 1]} : vector<8x256xf32> to vector<8x32xf32>
    %45 = arith.mulf %44, %9 : vector<8x32xf32>
    %46 = vector.extract_strided_slice %30 {offsets = [0, 128], sizes = [8, 32], strides = [1, 1]} : vector<8x256xf32> to vector<8x32xf32>
    %47 = vector.extract_strided_slice %31 {offsets = [0, 192], sizes = [8, 32], strides = [1, 1]} : vector<8x256xf32> to vector<8x32xf32>
    %48 = arith.mulf %46, %47 : vector<8x32xf32>
    %49 = arith.addf %45, %48 : vector<8x32xf32>
    %50 = vector.extract_strided_slice %30 {offsets = [0, 224], sizes = [8, 32], strides = [1, 1]} : vector<8x256xf32> to vector<8x32xf32>
    %51 = math.tanh %49 : vector<8x32xf32>
    %52 = arith.mulf %50, %51 : vector<8x32xf32>
    %53 = arith.truncf %52 : vector<8x32xf32> to vector<8x32xbf16>
    %54 = arith.index_cast %16 : i32 to index
    %c0_16 = arith.constant 0 : index
    %55 = vector.load %arg12[%54, %c0_16] : memref<64x32xbf16, #tpu.memory_space<vmem>>, vector<8x32xbf16>
    tpu.vector_store %arg12[%54, %c0_16], %53 {strides = array<i32>} : memref<64x32xbf16, #tpu.memory_space<vmem>>, vector<8x32xbf16>,
    %c1_i32 = arith.constant 1 : i32
    %c8_i32_17 = arith.constant 8 : i32
    %56 = arith.muli %c1_i32, %c8_i32_17 : i32
    %57 = tpu.assume_multiple %56, 8 : i32
    %58 = arith.index_cast %57 : i32 to index
    %c0_18 = arith.constant 0 : index
    %59 = vector.load %arg10[%58, %c0_18] : memref<64x256xf32, #tpu.memory_space<vmem>>, vector<8x256xf32>
    %c7_i32_19 = arith.constant 7 : i32
    %60 = arith.subi %c7_i32_19, %c1_i32 : i32
    %c8_i32_20 = arith.constant 8 : i32
    %61 = arith.muli %60, %c8_i32_20 : i32
    %62 = tpu.assume_multiple %61, 8 : i32
    %63 = arith.index_cast %62 : i32 to index
    %c0_21 = arith.constant 0 : index
    %64 = vector.load %arg10[%63, %c0_21] : memref<64x256xf32, #tpu.memory_space<vmem>>, vector<8x256xf32>
    %65 = vector.extract_strided_slice %59 {offsets = [0, 0], sizes = [8, 128], strides = [1, 1]} : vector<8x256xf32> to vector<8x128xf32>
    %66 = vector.extract_strided_slice %64 {offsets = [0, 128], sizes = [8, 128], strides = [1, 1]} : vector<8x256xf32> to vector<8x128xf32>
    %67 = tpu.concatenate %65, %66 in 1 : vector<8x128xf32>, vector<8x128xf32> -> vector<8x256xf32>
    %68 = tpu.concatenate %40, %52 in 1 : vector<8x32xf32>, vector<8x32xf32> -> vector<8x64xf32>
    %69 = arith.truncf %68 : vector<8x64xf32> to vector<8x64xbf16>
    %cst_22 = arith.constant dense<0.000000e+00> : vector<8x256xf32>
    %70 = tpu.matmul %69, %8, %cst_22 {dimension_numbers = #tpu.dot_dimension_numbers<[1], [0], [0], [1], [0, 0, 1, 1], [], []>} : vector<8x64xbf16>, vector<64x256xbf16>, vector<8x256xf32> -> vector<8x256xf32>
    %71 = arith.addf %67, %70 : vector<8x256xf32>
    %72 = arith.negf %71 : vector<8x256xf32>
    %73 = math.exp %72 : vector<8x256xf32>
    %cst_23 = arith.constant 1.000000e+00 : f32
    %74 = vector.broadcast %cst_23 : f32 to vector<8x256xf32>
    %75 = arith.addf %74, %73 : vector<8x256xf32>
    %76 = arith.divf %74, %75 : vector<8x256xf32>
    %77 = math.tanh %71 : vector<8x256xf32>
    %78 = vector.extract_strided_slice %76 {offsets = [0, 32], sizes = [8, 32], strides = [1, 1]} : vector<8x256xf32> to vector<8x32xf32>
    %79 = arith.mulf %78, %37 : vector<8x32xf32>
    %80 = vector.extract_strided_slice %76 {offsets = [0, 0], sizes = [8, 32], strides = [1, 1]} : vector<8x256xf32> to vector<8x32xf32>
    %81 = vector.extract_strided_slice %77 {offsets = [0, 64], sizes = [8, 32], strides = [1, 1]} : vector<8x256xf32> to vector<8x32xf32>
    %82 = arith.mulf %80, %81 : vector<8x32xf32>
    %83 = arith.addf %79, %82 : vector<8x32xf32>
    %84 = vector.extract_strided_slice %76 {offsets = [0, 96], sizes = [8, 32], strides = [1, 1]} : vector<8x256xf32> to vector<8x32xf32>
    %85 = math.tanh %83 : vector<8x32xf32>
    %86 = arith.mulf %84, %85 : vector<8x32xf32>
    %87 = arith.truncf %86 : vector<8x32xf32> to vector<8x32xbf16>
    %88 = arith.index_cast %57 : i32 to index
    %c0_24 = arith.constant 0 : index
    %89 = vector.load %arg11[%88, %c0_24] : memref<64x32xbf16, #tpu.memory_space<vmem>>, vector<8x32xbf16>
    tpu.vector_store %arg11[%88, %c0_24], %87 {strides = array<i32>} : memref<64x32xbf16, #tpu.memory_space<vmem>>, vector<8x32xbf16>,
    %90 = vector.extract_strided_slice %76 {offsets = [0, 160], sizes = [8, 32], strides = [1, 1]} : vector<8x256xf32> to vector<8x32xf32>
    %91 = arith.mulf %90, %49 : vector<8x32xf32>
    %92 = vector.extract_strided_slice %76 {offsets = [0, 128], sizes = [8, 32], strides = [1, 1]} : vector<8x256xf32> to vector<8x32xf32>
    %93 = vector.extract_strided_slice %77 {offsets = [0, 192], sizes = [8, 32], strides = [1, 1]} : vector<8x256xf32> to vector<8x32xf32>
    %94 = arith.mulf %92, %93 : vector<8x32xf32>
    %95 = arith.addf %91, %94 : vector<8x32xf32>
    %96 = vector.extract_strided_slice %76 {offsets = [0, 224], sizes = [8, 32], strides = [1, 1]} : vector<8x256xf32> to vector<8x32xf32>
    %97 = math.tanh %95 : vector<8x32xf32>
    %98 = arith.mulf %96, %97 : vector<8x32xf32>
    %99 = arith.truncf %98 : vector<8x32xf32> to vector<8x32xbf16>
    %100 = arith.index_cast %62 : i32 to index
    %c0_25 = arith.constant 0 : index
    %101 = vector.load %arg12[%100, %c0_25] : memref<64x32xbf16, #tpu.memory_space<vmem>>, vector<8x32xbf16>
    tpu.vector_store %arg12[%100, %c0_25], %99 {strides = array<i32>} : memref<64x32xbf16, #tpu.memory_space<vmem>>, vector<8x32xbf16>,
    %c2_i32 = arith.constant 2 : i32
    %c8_i32_26 = arith.constant 8 : i32
    %102 = arith.muli %c2_i32, %c8_i32_26 : i32
    %103 = tpu.assume_multiple %102, 8 : i32
    %104 = arith.index_cast %103 : i32 to index
    %c0_27 = arith.constant 0 : index
    %105 = vector.load %arg10[%104, %c0_27] : memref<64x256xf32, #tpu.memory_space<vmem>>, vector<8x256xf32>
    %c7_i32_28 = arith.constant 7 : i32
    %106 = arith.subi %c7_i32_28, %c2_i32 : i32
    %c8_i32_29 = arith.constant 8 : i32
    %107 = arith.muli %106, %c8_i32_29 : i32
    %108 = tpu.assume_multiple %107, 8 : i32
    %109 = arith.index_cast %108 : i32 to index
    %c0_30 = arith.constant 0 : index
    %110 = vector.load %arg10[%109, %c0_30] : memref<64x256xf32, #tpu.memory_space<vmem>>, vector<8x256xf32>
    %111 = vector.extract_strided_slice %105 {offsets = [0, 0], sizes = [8, 128], strides = [1, 1]} : vector<8x256xf32> to vector<8x128xf32>
    %112 = vector.extract_strided_slice %110 {offsets = [0, 128], sizes = [8, 128], strides = [1, 1]} : vector<8x256xf32> to vector<8x128xf32>
    %113 = tpu.concatenate %111, %112 in 1 : vector<8x128xf32>, vector<8x128xf32> -> vector<8x256xf32>
    %114 = tpu.concatenate %86, %98 in 1 : vector<8x32xf32>, vector<8x32xf32> -> vector<8x64xf32>
    %115 = arith.truncf %114 : vector<8x64xf32> to vector<8x64xbf16>
    %cst_31 = arith.constant dense<0.000000e+00> : vector<8x256xf32>
    %116 = tpu.matmul %115, %8, %cst_31 {dimension_numbers = #tpu.dot_dimension_numbers<[1], [0], [0], [1], [0, 0, 1, 1], [], []>} : vector<8x64xbf16>, vector<64x256xbf16>, vector<8x256xf32> -> vector<8x256xf32>
    %117 = arith.addf %113, %116 : vector<8x256xf32>
    %118 = arith.negf %117 : vector<8x256xf32>
    %119 = math.exp %118 : vector<8x256xf32>
    %cst_32 = arith.constant 1.000000e+00 : f32
    %120 = vector.broadcast %cst_32 : f32 to vector<8x256xf32>
    %121 = arith.addf %120, %119 : vector<8x256xf32>
    %122 = arith.divf %120, %121 : vector<8x256xf32>
    %123 = math.tanh %117 : vector<8x256xf32>
    %124 = vector.extract_strided_slice %122 {offsets = [0, 32], sizes = [8, 32], strides = [1, 1]} : vector<8x256xf32> to vector<8x32xf32>
    %125 = arith.mulf %124, %83 : vector<8x32xf32>
    %126 = vector.extract_strided_slice %122 {offsets = [0, 0], sizes = [8, 32], strides = [1, 1]} : vector<8x256xf32> to vector<8x32xf32>
    %127 = vector.extract_strided_slice %123 {offsets = [0, 64], sizes = [8, 32], strides = [1, 1]} : vector<8x256xf32> to vector<8x32xf32>
    %128 = arith.mulf %126, %127 : vector<8x32xf32>
    %129 = arith.addf %125, %128 : vector<8x32xf32>
    %130 = vector.extract_strided_slice %122 {offsets = [0, 96], sizes = [8, 32], strides = [1, 1]} : vector<8x256xf32> to vector<8x32xf32>
    %131 = math.tanh %129 : vector<8x32xf32>
    %132 = arith.mulf %130, %131 : vector<8x32xf32>
    %133 = arith.truncf %132 : vector<8x32xf32> to vector<8x32xbf16>
    %134 = arith.index_cast %103 : i32 to index
    %c0_33 = arith.constant 0 : index
    %135 = vector.load %arg11[%134, %c0_33] : memref<64x32xbf16, #tpu.memory_space<vmem>>, vector<8x32xbf16>
    tpu.vector_store %arg11[%134, %c0_33], %133 {strides = array<i32>} : memref<64x32xbf16, #tpu.memory_space<vmem>>, vector<8x32xbf16>,
    %136 = vector.extract_strided_slice %122 {offsets = [0, 160], sizes = [8, 32], strides = [1, 1]} : vector<8x256xf32> to vector<8x32xf32>
    %137 = arith.mulf %136, %95 : vector<8x32xf32>
    %138 = vector.extract_strided_slice %122 {offsets = [0, 128], sizes = [8, 32], strides = [1, 1]} : vector<8x256xf32> to vector<8x32xf32>
    %139 = vector.extract_strided_slice %123 {offsets = [0, 192], sizes = [8, 32], strides = [1, 1]} : vector<8x256xf32> to vector<8x32xf32>
    %140 = arith.mulf %138, %139 : vector<8x32xf32>
    %141 = arith.addf %137, %140 : vector<8x32xf32>
    %142 = vector.extract_strided_slice %122 {offsets = [0, 224], sizes = [8, 32], strides = [1, 1]} : vector<8x256xf32> to vector<8x32xf32>
    %143 = math.tanh %141 : vector<8x32xf32>
    %144 = arith.mulf %142, %143 : vector<8x32xf32>
    %145 = arith.truncf %144 : vector<8x32xf32> to vector<8x32xbf16>
    %146 = arith.index_cast %108 : i32 to index
    %c0_34 = arith.constant 0 : index
    %147 = vector.load %arg12[%146, %c0_34] : memref<64x32xbf16, #tpu.memory_space<vmem>>, vector<8x32xbf16>
    tpu.vector_store %arg12[%146, %c0_34], %145 {strides = array<i32>} : memref<64x32xbf16, #tpu.memory_space<vmem>>, vector<8x32xbf16>,
    %c3_i32 = arith.constant 3 : i32
    %c8_i32_35 = arith.constant 8 : i32
    %148 = arith.muli %c3_i32, %c8_i32_35 : i32
    %149 = tpu.assume_multiple %148, 8 : i32
    %150 = arith.index_cast %149 : i32 to index
    %c0_36 = arith.constant 0 : index
    %151 = vector.load %arg10[%150, %c0_36] : memref<64x256xf32, #tpu.memory_space<vmem>>, vector<8x256xf32>
    %c7_i32_37 = arith.constant 7 : i32
    %152 = arith.subi %c7_i32_37, %c3_i32 : i32
    %c8_i32_38 = arith.constant 8 : i32
    %153 = arith.muli %152, %c8_i32_38 : i32
    %154 = tpu.assume_multiple %153, 8 : i32
    %155 = arith.index_cast %154 : i32 to index
    %c0_39 = arith.constant 0 : index
    %156 = vector.load %arg10[%155, %c0_39] : memref<64x256xf32, #tpu.memory_space<vmem>>, vector<8x256xf32>
    %157 = vector.extract_strided_slice %151 {offsets = [0, 0], sizes = [8, 128], strides = [1, 1]} : vector<8x256xf32> to vector<8x128xf32>
    %158 = vector.extract_strided_slice %156 {offsets = [0, 128], sizes = [8, 128], strides = [1, 1]} : vector<8x256xf32> to vector<8x128xf32>
    %159 = tpu.concatenate %157, %158 in 1 : vector<8x128xf32>, vector<8x128xf32> -> vector<8x256xf32>
    %160 = tpu.concatenate %132, %144 in 1 : vector<8x32xf32>, vector<8x32xf32> -> vector<8x64xf32>
    %161 = arith.truncf %160 : vector<8x64xf32> to vector<8x64xbf16>
    %cst_40 = arith.constant dense<0.000000e+00> : vector<8x256xf32>
    %162 = tpu.matmul %161, %8, %cst_40 {dimension_numbers = #tpu.dot_dimension_numbers<[1], [0], [0], [1], [0, 0, 1, 1], [], []>} : vector<8x64xbf16>, vector<64x256xbf16>, vector<8x256xf32> -> vector<8x256xf32>
    %163 = arith.addf %159, %162 : vector<8x256xf32>
    %164 = arith.negf %163 : vector<8x256xf32>
    %165 = math.exp %164 : vector<8x256xf32>
    %cst_41 = arith.constant 1.000000e+00 : f32
    %166 = vector.broadcast %cst_41 : f32 to vector<8x256xf32>
    %167 = arith.addf %166, %165 : vector<8x256xf32>
    %168 = arith.divf %166, %167 : vector<8x256xf32>
    %169 = math.tanh %163 : vector<8x256xf32>
    %170 = vector.extract_strided_slice %168 {offsets = [0, 32], sizes = [8, 32], strides = [1, 1]} : vector<8x256xf32> to vector<8x32xf32>
    %171 = arith.mulf %170, %129 : vector<8x32xf32>
    %172 = vector.extract_strided_slice %168 {offsets = [0, 0], sizes = [8, 32], strides = [1, 1]} : vector<8x256xf32> to vector<8x32xf32>
    %173 = vector.extract_strided_slice %169 {offsets = [0, 64], sizes = [8, 32], strides = [1, 1]} : vector<8x256xf32> to vector<8x32xf32>
    %174 = arith.mulf %172, %173 : vector<8x32xf32>
    %175 = arith.addf %171, %174 : vector<8x32xf32>
    %176 = vector.extract_strided_slice %168 {offsets = [0, 96], sizes = [8, 32], strides = [1, 1]} : vector<8x256xf32> to vector<8x32xf32>
    %177 = math.tanh %175 : vector<8x32xf32>
    %178 = arith.mulf %176, %177 : vector<8x32xf32>
    %179 = arith.truncf %178 : vector<8x32xf32> to vector<8x32xbf16>
    %180 = arith.index_cast %149 : i32 to index
    %c0_42 = arith.constant 0 : index
    %181 = vector.load %arg11[%180, %c0_42] : memref<64x32xbf16, #tpu.memory_space<vmem>>, vector<8x32xbf16>
    tpu.vector_store %arg11[%180, %c0_42], %179 {strides = array<i32>} : memref<64x32xbf16, #tpu.memory_space<vmem>>, vector<8x32xbf16>,
    %182 = vector.extract_strided_slice %168 {offsets = [0, 160], sizes = [8, 32], strides = [1, 1]} : vector<8x256xf32> to vector<8x32xf32>
    %183 = arith.mulf %182, %141 : vector<8x32xf32>
    %184 = vector.extract_strided_slice %168 {offsets = [0, 128], sizes = [8, 32], strides = [1, 1]} : vector<8x256xf32> to vector<8x32xf32>
    %185 = vector.extract_strided_slice %169 {offsets = [0, 192], sizes = [8, 32], strides = [1, 1]} : vector<8x256xf32> to vector<8x32xf32>
    %186 = arith.mulf %184, %185 : vector<8x32xf32>
    %187 = arith.addf %183, %186 : vector<8x32xf32>
    %188 = vector.extract_strided_slice %168 {offsets = [0, 224], sizes = [8, 32], strides = [1, 1]} : vector<8x256xf32> to vector<8x32xf32>
    %189 = math.tanh %187 : vector<8x32xf32>
    %190 = arith.mulf %188, %189 : vector<8x32xf32>
    %191 = arith.truncf %190 : vector<8x32xf32> to vector<8x32xbf16>
    %192 = arith.index_cast %154 : i32 to index
    %c0_43 = arith.constant 0 : index
    %193 = vector.load %arg12[%192, %c0_43] : memref<64x32xbf16, #tpu.memory_space<vmem>>, vector<8x32xbf16>
    tpu.vector_store %arg12[%192, %c0_43], %191 {strides = array<i32>} : memref<64x32xbf16, #tpu.memory_space<vmem>>, vector<8x32xbf16>,
    %c4_i32 = arith.constant 4 : i32
    %c8_i32_44 = arith.constant 8 : i32
    %194 = arith.muli %c4_i32, %c8_i32_44 : i32
    %195 = tpu.assume_multiple %194, 8 : i32
    %196 = arith.index_cast %195 : i32 to index
    %c0_45 = arith.constant 0 : index
    %197 = vector.load %arg10[%196, %c0_45] : memref<64x256xf32, #tpu.memory_space<vmem>>, vector<8x256xf32>
    %c7_i32_46 = arith.constant 7 : i32
    %198 = arith.subi %c7_i32_46, %c4_i32 : i32
    %c8_i32_47 = arith.constant 8 : i32
    %199 = arith.muli %198, %c8_i32_47 : i32
    %200 = tpu.assume_multiple %199, 8 : i32
    %201 = arith.index_cast %200 : i32 to index
    %c0_48 = arith.constant 0 : index
    %202 = vector.load %arg10[%201, %c0_48] : memref<64x256xf32, #tpu.memory_space<vmem>>, vector<8x256xf32>
    %203 = vector.extract_strided_slice %197 {offsets = [0, 0], sizes = [8, 128], strides = [1, 1]} : vector<8x256xf32> to vector<8x128xf32>
    %204 = vector.extract_strided_slice %202 {offsets = [0, 128], sizes = [8, 128], strides = [1, 1]} : vector<8x256xf32> to vector<8x128xf32>
    %205 = tpu.concatenate %203, %204 in 1 : vector<8x128xf32>, vector<8x128xf32> -> vector<8x256xf32>
    %206 = tpu.concatenate %178, %190 in 1 : vector<8x32xf32>, vector<8x32xf32> -> vector<8x64xf32>
    %207 = arith.truncf %206 : vector<8x64xf32> to vector<8x64xbf16>
    %cst_49 = arith.constant dense<0.000000e+00> : vector<8x256xf32>
    %208 = tpu.matmul %207, %8, %cst_49 {dimension_numbers = #tpu.dot_dimension_numbers<[1], [0], [0], [1], [0, 0, 1, 1], [], []>} : vector<8x64xbf16>, vector<64x256xbf16>, vector<8x256xf32> -> vector<8x256xf32>
    %209 = arith.addf %205, %208 : vector<8x256xf32>
    %210 = arith.negf %209 : vector<8x256xf32>
    %211 = math.exp %210 : vector<8x256xf32>
    %cst_50 = arith.constant 1.000000e+00 : f32
    %212 = vector.broadcast %cst_50 : f32 to vector<8x256xf32>
    %213 = arith.addf %212, %211 : vector<8x256xf32>
    %214 = arith.divf %212, %213 : vector<8x256xf32>
    %215 = math.tanh %209 : vector<8x256xf32>
    %216 = vector.extract_strided_slice %214 {offsets = [0, 32], sizes = [8, 32], strides = [1, 1]} : vector<8x256xf32> to vector<8x32xf32>
    %217 = arith.mulf %216, %175 : vector<8x32xf32>
    %218 = vector.extract_strided_slice %214 {offsets = [0, 0], sizes = [8, 32], strides = [1, 1]} : vector<8x256xf32> to vector<8x32xf32>
    %219 = vector.extract_strided_slice %215 {offsets = [0, 64], sizes = [8, 32], strides = [1, 1]} : vector<8x256xf32> to vector<8x32xf32>
    %220 = arith.mulf %218, %219 : vector<8x32xf32>
    %221 = arith.addf %217, %220 : vector<8x32xf32>
    %222 = vector.extract_strided_slice %214 {offsets = [0, 96], sizes = [8, 32], strides = [1, 1]} : vector<8x256xf32> to vector<8x32xf32>
    %223 = math.tanh %221 : vector<8x32xf32>
    %224 = arith.mulf %222, %223 : vector<8x32xf32>
    %225 = arith.truncf %224 : vector<8x32xf32> to vector<8x32xbf16>
    %226 = arith.index_cast %195 : i32 to index
    %c0_51 = arith.constant 0 : index
    %227 = vector.load %arg11[%226, %c0_51] : memref<64x32xbf16, #tpu.memory_space<vmem>>, vector<8x32xbf16>
    tpu.vector_store %arg11[%226, %c0_51], %225 {strides = array<i32>} : memref<64x32xbf16, #tpu.memory_space<vmem>>, vector<8x32xbf16>,
    %228 = vector.extract_strided_slice %214 {offsets = [0, 160], sizes = [8, 32], strides = [1, 1]} : vector<8x256xf32> to vector<8x32xf32>
    %229 = arith.mulf %228, %187 : vector<8x32xf32>
    %230 = vector.extract_strided_slice %214 {offsets = [0, 128], sizes = [8, 32], strides = [1, 1]} : vector<8x256xf32> to vector<8x32xf32>
    %231 = vector.extract_strided_slice %215 {offsets = [0, 192], sizes = [8, 32], strides = [1, 1]} : vector<8x256xf32> to vector<8x32xf32>
    %232 = arith.mulf %230, %231 : vector<8x32xf32>
    %233 = arith.addf %229, %232 : vector<8x32xf32>
    %234 = vector.extract_strided_slice %214 {offsets = [0, 224], sizes = [8, 32], strides = [1, 1]} : vector<8x256xf32> to vector<8x32xf32>
    %235 = math.tanh %233 : vector<8x32xf32>
    %236 = arith.mulf %234, %235 : vector<8x32xf32>
    %237 = arith.truncf %236 : vector<8x32xf32> to vector<8x32xbf16>
    %238 = arith.index_cast %200 : i32 to index
    %c0_52 = arith.constant 0 : index
    %239 = vector.load %arg12[%238, %c0_52] : memref<64x32xbf16, #tpu.memory_space<vmem>>, vector<8x32xbf16>
    tpu.vector_store %arg12[%238, %c0_52], %237 {strides = array<i32>} : memref<64x32xbf16, #tpu.memory_space<vmem>>, vector<8x32xbf16>,
    %c5_i32 = arith.constant 5 : i32
    %c8_i32_53 = arith.constant 8 : i32
    %240 = arith.muli %c5_i32, %c8_i32_53 : i32
    %241 = tpu.assume_multiple %240, 8 : i32
    %242 = arith.index_cast %241 : i32 to index
    %c0_54 = arith.constant 0 : index
    %243 = vector.load %arg10[%242, %c0_54] : memref<64x256xf32, #tpu.memory_space<vmem>>, vector<8x256xf32>
    %c7_i32_55 = arith.constant 7 : i32
    %244 = arith.subi %c7_i32_55, %c5_i32 : i32
    %c8_i32_56 = arith.constant 8 : i32
    %245 = arith.muli %244, %c8_i32_56 : i32
    %246 = tpu.assume_multiple %245, 8 : i32
    %247 = arith.index_cast %246 : i32 to index
    %c0_57 = arith.constant 0 : index
    %248 = vector.load %arg10[%247, %c0_57] : memref<64x256xf32, #tpu.memory_space<vmem>>, vector<8x256xf32>
    %249 = vector.extract_strided_slice %243 {offsets = [0, 0], sizes = [8, 128], strides = [1, 1]} : vector<8x256xf32> to vector<8x128xf32>
    %250 = vector.extract_strided_slice %248 {offsets = [0, 128], sizes = [8, 128], strides = [1, 1]} : vector<8x256xf32> to vector<8x128xf32>
    %251 = tpu.concatenate %249, %250 in 1 : vector<8x128xf32>, vector<8x128xf32> -> vector<8x256xf32>
    %252 = tpu.concatenate %224, %236 in 1 : vector<8x32xf32>, vector<8x32xf32> -> vector<8x64xf32>
    %253 = arith.truncf %252 : vector<8x64xf32> to vector<8x64xbf16>
    %cst_58 = arith.constant dense<0.000000e+00> : vector<8x256xf32>
    %254 = tpu.matmul %253, %8, %cst_58 {dimension_numbers = #tpu.dot_dimension_numbers<[1], [0], [0], [1], [0, 0, 1, 1], [], []>} : vector<8x64xbf16>, vector<64x256xbf16>, vector<8x256xf32> -> vector<8x256xf32>
    %255 = arith.addf %251, %254 : vector<8x256xf32>
    %256 = arith.negf %255 : vector<8x256xf32>
    %257 = math.exp %256 : vector<8x256xf32>
    %cst_59 = arith.constant 1.000000e+00 : f32
    %258 = vector.broadcast %cst_59 : f32 to vector<8x256xf32>
    %259 = arith.addf %258, %257 : vector<8x256xf32>
    %260 = arith.divf %258, %259 : vector<8x256xf32>
    %261 = math.tanh %255 : vector<8x256xf32>
    %262 = vector.extract_strided_slice %260 {offsets = [0, 32], sizes = [8, 32], strides = [1, 1]} : vector<8x256xf32> to vector<8x32xf32>
    %263 = arith.mulf %262, %221 : vector<8x32xf32>
    %264 = vector.extract_strided_slice %260 {offsets = [0, 0], sizes = [8, 32], strides = [1, 1]} : vector<8x256xf32> to vector<8x32xf32>
    %265 = vector.extract_strided_slice %261 {offsets = [0, 64], sizes = [8, 32], strides = [1, 1]} : vector<8x256xf32> to vector<8x32xf32>
    %266 = arith.mulf %264, %265 : vector<8x32xf32>
    %267 = arith.addf %263, %266 : vector<8x32xf32>
    %268 = vector.extract_strided_slice %260 {offsets = [0, 96], sizes = [8, 32], strides = [1, 1]} : vector<8x256xf32> to vector<8x32xf32>
    %269 = math.tanh %267 : vector<8x32xf32>
    %270 = arith.mulf %268, %269 : vector<8x32xf32>
    %271 = arith.truncf %270 : vector<8x32xf32> to vector<8x32xbf16>
    %272 = arith.index_cast %241 : i32 to index
    %c0_60 = arith.constant 0 : index
    %273 = vector.load %arg11[%272, %c0_60] : memref<64x32xbf16, #tpu.memory_space<vmem>>, vector<8x32xbf16>
    tpu.vector_store %arg11[%272, %c0_60], %271 {strides = array<i32>} : memref<64x32xbf16, #tpu.memory_space<vmem>>, vector<8x32xbf16>,
    %274 = vector.extract_strided_slice %260 {offsets = [0, 160], sizes = [8, 32], strides = [1, 1]} : vector<8x256xf32> to vector<8x32xf32>
    %275 = arith.mulf %274, %233 : vector<8x32xf32>
    %276 = vector.extract_strided_slice %260 {offsets = [0, 128], sizes = [8, 32], strides = [1, 1]} : vector<8x256xf32> to vector<8x32xf32>
    %277 = vector.extract_strided_slice %261 {offsets = [0, 192], sizes = [8, 32], strides = [1, 1]} : vector<8x256xf32> to vector<8x32xf32>
    %278 = arith.mulf %276, %277 : vector<8x32xf32>
    %279 = arith.addf %275, %278 : vector<8x32xf32>
    %280 = vector.extract_strided_slice %260 {offsets = [0, 224], sizes = [8, 32], strides = [1, 1]} : vector<8x256xf32> to vector<8x32xf32>
    %281 = math.tanh %279 : vector<8x32xf32>
    %282 = arith.mulf %280, %281 : vector<8x32xf32>
    %283 = arith.truncf %282 : vector<8x32xf32> to vector<8x32xbf16>
    %284 = arith.index_cast %246 : i32 to index
    %c0_61 = arith.constant 0 : index
    %285 = vector.load %arg12[%284, %c0_61] : memref<64x32xbf16, #tpu.memory_space<vmem>>, vector<8x32xbf16>
    tpu.vector_store %arg12[%284, %c0_61], %283 {strides = array<i32>} : memref<64x32xbf16, #tpu.memory_space<vmem>>, vector<8x32xbf16>,
    %c6_i32 = arith.constant 6 : i32
    %c8_i32_62 = arith.constant 8 : i32
    %286 = arith.muli %c6_i32, %c8_i32_62 : i32
    %287 = tpu.assume_multiple %286, 8 : i32
    %288 = arith.index_cast %287 : i32 to index
    %c0_63 = arith.constant 0 : index
    %289 = vector.load %arg10[%288, %c0_63] : memref<64x256xf32, #tpu.memory_space<vmem>>, vector<8x256xf32>
    %c7_i32_64 = arith.constant 7 : i32
    %290 = arith.subi %c7_i32_64, %c6_i32 : i32
    %c8_i32_65 = arith.constant 8 : i32
    %291 = arith.muli %290, %c8_i32_65 : i32
    %292 = tpu.assume_multiple %291, 8 : i32
    %293 = arith.index_cast %292 : i32 to index
    %c0_66 = arith.constant 0 : index
    %294 = vector.load %arg10[%293, %c0_66] : memref<64x256xf32, #tpu.memory_space<vmem>>, vector<8x256xf32>
    %295 = vector.extract_strided_slice %289 {offsets = [0, 0], sizes = [8, 128], strides = [1, 1]} : vector<8x256xf32> to vector<8x128xf32>
    %296 = vector.extract_strided_slice %294 {offsets = [0, 128], sizes = [8, 128], strides = [1, 1]} : vector<8x256xf32> to vector<8x128xf32>
    %297 = tpu.concatenate %295, %296 in 1 : vector<8x128xf32>, vector<8x128xf32> -> vector<8x256xf32>
    %298 = tpu.concatenate %270, %282 in 1 : vector<8x32xf32>, vector<8x32xf32> -> vector<8x64xf32>
    %299 = arith.truncf %298 : vector<8x64xf32> to vector<8x64xbf16>
    %cst_67 = arith.constant dense<0.000000e+00> : vector<8x256xf32>
    %300 = tpu.matmul %299, %8, %cst_67 {dimension_numbers = #tpu.dot_dimension_numbers<[1], [0], [0], [1], [0, 0, 1, 1], [], []>} : vector<8x64xbf16>, vector<64x256xbf16>, vector<8x256xf32> -> vector<8x256xf32>
    %301 = arith.addf %297, %300 : vector<8x256xf32>
    %302 = arith.negf %301 : vector<8x256xf32>
    %303 = math.exp %302 : vector<8x256xf32>
    %cst_68 = arith.constant 1.000000e+00 : f32
    %304 = vector.broadcast %cst_68 : f32 to vector<8x256xf32>
    %305 = arith.addf %304, %303 : vector<8x256xf32>
    %306 = arith.divf %304, %305 : vector<8x256xf32>
    %307 = math.tanh %301 : vector<8x256xf32>
    %308 = vector.extract_strided_slice %306 {offsets = [0, 32], sizes = [8, 32], strides = [1, 1]} : vector<8x256xf32> to vector<8x32xf32>
    %309 = arith.mulf %308, %267 : vector<8x32xf32>
    %310 = vector.extract_strided_slice %306 {offsets = [0, 0], sizes = [8, 32], strides = [1, 1]} : vector<8x256xf32> to vector<8x32xf32>
    %311 = vector.extract_strided_slice %307 {offsets = [0, 64], sizes = [8, 32], strides = [1, 1]} : vector<8x256xf32> to vector<8x32xf32>
    %312 = arith.mulf %310, %311 : vector<8x32xf32>
    %313 = arith.addf %309, %312 : vector<8x32xf32>
    %314 = vector.extract_strided_slice %306 {offsets = [0, 96], sizes = [8, 32], strides = [1, 1]} : vector<8x256xf32> to vector<8x32xf32>
    %315 = math.tanh %313 : vector<8x32xf32>
    %316 = arith.mulf %314, %315 : vector<8x32xf32>
    %317 = arith.truncf %316 : vector<8x32xf32> to vector<8x32xbf16>
    %318 = arith.index_cast %287 : i32 to index
    %c0_69 = arith.constant 0 : index
    %319 = vector.load %arg11[%318, %c0_69] : memref<64x32xbf16, #tpu.memory_space<vmem>>, vector<8x32xbf16>
    tpu.vector_store %arg11[%318, %c0_69], %317 {strides = array<i32>} : memref<64x32xbf16, #tpu.memory_space<vmem>>, vector<8x32xbf16>,
    %320 = vector.extract_strided_slice %306 {offsets = [0, 160], sizes = [8, 32], strides = [1, 1]} : vector<8x256xf32> to vector<8x32xf32>
    %321 = arith.mulf %320, %279 : vector<8x32xf32>
    %322 = vector.extract_strided_slice %306 {offsets = [0, 128], sizes = [8, 32], strides = [1, 1]} : vector<8x256xf32> to vector<8x32xf32>
    %323 = vector.extract_strided_slice %307 {offsets = [0, 192], sizes = [8, 32], strides = [1, 1]} : vector<8x256xf32> to vector<8x32xf32>
    %324 = arith.mulf %322, %323 : vector<8x32xf32>
    %325 = arith.addf %321, %324 : vector<8x32xf32>
    %326 = vector.extract_strided_slice %306 {offsets = [0, 224], sizes = [8, 32], strides = [1, 1]} : vector<8x256xf32> to vector<8x32xf32>
    %327 = math.tanh %325 : vector<8x32xf32>
    %328 = arith.mulf %326, %327 : vector<8x32xf32>
    %329 = arith.truncf %328 : vector<8x32xf32> to vector<8x32xbf16>
    %330 = arith.index_cast %292 : i32 to index
    %c0_70 = arith.constant 0 : index
    %331 = vector.load %arg12[%330, %c0_70] : memref<64x32xbf16, #tpu.memory_space<vmem>>, vector<8x32xbf16>
    tpu.vector_store %arg12[%330, %c0_70], %329 {strides = array<i32>} : memref<64x32xbf16, #tpu.memory_space<vmem>>, vector<8x32xbf16>,
    %c7_i32_71 = arith.constant 7 : i32
    %c8_i32_72 = arith.constant 8 : i32
    %332 = arith.muli %c7_i32_71, %c8_i32_72 : i32
    %333 = tpu.assume_multiple %332, 8 : i32
    %334 = arith.index_cast %333 : i32 to index
    %c0_73 = arith.constant 0 : index
    %335 = vector.load %arg10[%334, %c0_73] : memref<64x256xf32, #tpu.memory_space<vmem>>, vector<8x256xf32>
    %c7_i32_74 = arith.constant 7 : i32
    %336 = arith.subi %c7_i32_74, %c7_i32_71 : i32
    %c8_i32_75 = arith.constant 8 : i32
    %337 = arith.muli %336, %c8_i32_75 : i32
    %338 = tpu.assume_multiple %337, 8 : i32
    %339 = arith.index_cast %338 : i32 to index
    %c0_76 = arith.constant 0 : index
    %340 = vector.load %arg10[%339, %c0_76] : memref<64x256xf32, #tpu.memory_space<vmem>>, vector<8x256xf32>
    %341 = vector.extract_strided_slice %335 {offsets = [0, 0], sizes = [8, 128], strides = [1, 1]} : vector<8x256xf32> to vector<8x128xf32>
    %342 = vector.extract_strided_slice %340 {offsets = [0, 128], sizes = [8, 128], strides = [1, 1]} : vector<8x256xf32> to vector<8x128xf32>
    %343 = tpu.concatenate %341, %342 in 1 : vector<8x128xf32>, vector<8x128xf32> -> vector<8x256xf32>
    %344 = tpu.concatenate %316, %328 in 1 : vector<8x32xf32>, vector<8x32xf32> -> vector<8x64xf32>
    %345 = arith.truncf %344 : vector<8x64xf32> to vector<8x64xbf16>
    %cst_77 = arith.constant dense<0.000000e+00> : vector<8x256xf32>
    %346 = tpu.matmul %345, %8, %cst_77 {dimension_numbers = #tpu.dot_dimension_numbers<[1], [0], [0], [1], [0, 0, 1, 1], [], []>} : vector<8x64xbf16>, vector<64x256xbf16>, vector<8x256xf32> -> vector<8x256xf32>
    %347 = arith.addf %343, %346 : vector<8x256xf32>
    %348 = arith.negf %347 : vector<8x256xf32>
    %349 = math.exp %348 : vector<8x256xf32>
    %cst_78 = arith.constant 1.000000e+00 : f32
    %350 = vector.broadcast %cst_78 : f32 to vector<8x256xf32>
    %351 = arith.addf %350, %349 : vector<8x256xf32>
    %352 = arith.divf %350, %351 : vector<8x256xf32>
    %353 = math.tanh %347 : vector<8x256xf32>
    %354 = vector.extract_strided_slice %352 {offsets = [0, 32], sizes = [8, 32], strides = [1, 1]} : vector<8x256xf32> to vector<8x32xf32>
    %355 = arith.mulf %354, %313 : vector<8x32xf32>
    %356 = vector.extract_strided_slice %352 {offsets = [0, 0], sizes = [8, 32], strides = [1, 1]} : vector<8x256xf32> to vector<8x32xf32>
    %357 = vector.extract_strided_slice %353 {offsets = [0, 64], sizes = [8, 32], strides = [1, 1]} : vector<8x256xf32> to vector<8x32xf32>
    %358 = arith.mulf %356, %357 : vector<8x32xf32>
    %359 = arith.addf %355, %358 : vector<8x32xf32>
    %360 = vector.extract_strided_slice %352 {offsets = [0, 96], sizes = [8, 32], strides = [1, 1]} : vector<8x256xf32> to vector<8x32xf32>
    %361 = math.tanh %359 : vector<8x32xf32>
    %362 = arith.mulf %360, %361 : vector<8x32xf32>
    %363 = arith.truncf %362 : vector<8x32xf32> to vector<8x32xbf16>
    %364 = arith.index_cast %333 : i32 to index
    %c0_79 = arith.constant 0 : index
    %365 = vector.load %arg11[%364, %c0_79] : memref<64x32xbf16, #tpu.memory_space<vmem>>, vector<8x32xbf16>
    tpu.vector_store %arg11[%364, %c0_79], %363 {strides = array<i32>} : memref<64x32xbf16, #tpu.memory_space<vmem>>, vector<8x32xbf16>,
    %366 = vector.extract_strided_slice %352 {offsets = [0, 160], sizes = [8, 32], strides = [1, 1]} : vector<8x256xf32> to vector<8x32xf32>
    %367 = arith.mulf %366, %325 : vector<8x32xf32>
    %368 = vector.extract_strided_slice %352 {offsets = [0, 128], sizes = [8, 32], strides = [1, 1]} : vector<8x256xf32> to vector<8x32xf32>
    %369 = vector.extract_strided_slice %353 {offsets = [0, 192], sizes = [8, 32], strides = [1, 1]} : vector<8x256xf32> to vector<8x32xf32>
    %370 = arith.mulf %368, %369 : vector<8x32xf32>
    %371 = arith.addf %367, %370 : vector<8x32xf32>
    %372 = vector.extract_strided_slice %352 {offsets = [0, 224], sizes = [8, 32], strides = [1, 1]} : vector<8x256xf32> to vector<8x32xf32>
    %373 = math.tanh %371 : vector<8x32xf32>
    %374 = arith.mulf %372, %373 : vector<8x32xf32>
    %375 = arith.truncf %374 : vector<8x32xf32> to vector<8x32xbf16>
    %376 = arith.index_cast %338 : i32 to index
    %c0_80 = arith.constant 0 : index
    %377 = vector.load %arg12[%376, %c0_80] : memref<64x32xbf16, #tpu.memory_space<vmem>>, vector<8x32xbf16>
    tpu.vector_store %arg12[%376, %c0_80], %375 {strides = array<i32>} : memref<64x32xbf16, #tpu.memory_space<vmem>>, vector<8x32xbf16>,
    %c8_i32_81 = arith.constant 8 : i32
    %c0_82 = arith.constant 0 : index
    %c0_83 = arith.constant 0 : index
    %378 = vector.load %arg11[%c0_82, %c0_83] : memref<64x32xbf16, #tpu.memory_space<vmem>>, vector<64x32xbf16>
    %c0_84 = arith.constant 0 : index
    %c0_85 = arith.constant 0 : index
    %379 = vector.load %arg12[%c0_84, %c0_85] : memref<64x32xbf16, #tpu.memory_space<vmem>>, vector<64x32xbf16>
    %380 = tpu.concatenate %378, %379 in 1 : vector<64x32xbf16>, vector<64x32xbf16> -> vector<64x64xbf16>
    %c0_86 = arith.constant 0 : index
    %c0_87 = arith.constant 0 : index
    %381 = vector.load %arg4[%c0_86, %c0_87] : memref<64x256xbf16, #tpu.memory_space<vmem>>, vector<64x256xbf16>
    %cst_88 = arith.constant dense<0.000000e+00> : vector<64x256xf32>
    %382 = tpu.matmul %380, %381, %cst_88 {dimension_numbers = #tpu.dot_dimension_numbers<[1], [0], [0], [1], [0, 0, 1, 1], [], []>} : vector<64x64xbf16>, vector<64x256xbf16>, vector<64x256xf32> -> vector<64x256xf32>
    %c0_89 = arith.constant 0 : index
    %c0_90 = arith.constant 0 : index
    %383 = vector.load %arg6[%c0_89, %c0_90] : memref<1x256xf32, #tpu.memory_space<vmem>>, vector<1x256xf32>
    %384 = vector.broadcast %383 : vector<1x256xf32> to vector<64x256xf32>
    %385 = arith.addf %382, %384 : vector<64x256xf32>
    %c0_91 = arith.constant 0 : index
    %c0_92 = arith.constant 0 : index
    %386 = vector.load %arg10[%c0_91, %c0_92] : memref<64x256xf32, #tpu.memory_space<vmem>>, vector<64x256xf32>
    tpu.vector_store %arg10[%c0_91, %c0_92], %385 {strides = array<i32>} : memref<64x256xf32, #tpu.memory_space<vmem>>, vector<64x256xf32>,
    %c0_93 = arith.constant 0 : index
    %c0_94 = arith.constant 0 : index
    %387 = vector.load %arg5[%c0_93, %c0_94] : memref<64x256xbf16, #tpu.memory_space<vmem>>, vector<64x256xbf16>
    %cst_95 = arith.constant 0.000000e+00 : f32
    %388 = vector.broadcast %cst_95 : f32 to vector<8x32xf32>
    %c0_i32_96 = arith.constant 0 : i32
    %c8_i32_97 = arith.constant 8 : i32
    %389 = arith.muli %c0_i32_96, %c8_i32_97 : i32
    %390 = tpu.assume_multiple %389, 8 : i32
    %391 = arith.index_cast %390 : i32 to index
    %c0_98 = arith.constant 0 : index
    %392 = vector.load %arg10[%391, %c0_98] : memref<64x256xf32, #tpu.memory_space<vmem>>, vector<8x256xf32>
    %c7_i32_99 = arith.constant 7 : i32
    %393 = arith.subi %c7_i32_99, %c0_i32_96 : i32
    %c8_i32_100 = arith.constant 8 : i32
    %394 = arith.muli %393, %c8_i32_100 : i32
    %395 = tpu.assume_multiple %394, 8 : i32
    %396 = arith.index_cast %395 : i32 to index
    %c0_101 = arith.constant 0 : index
    %397 = vector.load %arg10[%396, %c0_101] : memref<64x256xf32, #tpu.memory_space<vmem>>, vector<8x256xf32>
    %398 = vector.extract_strided_slice %392 {offsets = [0, 0], sizes = [8, 128], strides = [1, 1]} : vector<8x256xf32> to vector<8x128xf32>
    %399 = vector.extract_strided_slice %397 {offsets = [0, 128], sizes = [8, 128], strides = [1, 1]} : vector<8x256xf32> to vector<8x128xf32>
    %400 = tpu.concatenate %398, %399 in 1 : vector<8x128xf32>, vector<8x128xf32> -> vector<8x256xf32>
    %401 = tpu.concatenate %388, %388 in 1 : vector<8x32xf32>, vector<8x32xf32> -> vector<8x64xf32>
    %402 = arith.truncf %401 : vector<8x64xf32> to vector<8x64xbf16>
    %cst_102 = arith.constant dense<0.000000e+00> : vector<8x256xf32>
    %403 = tpu.matmul %402, %387, %cst_102 {dimension_numbers = #tpu.dot_dimension_numbers<[1], [0], [0], [1], [0, 0, 1, 1], [], []>} : vector<8x64xbf16>, vector<64x256xbf16>, vector<8x256xf32> -> vector<8x256xf32>
    %404 = arith.addf %400, %403 : vector<8x256xf32>
    %405 = arith.negf %404 : vector<8x256xf32>
    %406 = math.exp %405 : vector<8x256xf32>
    %cst_103 = arith.constant 1.000000e+00 : f32
    %407 = vector.broadcast %cst_103 : f32 to vector<8x256xf32>
    %408 = arith.addf %407, %406 : vector<8x256xf32>
    %409 = arith.divf %407, %408 : vector<8x256xf32>
    %410 = math.tanh %404 : vector<8x256xf32>
    %411 = vector.extract_strided_slice %409 {offsets = [0, 32], sizes = [8, 32], strides = [1, 1]} : vector<8x256xf32> to vector<8x32xf32>
    %412 = arith.mulf %411, %388 : vector<8x32xf32>
    %413 = vector.extract_strided_slice %409 {offsets = [0, 0], sizes = [8, 32], strides = [1, 1]} : vector<8x256xf32> to vector<8x32xf32>
    %414 = vector.extract_strided_slice %410 {offsets = [0, 64], sizes = [8, 32], strides = [1, 1]} : vector<8x256xf32> to vector<8x32xf32>
    %415 = arith.mulf %413, %414 : vector<8x32xf32>
    %416 = arith.addf %412, %415 : vector<8x32xf32>
    %417 = vector.extract_strided_slice %409 {offsets = [0, 96], sizes = [8, 32], strides = [1, 1]} : vector<8x256xf32> to vector<8x32xf32>
    %418 = math.tanh %416 : vector<8x32xf32>
    %419 = arith.mulf %417, %418 : vector<8x32xf32>
    %420 = vector.extract_strided_slice %409 {offsets = [0, 160], sizes = [8, 32], strides = [1, 1]} : vector<8x256xf32> to vector<8x32xf32>
    %421 = arith.mulf %420, %388 : vector<8x32xf32>
    %422 = vector.extract_strided_slice %409 {offsets = [0, 128], sizes = [8, 32], strides = [1, 1]} : vector<8x256xf32> to vector<8x32xf32>
    %423 = vector.extract_strided_slice %410 {offsets = [0, 192], sizes = [8, 32], strides = [1, 1]} : vector<8x256xf32> to vector<8x32xf32>
    %424 = arith.mulf %422, %423 : vector<8x32xf32>
    %425 = arith.addf %421, %424 : vector<8x32xf32>
    %426 = vector.extract_strided_slice %409 {offsets = [0, 224], sizes = [8, 32], strides = [1, 1]} : vector<8x256xf32> to vector<8x32xf32>
    %427 = math.tanh %425 : vector<8x32xf32>
    %428 = arith.mulf %426, %427 : vector<8x32xf32>
    %c1_i32_104 = arith.constant 1 : i32
    %c8_i32_105 = arith.constant 8 : i32
    %429 = arith.muli %c1_i32_104, %c8_i32_105 : i32
    %430 = tpu.assume_multiple %429, 8 : i32
    %431 = arith.index_cast %430 : i32 to index
    %c0_106 = arith.constant 0 : index
    %432 = vector.load %arg10[%431, %c0_106] : memref<64x256xf32, #tpu.memory_space<vmem>>, vector<8x256xf32>
    %c7_i32_107 = arith.constant 7 : i32
    %433 = arith.subi %c7_i32_107, %c1_i32_104 : i32
    %c8_i32_108 = arith.constant 8 : i32
    %434 = arith.muli %433, %c8_i32_108 : i32
    %435 = tpu.assume_multiple %434, 8 : i32
    %436 = arith.index_cast %435 : i32 to index
    %c0_109 = arith.constant 0 : index
    %437 = vector.load %arg10[%436, %c0_109] : memref<64x256xf32, #tpu.memory_space<vmem>>, vector<8x256xf32>
    %438 = vector.extract_strided_slice %432 {offsets = [0, 0], sizes = [8, 128], strides = [1, 1]} : vector<8x256xf32> to vector<8x128xf32>
    %439 = vector.extract_strided_slice %437 {offsets = [0, 128], sizes = [8, 128], strides = [1, 1]} : vector<8x256xf32> to vector<8x128xf32>
    %440 = tpu.concatenate %438, %439 in 1 : vector<8x128xf32>, vector<8x128xf32> -> vector<8x256xf32>
    %441 = tpu.concatenate %419, %428 in 1 : vector<8x32xf32>, vector<8x32xf32> -> vector<8x64xf32>
    %442 = arith.truncf %441 : vector<8x64xf32> to vector<8x64xbf16>
    %cst_110 = arith.constant dense<0.000000e+00> : vector<8x256xf32>
    %443 = tpu.matmul %442, %387, %cst_110 {dimension_numbers = #tpu.dot_dimension_numbers<[1], [0], [0], [1], [0, 0, 1, 1], [], []>} : vector<8x64xbf16>, vector<64x256xbf16>, vector<8x256xf32> -> vector<8x256xf32>
    %444 = arith.addf %440, %443 : vector<8x256xf32>
    %445 = arith.negf %444 : vector<8x256xf32>
    %446 = math.exp %445 : vector<8x256xf32>
    %cst_111 = arith.constant 1.000000e+00 : f32
    %447 = vector.broadcast %cst_111 : f32 to vector<8x256xf32>
    %448 = arith.addf %447, %446 : vector<8x256xf32>
    %449 = arith.divf %447, %448 : vector<8x256xf32>
    %450 = math.tanh %444 : vector<8x256xf32>
    %451 = vector.extract_strided_slice %449 {offsets = [0, 32], sizes = [8, 32], strides = [1, 1]} : vector<8x256xf32> to vector<8x32xf32>
    %452 = arith.mulf %451, %416 : vector<8x32xf32>
    %453 = vector.extract_strided_slice %449 {offsets = [0, 0], sizes = [8, 32], strides = [1, 1]} : vector<8x256xf32> to vector<8x32xf32>
    %454 = vector.extract_strided_slice %450 {offsets = [0, 64], sizes = [8, 32], strides = [1, 1]} : vector<8x256xf32> to vector<8x32xf32>
    %455 = arith.mulf %453, %454 : vector<8x32xf32>
    %456 = arith.addf %452, %455 : vector<8x32xf32>
    %457 = vector.extract_strided_slice %449 {offsets = [0, 96], sizes = [8, 32], strides = [1, 1]} : vector<8x256xf32> to vector<8x32xf32>
    %458 = math.tanh %456 : vector<8x32xf32>
    %459 = arith.mulf %457, %458 : vector<8x32xf32>
    %460 = vector.extract_strided_slice %449 {offsets = [0, 160], sizes = [8, 32], strides = [1, 1]} : vector<8x256xf32> to vector<8x32xf32>
    %461 = arith.mulf %460, %425 : vector<8x32xf32>
    %462 = vector.extract_strided_slice %449 {offsets = [0, 128], sizes = [8, 32], strides = [1, 1]} : vector<8x256xf32> to vector<8x32xf32>
    %463 = vector.extract_strided_slice %450 {offsets = [0, 192], sizes = [8, 32], strides = [1, 1]} : vector<8x256xf32> to vector<8x32xf32>
    %464 = arith.mulf %462, %463 : vector<8x32xf32>
    %465 = arith.addf %461, %464 : vector<8x32xf32>
    %466 = vector.extract_strided_slice %449 {offsets = [0, 224], sizes = [8, 32], strides = [1, 1]} : vector<8x256xf32> to vector<8x32xf32>
    %467 = math.tanh %465 : vector<8x32xf32>
    %468 = arith.mulf %466, %467 : vector<8x32xf32>
    %c2_i32_112 = arith.constant 2 : i32
    %c8_i32_113 = arith.constant 8 : i32
    %469 = arith.muli %c2_i32_112, %c8_i32_113 : i32
    %470 = tpu.assume_multiple %469, 8 : i32
    %471 = arith.index_cast %470 : i32 to index
    %c0_114 = arith.constant 0 : index
    %472 = vector.load %arg10[%471, %c0_114] : memref<64x256xf32, #tpu.memory_space<vmem>>, vector<8x256xf32>
    %c7_i32_115 = arith.constant 7 : i32
    %473 = arith.subi %c7_i32_115, %c2_i32_112 : i32
    %c8_i32_116 = arith.constant 8 : i32
    %474 = arith.muli %473, %c8_i32_116 : i32
    %475 = tpu.assume_multiple %474, 8 : i32
    %476 = arith.index_cast %475 : i32 to index
    %c0_117 = arith.constant 0 : index
    %477 = vector.load %arg10[%476, %c0_117] : memref<64x256xf32, #tpu.memory_space<vmem>>, vector<8x256xf32>
    %478 = vector.extract_strided_slice %472 {offsets = [0, 0], sizes = [8, 128], strides = [1, 1]} : vector<8x256xf32> to vector<8x128xf32>
    %479 = vector.extract_strided_slice %477 {offsets = [0, 128], sizes = [8, 128], strides = [1, 1]} : vector<8x256xf32> to vector<8x128xf32>
    %480 = tpu.concatenate %478, %479 in 1 : vector<8x128xf32>, vector<8x128xf32> -> vector<8x256xf32>
    %481 = tpu.concatenate %459, %468 in 1 : vector<8x32xf32>, vector<8x32xf32> -> vector<8x64xf32>
    %482 = arith.truncf %481 : vector<8x64xf32> to vector<8x64xbf16>
    %cst_118 = arith.constant dense<0.000000e+00> : vector<8x256xf32>
    %483 = tpu.matmul %482, %387, %cst_118 {dimension_numbers = #tpu.dot_dimension_numbers<[1], [0], [0], [1], [0, 0, 1, 1], [], []>} : vector<8x64xbf16>, vector<64x256xbf16>, vector<8x256xf32> -> vector<8x256xf32>
    %484 = arith.addf %480, %483 : vector<8x256xf32>
    %485 = arith.negf %484 : vector<8x256xf32>
    %486 = math.exp %485 : vector<8x256xf32>
    %cst_119 = arith.constant 1.000000e+00 : f32
    %487 = vector.broadcast %cst_119 : f32 to vector<8x256xf32>
    %488 = arith.addf %487, %486 : vector<8x256xf32>
    %489 = arith.divf %487, %488 : vector<8x256xf32>
    %490 = math.tanh %484 : vector<8x256xf32>
    %491 = vector.extract_strided_slice %489 {offsets = [0, 32], sizes = [8, 32], strides = [1, 1]} : vector<8x256xf32> to vector<8x32xf32>
    %492 = arith.mulf %491, %456 : vector<8x32xf32>
    %493 = vector.extract_strided_slice %489 {offsets = [0, 0], sizes = [8, 32], strides = [1, 1]} : vector<8x256xf32> to vector<8x32xf32>
    %494 = vector.extract_strided_slice %490 {offsets = [0, 64], sizes = [8, 32], strides = [1, 1]} : vector<8x256xf32> to vector<8x32xf32>
    %495 = arith.mulf %493, %494 : vector<8x32xf32>
    %496 = arith.addf %492, %495 : vector<8x32xf32>
    %497 = vector.extract_strided_slice %489 {offsets = [0, 96], sizes = [8, 32], strides = [1, 1]} : vector<8x256xf32> to vector<8x32xf32>
    %498 = math.tanh %496 : vector<8x32xf32>
    %499 = arith.mulf %497, %498 : vector<8x32xf32>
    %500 = vector.extract_strided_slice %489 {offsets = [0, 160], sizes = [8, 32], strides = [1, 1]} : vector<8x256xf32> to vector<8x32xf32>
    %501 = arith.mulf %500, %465 : vector<8x32xf32>
    %502 = vector.extract_strided_slice %489 {offsets = [0, 128], sizes = [8, 32], strides = [1, 1]} : vector<8x256xf32> to vector<8x32xf32>
    %503 = vector.extract_strided_slice %490 {offsets = [0, 192], sizes = [8, 32], strides = [1, 1]} : vector<8x256xf32> to vector<8x32xf32>
    %504 = arith.mulf %502, %503 : vector<8x32xf32>
    %505 = arith.addf %501, %504 : vector<8x32xf32>
    %506 = vector.extract_strided_slice %489 {offsets = [0, 224], sizes = [8, 32], strides = [1, 1]} : vector<8x256xf32> to vector<8x32xf32>
    %507 = math.tanh %505 : vector<8x32xf32>
    %508 = arith.mulf %506, %507 : vector<8x32xf32>
    %c3_i32_120 = arith.constant 3 : i32
    %c8_i32_121 = arith.constant 8 : i32
    %509 = arith.muli %c3_i32_120, %c8_i32_121 : i32
    %510 = tpu.assume_multiple %509, 8 : i32
    %511 = arith.index_cast %510 : i32 to index
    %c0_122 = arith.constant 0 : index
    %512 = vector.load %arg10[%511, %c0_122] : memref<64x256xf32, #tpu.memory_space<vmem>>, vector<8x256xf32>
    %c7_i32_123 = arith.constant 7 : i32
    %513 = arith.subi %c7_i32_123, %c3_i32_120 : i32
    %c8_i32_124 = arith.constant 8 : i32
    %514 = arith.muli %513, %c8_i32_124 : i32
    %515 = tpu.assume_multiple %514, 8 : i32
    %516 = arith.index_cast %515 : i32 to index
    %c0_125 = arith.constant 0 : index
    %517 = vector.load %arg10[%516, %c0_125] : memref<64x256xf32, #tpu.memory_space<vmem>>, vector<8x256xf32>
    %518 = vector.extract_strided_slice %512 {offsets = [0, 0], sizes = [8, 128], strides = [1, 1]} : vector<8x256xf32> to vector<8x128xf32>
    %519 = vector.extract_strided_slice %517 {offsets = [0, 128], sizes = [8, 128], strides = [1, 1]} : vector<8x256xf32> to vector<8x128xf32>
    %520 = tpu.concatenate %518, %519 in 1 : vector<8x128xf32>, vector<8x128xf32> -> vector<8x256xf32>
    %521 = tpu.concatenate %499, %508 in 1 : vector<8x32xf32>, vector<8x32xf32> -> vector<8x64xf32>
    %522 = arith.truncf %521 : vector<8x64xf32> to vector<8x64xbf16>
    %cst_126 = arith.constant dense<0.000000e+00> : vector<8x256xf32>
    %523 = tpu.matmul %522, %387, %cst_126 {dimension_numbers = #tpu.dot_dimension_numbers<[1], [0], [0], [1], [0, 0, 1, 1], [], []>} : vector<8x64xbf16>, vector<64x256xbf16>, vector<8x256xf32> -> vector<8x256xf32>
    %524 = arith.addf %520, %523 : vector<8x256xf32>
    %525 = arith.negf %524 : vector<8x256xf32>
    %526 = math.exp %525 : vector<8x256xf32>
    %cst_127 = arith.constant 1.000000e+00 : f32
    %527 = vector.broadcast %cst_127 : f32 to vector<8x256xf32>
    %528 = arith.addf %527, %526 : vector<8x256xf32>
    %529 = arith.divf %527, %528 : vector<8x256xf32>
    %530 = math.tanh %524 : vector<8x256xf32>
    %531 = vector.extract_strided_slice %529 {offsets = [0, 32], sizes = [8, 32], strides = [1, 1]} : vector<8x256xf32> to vector<8x32xf32>
    %532 = arith.mulf %531, %496 : vector<8x32xf32>
    %533 = vector.extract_strided_slice %529 {offsets = [0, 0], sizes = [8, 32], strides = [1, 1]} : vector<8x256xf32> to vector<8x32xf32>
    %534 = vector.extract_strided_slice %530 {offsets = [0, 64], sizes = [8, 32], strides = [1, 1]} : vector<8x256xf32> to vector<8x32xf32>
    %535 = arith.mulf %533, %534 : vector<8x32xf32>
    %536 = arith.addf %532, %535 : vector<8x32xf32>
    %537 = vector.extract_strided_slice %529 {offsets = [0, 96], sizes = [8, 32], strides = [1, 1]} : vector<8x256xf32> to vector<8x32xf32>
    %538 = math.tanh %536 : vector<8x32xf32>
    %539 = arith.mulf %537, %538 : vector<8x32xf32>
    %540 = vector.extract_strided_slice %529 {offsets = [0, 160], sizes = [8, 32], strides = [1, 1]} : vector<8x256xf32> to vector<8x32xf32>
    %541 = arith.mulf %540, %505 : vector<8x32xf32>
    %542 = vector.extract_strided_slice %529 {offsets = [0, 128], sizes = [8, 32], strides = [1, 1]} : vector<8x256xf32> to vector<8x32xf32>
    %543 = vector.extract_strided_slice %530 {offsets = [0, 192], sizes = [8, 32], strides = [1, 1]} : vector<8x256xf32> to vector<8x32xf32>
    %544 = arith.mulf %542, %543 : vector<8x32xf32>
    %545 = arith.addf %541, %544 : vector<8x32xf32>
    %546 = vector.extract_strided_slice %529 {offsets = [0, 224], sizes = [8, 32], strides = [1, 1]} : vector<8x256xf32> to vector<8x32xf32>
    %547 = math.tanh %545 : vector<8x32xf32>
    %548 = arith.mulf %546, %547 : vector<8x32xf32>
    %c4_i32_128 = arith.constant 4 : i32
    %c8_i32_129 = arith.constant 8 : i32
    %549 = arith.muli %c4_i32_128, %c8_i32_129 : i32
    %550 = tpu.assume_multiple %549, 8 : i32
    %551 = arith.index_cast %550 : i32 to index
    %c0_130 = arith.constant 0 : index
    %552 = vector.load %arg10[%551, %c0_130] : memref<64x256xf32, #tpu.memory_space<vmem>>, vector<8x256xf32>
    %c7_i32_131 = arith.constant 7 : i32
    %553 = arith.subi %c7_i32_131, %c4_i32_128 : i32
    %c8_i32_132 = arith.constant 8 : i32
    %554 = arith.muli %553, %c8_i32_132 : i32
    %555 = tpu.assume_multiple %554, 8 : i32
    %556 = arith.index_cast %555 : i32 to index
    %c0_133 = arith.constant 0 : index
    %557 = vector.load %arg10[%556, %c0_133] : memref<64x256xf32, #tpu.memory_space<vmem>>, vector<8x256xf32>
    %558 = vector.extract_strided_slice %552 {offsets = [0, 0], sizes = [8, 128], strides = [1, 1]} : vector<8x256xf32> to vector<8x128xf32>
    %559 = vector.extract_strided_slice %557 {offsets = [0, 128], sizes = [8, 128], strides = [1, 1]} : vector<8x256xf32> to vector<8x128xf32>
    %560 = tpu.concatenate %558, %559 in 1 : vector<8x128xf32>, vector<8x128xf32> -> vector<8x256xf32>
    %561 = tpu.concatenate %539, %548 in 1 : vector<8x32xf32>, vector<8x32xf32> -> vector<8x64xf32>
    %562 = arith.truncf %561 : vector<8x64xf32> to vector<8x64xbf16>
    %cst_134 = arith.constant dense<0.000000e+00> : vector<8x256xf32>
    %563 = tpu.matmul %562, %387, %cst_134 {dimension_numbers = #tpu.dot_dimension_numbers<[1], [0], [0], [1], [0, 0, 1, 1], [], []>} : vector<8x64xbf16>, vector<64x256xbf16>, vector<8x256xf32> -> vector<8x256xf32>
    %564 = arith.addf %560, %563 : vector<8x256xf32>
    %565 = arith.negf %564 : vector<8x256xf32>
    %566 = math.exp %565 : vector<8x256xf32>
    %cst_135 = arith.constant 1.000000e+00 : f32
    %567 = vector.broadcast %cst_135 : f32 to vector<8x256xf32>
    %568 = arith.addf %567, %566 : vector<8x256xf32>
    %569 = arith.divf %567, %568 : vector<8x256xf32>
    %570 = math.tanh %564 : vector<8x256xf32>
    %571 = vector.extract_strided_slice %569 {offsets = [0, 32], sizes = [8, 32], strides = [1, 1]} : vector<8x256xf32> to vector<8x32xf32>
    %572 = arith.mulf %571, %536 : vector<8x32xf32>
    %573 = vector.extract_strided_slice %569 {offsets = [0, 0], sizes = [8, 32], strides = [1, 1]} : vector<8x256xf32> to vector<8x32xf32>
    %574 = vector.extract_strided_slice %570 {offsets = [0, 64], sizes = [8, 32], strides = [1, 1]} : vector<8x256xf32> to vector<8x32xf32>
    %575 = arith.mulf %573, %574 : vector<8x32xf32>
    %576 = arith.addf %572, %575 : vector<8x32xf32>
    %577 = vector.extract_strided_slice %569 {offsets = [0, 96], sizes = [8, 32], strides = [1, 1]} : vector<8x256xf32> to vector<8x32xf32>
    %578 = math.tanh %576 : vector<8x32xf32>
    %579 = arith.mulf %577, %578 : vector<8x32xf32>
    %580 = vector.extract_strided_slice %569 {offsets = [0, 160], sizes = [8, 32], strides = [1, 1]} : vector<8x256xf32> to vector<8x32xf32>
    %581 = arith.mulf %580, %545 : vector<8x32xf32>
    %582 = vector.extract_strided_slice %569 {offsets = [0, 128], sizes = [8, 32], strides = [1, 1]} : vector<8x256xf32> to vector<8x32xf32>
    %583 = vector.extract_strided_slice %570 {offsets = [0, 192], sizes = [8, 32], strides = [1, 1]} : vector<8x256xf32> to vector<8x32xf32>
    %584 = arith.mulf %582, %583 : vector<8x32xf32>
    %585 = arith.addf %581, %584 : vector<8x32xf32>
    %586 = vector.extract_strided_slice %569 {offsets = [0, 224], sizes = [8, 32], strides = [1, 1]} : vector<8x256xf32> to vector<8x32xf32>
    %587 = math.tanh %585 : vector<8x32xf32>
    %588 = arith.mulf %586, %587 : vector<8x32xf32>
    %c5_i32_136 = arith.constant 5 : i32
    %c8_i32_137 = arith.constant 8 : i32
    %589 = arith.muli %c5_i32_136, %c8_i32_137 : i32
    %590 = tpu.assume_multiple %589, 8 : i32
    %591 = arith.index_cast %590 : i32 to index
    %c0_138 = arith.constant 0 : index
    %592 = vector.load %arg10[%591, %c0_138] : memref<64x256xf32, #tpu.memory_space<vmem>>, vector<8x256xf32>
    %c7_i32_139 = arith.constant 7 : i32
    %593 = arith.subi %c7_i32_139, %c5_i32_136 : i32
    %c8_i32_140 = arith.constant 8 : i32
    %594 = arith.muli %593, %c8_i32_140 : i32
    %595 = tpu.assume_multiple %594, 8 : i32
    %596 = arith.index_cast %595 : i32 to index
    %c0_141 = arith.constant 0 : index
    %597 = vector.load %arg10[%596, %c0_141] : memref<64x256xf32, #tpu.memory_space<vmem>>, vector<8x256xf32>
    %598 = vector.extract_strided_slice %592 {offsets = [0, 0], sizes = [8, 128], strides = [1, 1]} : vector<8x256xf32> to vector<8x128xf32>
    %599 = vector.extract_strided_slice %597 {offsets = [0, 128], sizes = [8, 128], strides = [1, 1]} : vector<8x256xf32> to vector<8x128xf32>
    %600 = tpu.concatenate %598, %599 in 1 : vector<8x128xf32>, vector<8x128xf32> -> vector<8x256xf32>
    %601 = tpu.concatenate %579, %588 in 1 : vector<8x32xf32>, vector<8x32xf32> -> vector<8x64xf32>
    %602 = arith.truncf %601 : vector<8x64xf32> to vector<8x64xbf16>
    %cst_142 = arith.constant dense<0.000000e+00> : vector<8x256xf32>
    %603 = tpu.matmul %602, %387, %cst_142 {dimension_numbers = #tpu.dot_dimension_numbers<[1], [0], [0], [1], [0, 0, 1, 1], [], []>} : vector<8x64xbf16>, vector<64x256xbf16>, vector<8x256xf32> -> vector<8x256xf32>
    %604 = arith.addf %600, %603 : vector<8x256xf32>
    %605 = arith.negf %604 : vector<8x256xf32>
    %606 = math.exp %605 : vector<8x256xf32>
    %cst_143 = arith.constant 1.000000e+00 : f32
    %607 = vector.broadcast %cst_143 : f32 to vector<8x256xf32>
    %608 = arith.addf %607, %606 : vector<8x256xf32>
    %609 = arith.divf %607, %608 : vector<8x256xf32>
    %610 = math.tanh %604 : vector<8x256xf32>
    %611 = vector.extract_strided_slice %609 {offsets = [0, 32], sizes = [8, 32], strides = [1, 1]} : vector<8x256xf32> to vector<8x32xf32>
    %612 = arith.mulf %611, %576 : vector<8x32xf32>
    %613 = vector.extract_strided_slice %609 {offsets = [0, 0], sizes = [8, 32], strides = [1, 1]} : vector<8x256xf32> to vector<8x32xf32>
    %614 = vector.extract_strided_slice %610 {offsets = [0, 64], sizes = [8, 32], strides = [1, 1]} : vector<8x256xf32> to vector<8x32xf32>
    %615 = arith.mulf %613, %614 : vector<8x32xf32>
    %616 = arith.addf %612, %615 : vector<8x32xf32>
    %617 = vector.extract_strided_slice %609 {offsets = [0, 96], sizes = [8, 32], strides = [1, 1]} : vector<8x256xf32> to vector<8x32xf32>
    %618 = math.tanh %616 : vector<8x32xf32>
    %619 = arith.mulf %617, %618 : vector<8x32xf32>
    %620 = vector.extract_strided_slice %609 {offsets = [0, 160], sizes = [8, 32], strides = [1, 1]} : vector<8x256xf32> to vector<8x32xf32>
    %621 = arith.mulf %620, %585 : vector<8x32xf32>
    %622 = vector.extract_strided_slice %609 {offsets = [0, 128], sizes = [8, 32], strides = [1, 1]} : vector<8x256xf32> to vector<8x32xf32>
    %623 = vector.extract_strided_slice %610 {offsets = [0, 192], sizes = [8, 32], strides = [1, 1]} : vector<8x256xf32> to vector<8x32xf32>
    %624 = arith.mulf %622, %623 : vector<8x32xf32>
    %625 = arith.addf %621, %624 : vector<8x32xf32>
    %626 = vector.extract_strided_slice %609 {offsets = [0, 224], sizes = [8, 32], strides = [1, 1]} : vector<8x256xf32> to vector<8x32xf32>
    %627 = math.tanh %625 : vector<8x32xf32>
    %628 = arith.mulf %626, %627 : vector<8x32xf32>
    %c6_i32_144 = arith.constant 6 : i32
    %c8_i32_145 = arith.constant 8 : i32
    %629 = arith.muli %c6_i32_144, %c8_i32_145 : i32
    %630 = tpu.assume_multiple %629, 8 : i32
    %631 = arith.index_cast %630 : i32 to index
    %c0_146 = arith.constant 0 : index
    %632 = vector.load %arg10[%631, %c0_146] : memref<64x256xf32, #tpu.memory_space<vmem>>, vector<8x256xf32>
    %c7_i32_147 = arith.constant 7 : i32
    %633 = arith.subi %c7_i32_147, %c6_i32_144 : i32
    %c8_i32_148 = arith.constant 8 : i32
    %634 = arith.muli %633, %c8_i32_148 : i32
    %635 = tpu.assume_multiple %634, 8 : i32
    %636 = arith.index_cast %635 : i32 to index
    %c0_149 = arith.constant 0 : index
    %637 = vector.load %arg10[%636, %c0_149] : memref<64x256xf32, #tpu.memory_space<vmem>>, vector<8x256xf32>
    %638 = vector.extract_strided_slice %632 {offsets = [0, 0], sizes = [8, 128], strides = [1, 1]} : vector<8x256xf32> to vector<8x128xf32>
    %639 = vector.extract_strided_slice %637 {offsets = [0, 128], sizes = [8, 128], strides = [1, 1]} : vector<8x256xf32> to vector<8x128xf32>
    %640 = tpu.concatenate %638, %639 in 1 : vector<8x128xf32>, vector<8x128xf32> -> vector<8x256xf32>
    %641 = tpu.concatenate %619, %628 in 1 : vector<8x32xf32>, vector<8x32xf32> -> vector<8x64xf32>
    %642 = arith.truncf %641 : vector<8x64xf32> to vector<8x64xbf16>
    %cst_150 = arith.constant dense<0.000000e+00> : vector<8x256xf32>
    %643 = tpu.matmul %642, %387, %cst_150 {dimension_numbers = #tpu.dot_dimension_numbers<[1], [0], [0], [1], [0, 0, 1, 1], [], []>} : vector<8x64xbf16>, vector<64x256xbf16>, vector<8x256xf32> -> vector<8x256xf32>
    %644 = arith.addf %640, %643 : vector<8x256xf32>
    %645 = arith.negf %644 : vector<8x256xf32>
    %646 = math.exp %645 : vector<8x256xf32>
    %cst_151 = arith.constant 1.000000e+00 : f32
    %647 = vector.broadcast %cst_151 : f32 to vector<8x256xf32>
    %648 = arith.addf %647, %646 : vector<8x256xf32>
    %649 = arith.divf %647, %648 : vector<8x256xf32>
    %650 = math.tanh %644 : vector<8x256xf32>
    %651 = vector.extract_strided_slice %649 {offsets = [0, 32], sizes = [8, 32], strides = [1, 1]} : vector<8x256xf32> to vector<8x32xf32>
    %652 = arith.mulf %651, %616 : vector<8x32xf32>
    %653 = vector.extract_strided_slice %649 {offsets = [0, 0], sizes = [8, 32], strides = [1, 1]} : vector<8x256xf32> to vector<8x32xf32>
    %654 = vector.extract_strided_slice %650 {offsets = [0, 64], sizes = [8, 32], strides = [1, 1]} : vector<8x256xf32> to vector<8x32xf32>
    %655 = arith.mulf %653, %654 : vector<8x32xf32>
    %656 = arith.addf %652, %655 : vector<8x32xf32>
    %657 = vector.extract_strided_slice %649 {offsets = [0, 96], sizes = [8, 32], strides = [1, 1]} : vector<8x256xf32> to vector<8x32xf32>
    %658 = math.tanh %656 : vector<8x32xf32>
    %659 = arith.mulf %657, %658 : vector<8x32xf32>
    %660 = vector.extract_strided_slice %649 {offsets = [0, 160], sizes = [8, 32], strides = [1, 1]} : vector<8x256xf32> to vector<8x32xf32>
    %661 = arith.mulf %660, %625 : vector<8x32xf32>
    %662 = vector.extract_strided_slice %649 {offsets = [0, 128], sizes = [8, 32], strides = [1, 1]} : vector<8x256xf32> to vector<8x32xf32>
    %663 = vector.extract_strided_slice %650 {offsets = [0, 192], sizes = [8, 32], strides = [1, 1]} : vector<8x256xf32> to vector<8x32xf32>
    %664 = arith.mulf %662, %663 : vector<8x32xf32>
    %665 = arith.addf %661, %664 : vector<8x32xf32>
    %666 = vector.extract_strided_slice %649 {offsets = [0, 224], sizes = [8, 32], strides = [1, 1]} : vector<8x256xf32> to vector<8x32xf32>
    %667 = math.tanh %665 : vector<8x32xf32>
    %668 = arith.mulf %666, %667 : vector<8x32xf32>
    %c7_i32_152 = arith.constant 7 : i32
    %c8_i32_153 = arith.constant 8 : i32
    %669 = arith.muli %c7_i32_152, %c8_i32_153 : i32
    %670 = tpu.assume_multiple %669, 8 : i32
    %671 = arith.index_cast %670 : i32 to index
    %c0_154 = arith.constant 0 : index
    %672 = vector.load %arg10[%671, %c0_154] : memref<64x256xf32, #tpu.memory_space<vmem>>, vector<8x256xf32>
    %c7_i32_155 = arith.constant 7 : i32
    %673 = arith.subi %c7_i32_155, %c7_i32_152 : i32
    %c8_i32_156 = arith.constant 8 : i32
    %674 = arith.muli %673, %c8_i32_156 : i32
    %675 = tpu.assume_multiple %674, 8 : i32
    %676 = arith.index_cast %675 : i32 to index
    %c0_157 = arith.constant 0 : index
    %677 = vector.load %arg10[%676, %c0_157] : memref<64x256xf32, #tpu.memory_space<vmem>>, vector<8x256xf32>
    %678 = vector.extract_strided_slice %672 {offsets = [0, 0], sizes = [8, 128], strides = [1, 1]} : vector<8x256xf32> to vector<8x128xf32>
    %679 = vector.extract_strided_slice %677 {offsets = [0, 128], sizes = [8, 128], strides = [1, 1]} : vector<8x256xf32> to vector<8x128xf32>
    %680 = tpu.concatenate %678, %679 in 1 : vector<8x128xf32>, vector<8x128xf32> -> vector<8x256xf32>
    %681 = tpu.concatenate %659, %668 in 1 : vector<8x32xf32>, vector<8x32xf32> -> vector<8x64xf32>
    %682 = arith.truncf %681 : vector<8x64xf32> to vector<8x64xbf16>
    %cst_158 = arith.constant dense<0.000000e+00> : vector<8x256xf32>
    %683 = tpu.matmul %682, %387, %cst_158 {dimension_numbers = #tpu.dot_dimension_numbers<[1], [0], [0], [1], [0, 0, 1, 1], [], []>} : vector<8x64xbf16>, vector<64x256xbf16>, vector<8x256xf32> -> vector<8x256xf32>
    %684 = arith.addf %680, %683 : vector<8x256xf32>
    %685 = arith.negf %684 : vector<8x256xf32>
    %686 = math.exp %685 : vector<8x256xf32>
    %cst_159 = arith.constant 1.000000e+00 : f32
    %687 = vector.broadcast %cst_159 : f32 to vector<8x256xf32>
    %688 = arith.addf %687, %686 : vector<8x256xf32>
    %689 = arith.divf %687, %688 : vector<8x256xf32>
    %690 = math.tanh %684 : vector<8x256xf32>
    %691 = vector.extract_strided_slice %689 {offsets = [0, 32], sizes = [8, 32], strides = [1, 1]} : vector<8x256xf32> to vector<8x32xf32>
    %692 = arith.mulf %691, %656 : vector<8x32xf32>
    %693 = vector.extract_strided_slice %689 {offsets = [0, 0], sizes = [8, 32], strides = [1, 1]} : vector<8x256xf32> to vector<8x32xf32>
    %694 = vector.extract_strided_slice %690 {offsets = [0, 64], sizes = [8, 32], strides = [1, 1]} : vector<8x256xf32> to vector<8x32xf32>
    %695 = arith.mulf %693, %694 : vector<8x32xf32>
    %696 = arith.addf %692, %695 : vector<8x32xf32>
    %697 = vector.extract_strided_slice %689 {offsets = [0, 96], sizes = [8, 32], strides = [1, 1]} : vector<8x256xf32> to vector<8x32xf32>
    %698 = math.tanh %696 : vector<8x32xf32>
    %699 = arith.mulf %697, %698 : vector<8x32xf32>
    %700 = vector.extract_strided_slice %689 {offsets = [0, 160], sizes = [8, 32], strides = [1, 1]} : vector<8x256xf32> to vector<8x32xf32>
    %701 = arith.mulf %700, %665 : vector<8x32xf32>
    %702 = vector.extract_strided_slice %689 {offsets = [0, 128], sizes = [8, 32], strides = [1, 1]} : vector<8x256xf32> to vector<8x32xf32>
    %703 = vector.extract_strided_slice %690 {offsets = [0, 192], sizes = [8, 32], strides = [1, 1]} : vector<8x256xf32> to vector<8x32xf32>
    %704 = arith.mulf %702, %703 : vector<8x32xf32>
    %705 = arith.addf %701, %704 : vector<8x32xf32>
    %706 = vector.extract_strided_slice %689 {offsets = [0, 224], sizes = [8, 32], strides = [1, 1]} : vector<8x256xf32> to vector<8x32xf32>
    %707 = math.tanh %705 : vector<8x32xf32>
    %708 = arith.mulf %706, %707 : vector<8x32xf32>
    %c8_i32_160 = arith.constant 8 : i32
    %709 = tpu.concatenate %699, %708 in 1 : vector<8x32xf32>, vector<8x32xf32> -> vector<8x64xf32>
    %710 = arith.truncf %709 : vector<8x64xf32> to vector<8x64xbf16>
    %c0_161 = arith.constant 0 : index
    %c0_162 = arith.constant 0 : index
    %711 = vector.load %arg7[%c0_161, %c0_162] : memref<64x128xbf16, #tpu.memory_space<vmem>>, vector<64x128xbf16>
    %cst_163 = arith.constant dense<0.000000e+00> : vector<8x128xf32>
    %712 = tpu.matmul %710, %711, %cst_163 {dimension_numbers = #tpu.dot_dimension_numbers<[1], [0], [0], [1], [0, 0, 1, 1], [], []>} : vector<8x64xbf16>, vector<64x128xbf16>, vector<8x128xf32> -> vector<8x128xf32>
    %c0_164 = arith.constant 0 : index
    %c0_165 = arith.constant 0 : index
    %713 = vector.load %arg8[%c0_164, %c0_165] : memref<1x128xf32, #tpu.memory_space<vmem>>, vector<1x128xf32>
    %714 = vector.broadcast %713 : vector<1x128xf32> to vector<8x128xf32>
    %715 = arith.addf %712, %714 : vector<8x128xf32>
    %c0_166 = arith.constant 0 : index
    %c0_167 = arith.constant 0 : index
    %716 = vector.load %arg9[%c0_166, %c0_167] : memref<8x128xf32, #tpu.memory_space<vmem>>, vector<8x128xf32>
    tpu.vector_store %arg9[%c0_166, %c0_167], %715 {strides = array<i32>} : memref<8x128xf32, #tpu.memory_space<vmem>>, vector<8x128xf32>,
    return
  }
}

</mosaic_0001>

<bundles_post_ra>
// kernel: tpu_custom_call.1
= control target key start
LH: loop header
LB: loop body
LE: loop exit
PB: predicated region body
PF: predicated region fallthrough
CT: control target
= control target key end

     0   :  { %14 = vsyncpa [#allocation6], 0  ;;  %s4114_s0 = inlined_call_operand.vmem [shape: f32[64,32], index: 0, kind: input, shape index: {}]   ;;  %s4115_s1 = inlined_call_operand.vmem [shape: bf16[32,256], index: 1, kind: input, shape index: {}]   ;;  %s4116_s2 = inlined_call_operand.vmem [shape: bf16[64,256], index: 2, kind: input, shape index: {}]   ;;  %s4117_s3 = inlined_call_operand.hbm [shape: f32[1,256], index: 3, kind: input, shape index: {}]   ;;  %s4118_s4 = inlined_call_operand.hbm [shape: bf16[64,256], index: 4, kind: input, shape index: {}]   ;;  %s4119_s5 = inlined_call_operand.hbm [shape: bf16[64,256], index: 5, kind: input, shape index: {}]   ;;  %s4120_s6 = inlined_call_operand.vmem [shape: f32[1,256], index: 6, kind: input, shape index: {}]   ;;  %s4121_s7 = inlined_call_operand.hbm [shape: bf16[64,128], index: 7, kind: input, shape index: {}]   ;;  %s4122_s8 = inlined_call_operand.vmem [shape: f32[1,128], index: 8, kind: input, shape index: {}]   ;;  %s4123_s9 = inlined_call_operand.hbm [shape: f32[8,128], index: 9, kind: output, shape index: {}]  }
   0x1   :  { %15 = vsyncpa [#allocation9], 0 }
   0x2   :  { %16 = vsyncpa [#allocation12], 0  ;;  %s39_s11 = sshll.u32 %s4118_s4, 4  ;;  %s40_s11 = int_to_ptr.hbm [resolvable:$true] %s39_s11 }
   0x3   :  { %17 = vsyncpa [#allocation7], 0  ;;  %s3280_s12 = smov [#allocation8]   ;;  %s29_s16 = sshll.u32 %s4117_s3, 4  ;;  %s30_s16 = int_to_ptr.hbm [resolvable:$true] %s29_s16 }
   0x4   :  { %s41_s13 = sshll.u32 %s3280_s12, 4  ;;  %s3281_s17 = smov 128   ;;  %s42_s13 = int_to_ptr.vmem [resolvable:$true] %s41_s13 }
   0x5   :  { %s3282_s18 = smov 8   ;;  %s3283_s19 = smov [#allocation5]  }
   0x6   :  { %47 = dma.hbm_to_vmem [thread:$0]  %s40_s11, 1024, %s42_s13, [#allocation9], %s3281_s17, %s3281_s17, %s3282_s18  }
   0x7   :  { %s31_s20 = sshll.u32 %s3283_s19, 4  ;;  %s52_s23 = sshll.u32 %s4119_s5, 4  ;;  %s32_s20 = int_to_ptr.vmem [resolvable:$true] %s31_s20  ;;  %s53_s23 = int_to_ptr.hbm [resolvable:$true] %s52_s23 }
   0x8   :  { %34 = dma.hbm_to_vmem [thread:$0]  %s30_s16, 32, %s32_s20, [#allocation6]  }
   0x9   :  { %s67_s25 = sshll.u32 %s4121_s7, 4  ;;  %s3284_s26 = smov [#allocation10]   ;;  %s68_s25 = int_to_ptr.hbm [resolvable:$true] %s67_s25 }
   0xa   :  { %s54_s27 = sshll.u32 %s3284_s26, 4  ;;  %s3285_s3 = smov [#allocation11]   ;;  %s55_s27 = int_to_ptr.vmem [resolvable:$true] %s54_s27 }
   0xb   :  { %60 = dma.hbm_to_vmem [thread:$0]  %s53_s23, 1024, %s55_s27, [#allocation9], %s3281_s17, %s3281_s17, %s3282_s18  }
   0xc   :  { %s69_s28 = sshll.u32 %s3285_s3, 4  ;;  %s3286_s29 = smov 64   ;;  %s70_s28 = int_to_ptr.vmem [resolvable:$true] %s69_s28 }
   0xd   :  { %s3287_s30 = smov 4  }
   0xe   :  { %75 = dma.hbm_to_vmem [thread:$0]  %s68_s25, 512, %s70_s28, [#allocation12], %s3286_s29, %s3286_s29, %s3287_s30  }
   0xf   :  { %3272 = dma.done.wait [#allocation6], 32  }
  0x10   :  { %3273 = vsyncadd [#allocation6], 4294967264 }
  0x11   :  { %3274 = dma.done.wait [#allocation9], 2048  }
  0x12   :  { %3275 = vsyncadd [#allocation9], 4294965248 }
  0x13   :  { %3276 = dma.done.wait [#allocation12], 512  }
  0x14   :  { %3277 = vsyncadd [#allocation12], 4294966784  ;;  %v2846_v0 = vld [vmem:[%s4115_s1 + $0x14] sm:$0xf]  ;;  %v2619_v1 = vld [vmem:[%s4115_s1 + $0x18] sm:$0xf0] }
  0x15   :  { %v2657_v2 = vld [vmem:[%s4116_s2 + $0x30] sm:$0xf]  ;;  %v2622_v3 = vor.u32 %v2846_v0, %v2619_v1  ;;  %v2855_v4 = vld [vmem:[%s4116_s2 + $0x34] sm:$0xf0]  ;;  %v2844_v5 = vld [vmem:[%s4115_s1 + $0x4] sm:$0xf] }
  0x16   :  { %v2611_v6 = vld [vmem:[%s4115_s1 + $0x8] sm:$0xf0]  ;;  %v3373_v7 = vor.u32 %v2855_v4, %v2657_v2  ;;  %v2649_v8 = vld [vmem:[%s4116_s2 + $0x20] sm:$0xf]  ;;  %v2853_v9 = vld [vmem:[%s4116_s2 + $0x24] sm:$0xf0] }
  0x17   :  { %185 = vmatpush.bf16.msra.mxu1 %v2622_v3  ;;  %v2614_v10 = vor.u32 %v2844_v5, %v2611_v6  ;;  %v95_v11 = vld [vmem:[%s4114_s0] sm:$0xff]  ;;  %v96_v12 = vld [vmem:[%s4114_s0 + $0x8] sm:$0xff]  ;;  %v3388_v13 = vor.u32 %v2853_v9, %v2649_v8  ;;  %v2641_v14 = vld [vmem:[%s4116_s2 + $0x10] sm:$0xf]  ;;  %vm137_vm0 = vcmask 261120   ;;  %v3288_v39 = vmov 0.0|0.0  }
  0x18   :  { %289 = vmatpush.bf16.msra.mxu2 %v3373_v7  ;;  %v2617_v15 = vld [vmem:[%s4115_s1 + $0x10] sm:$0xf]  ;;  %v2847_v16 = vld [vmem:[%s4115_s1 + $0x14] sm:$0xf0]  ;;  %v2609_v19 = vld [vmem:[%s4115_s1] sm:$0xf]  ;;  %v103_v21 = vpack.c.bf16 %v96_v12, %v95_v11 }
  0x19   :  { %v2851_v17 = vld [vmem:[%s4116_s2 + $0x14] sm:$0xf0]  ;;  %v2618_v18 = vor.u32 %v2847_v16, %v2617_v15  ;;  %v2845_v20 = vld [vmem:[%s4115_s1 + $0x4] sm:$0xf0]  ;;  %v2854_v22 = vld [vmem:[%s4116_s2 + $0x34] sm:$0xf] }
  0x1a   :  { %v2610_v23 = vor.u32 %v2845_v20, %v2609_v19  ;;  %v2659_v24 = vld [vmem:[%s4116_s2 + $0x38] sm:$0xf0]  ;;  %v3415_v25 = vor.u32 %v2851_v17, %v2641_v14  ;;  %v2633_v26 = vld [vmem:[%s4116_s2] sm:$0xf]  ;;  %v2849_v28 = vld [vmem:[%s4116_s2 + $0x4] sm:$0xf0] }
  0x1b   :  { %186 = vmatpush.bf16.msra.mxu1 %v2614_v10  ;;  %156 = vmatpush.bf16.msra.mxu0 %v2618_v18  ;;  %v3420_v27 = vor.u32 %v2854_v22, %v2659_v24  ;;  %v2852_v29 = vld [vmem:[%s4116_s2 + $0x24] sm:$0xf]  ;;  %v2651_v30 = vld [vmem:[%s4116_s2 + $0x28] sm:$0xf0]  ;;  %v2850_v32 = vld [vmem:[%s4116_s2 + $0x14] sm:$0xf]  ;;  %v3443_v34 = vor.u32 %v2849_v28, %v2633_v26 }
  0x1c   :  { %290 = vmatpush.bf16.msra.mxu2 %v3388_v13  ;;  %v3433_v31 = vor.u32 %v2852_v29, %v2651_v30  ;;  %v2643_v33 = vld [vmem:[%s4116_s2 + $0x18] sm:$0xf0]  ;;  %v2848_v36 = vld [vmem:[%s4116_s2 + $0x4] sm:$0xf]  ;;  %v2635_v37 = vld [vmem:[%s4116_s2 + $0x8] sm:$0xf0] }
  0x1d   :  { %302 = vmatpush.bf16.msra.mxu3 %v3420_v27  ;;  %v3448_v35 = vor.u32 %v2850_v32, %v2643_v33  ;;  %v3461_v38 = vor.u32 %v2848_v36, %v2635_v37  ;;  %v97_v40 = vld [vmem:[%s4114_s0 + $0x10] sm:$0xff]  ;;  %v98_v41 = vld [vmem:[%s4114_s0 + $0x18] sm:$0xff]  ;;  %v99_v43 = vld [vmem:[%s4114_s0 + $0x20] sm:$0xff]  ;;  %vm281_vm9 = vcmask 523264   ;;  %s3290_s4 = smov [#allocation13]   ;;  %s2588_s27 = sshll.u32 %s4123_s9, 4  ;;  %s2589_s27 = int_to_ptr.hbm [resolvable:$true] %s2588_s27 }
  0x1e   :  { %2627 = vmatmul.msk.bf16.vlgmr.msra.gmra.mxu1 %vm137_vm0, %v103_v21  ;;  %v104_v42 = vpack.c.bf16 %v98_v41, %v97_v40  ;;  %v100_v44 = vld [vmem:[%s4114_s0 + $0x28] sm:$0xff]  ;;  %v101_v46 = vld [vmem:[%s4114_s0 + $0x30] sm:$0xff]  ;;  %v102_v47 = vld [vmem:[%s4114_s0 + $0x38] sm:$0xff]  ;;  %s3289_s0 = smov 32   ;;  %s2586_s24 = sshll.u32 %s3290_s4, 4  ;;  %s2587_s24 = int_to_ptr.vmem [resolvable:$true] %s2586_s24 }
  0x1f   :  { %157 = vmatpush.bf16.msra.mxu0 %v2610_v23  ;;  %844 = vmatpush.bf16.msrb.mxu1 %v3420_v27  ;;  %v105_v45 = vpack.c.bf16 %v100_v44, %v99_v43  ;;  %v106_v48 = vpack.c.bf16 %v102_v47, %v101_v46  ;;  %v111_v49 = vld [vmem:[#allocation5] sm:$0x3] }
  0x20   :  { %291 = vmatpush.bf16.msra.mxu2 %v3415_v25  ;;  %v114_v50 = vperm.slane %v111_v49, 1  ;;  %v3519_v54 = vperm.slane %v111_v49, 0 }
  0x21   :  { %303 = vmatpush.bf16.msra.mxu3 %v3433_v31 }
  0x22   :  { %2623 = vmatmul.msk.bf16.vlgmr.msra.gmra.mxu0 %vm137_vm0, %v103_v21 }
  0x23   :  { %831 = vmatpush.bf16.msrb.mxu0 %v3373_v7  ;;  %845 = vmatpush.bf16.msrb.mxu1 %v3433_v31 }
  0x24   :  { %292 = vmatpush.bf16.msra.mxu2 %v3443_v34 }
  0x25   :  { %304 = vmatpush.bf16.msra.mxu3 %v3448_v35 }
  0x27   :  { %832 = vmatpush.bf16.msrb.mxu0 %v3388_v13  ;;  %293 = vmatmul.bf16.vlgmr.msra.gmra.mxu2 %v3288_v39 }
  0x28   :  { %426 = vmatpush.bf16.msrb.mxu2 %v3373_v7  ;;  %846 = vmatpush.bf16.msrb.mxu1 %v3448_v35 }
  0x29   :  { %305 = vmatpush.bf16.msra.mxu3 %v3461_v38 }
  0x2b   :  { %833 = vmatpush.bf16.msrb.mxu0 %v3415_v25 }
  0x2c   :  { %427 = vmatpush.bf16.msrb.mxu2 %v3388_v13  ;;  %847 = vmatpush.bf16.msrb.mxu1 %v3461_v38 }
  0x2d   :  { %439 = vmatpush.bf16.msrb.mxu3 %v3420_v27 }
  0x2e   :  { %306 = vmatmul.bf16.vlgmr.msra.gmra.mxu3 %v3288_v39  ;;  %2628 = vmatmul.msk.bf16.gmra.mxu1 %vm137_vm0, %v104_v42 }
  0x2f   :  { %834 = vmatpush.bf16.msrb.mxu0 %v3443_v34 }
  0x30   :  { %1106 = vmatpush.bf16.msra.mxu1 %v3420_v27  ;;  %428 = vmatpush.bf16.msrb.mxu2 %v3415_v25 }
  0x31   :  { %440 = vmatpush.bf16.msrb.mxu3 %v3433_v31 }
  0x32   :  { %2624 = vmatmul.msk.bf16.gmra.mxu0 %vm137_vm0, %v104_v42 }
  0x33   :  { %1093 = vmatpush.bf16.msra.mxu0 %v3373_v7 }
  0x34   :  { %1107 = vmatpush.bf16.msra.mxu1 %v3433_v31  ;;  %429 = vmatpush.bf16.msrb.mxu2 %v3443_v34 }
  0x35   :  { %441 = vmatpush.bf16.msrb.mxu3 %v3448_v35 }
  0x37   :  { %1094 = vmatpush.bf16.msra.mxu0 %v3388_v13 }
  0x38   :  { %563 = vmatpush.bf16.msra.mxu2 %v3373_v7  ;;  %1108 = vmatpush.bf16.msra.mxu1 %v3448_v35 }
  0x39   :  { %442 = vmatpush.bf16.msrb.mxu3 %v3461_v38 }
  0x3b   :  { %1095 = vmatpush.bf16.msra.mxu0 %v3415_v25 }
  0x3c   :  { %564 = vmatpush.bf16.msra.mxu2 %v3388_v13  ;;  %1109 = vmatpush.bf16.msra.mxu1 %v3461_v38 }
  0x3d   :  { %576 = vmatpush.bf16.msra.mxu3 %v3420_v27 }
  0x3e   :  { %2629 = vmatmul.msk.bf16.gmra.mxu1 %vm137_vm0, %v105_v45 }
  0x3f   :  { %1096 = vmatpush.bf16.msra.mxu0 %v3443_v34 }
  0x40   :  { %565 = vmatpush.bf16.msra.mxu2 %v3415_v25 }
  0x41   :  { %577 = vmatpush.bf16.msra.mxu3 %v3433_v31 }
  0x42   :  { %2625 = vmatmul.msk.bf16.gmra.mxu0 %vm137_vm0, %v105_v45 }
  0x44   :  { %566 = vmatpush.bf16.msra.mxu2 %v3443_v34 }
  0x45   :  { %578 = vmatpush.bf16.msra.mxu3 %v3448_v35 }
  0x49   :  { %579 = vmatpush.bf16.msra.mxu3 %v3461_v38 }
  0x4e   :  { %2630 = vmatmul.msk.bf16.gmra.mxu1 %vm137_vm0, %v106_v48 }
  0x52   :  { %2626 = vmatmul.msk.bf16.gmra.mxu0 %vm137_vm0, %v106_v48 }
  0x9b   :  { %v188_v51 = vpop.f32.mrf.mxu1 }
  0x9c   :  { %v3517_v52 = vadd.f32 %v188_v51, %v114_v50 }
  0x9f   :  { %v159_v56 = vpop.f32.mrf.mxu0 }
  0xa0   :  { %v160_v57 = vadd.f32 %v159_v56, %v3519_v54 }
  0xa3   :  { %v190_v53 = vpop.f32.mrf.mxu1 }
  0xa4   :  { %v3521_v55 = vadd.f32 %v190_v53, %v114_v50 }
  0xaa   :  { %v294_v58 = vpop.f32.mrf.mxu2 }
  0xab   :  { %v311_v59 = vadd.f32 %v294_v58, %v160_v57  ;;  %v193_v60 = vpop.f32.mrf.mxu1 }
  0xac   :  { %v3524_v61 = vadd.f32 %v193_v60, %v114_v50 }
  0xad   :  { %2896 = vtanh.f32 %v311_v59  ;;  %v2663_v16 = vmul.f32 -1.442695, %v311_v59 }
  0xb1   :  { %v307_v62 = vpop.f32.mrf.mxu3 }
  0xb2   :  { %v296_v63 = vpop.f32.mrf.mxu2 }
  0xb3   :  { %v2897_v0 = vpop.eup %2896  ;;  %v195_v1 = vpop.f32.mrf.mxu1 }
  0xb4   :  { %v3526_v2 = vadd.f32 %v195_v1, %v114_v50  ;;  %355 = vrot.lane.b32.xlu0 %v2897_v0, %s3286_s29 }
  0xb9   :  { %v309_v3 = vpop.f32.mrf.mxu3 }
  0xbb   :  { %v198_v4 = vpop.f32.mrf.mxu1 }
  0xbc   :  { %v3529_v5 = vadd.f32 %v198_v4, %v114_v50 }
  0xc3   :  { %v200_v6 = vpop.f32.mrf.mxu1 }
  0xc4   :  { %v3531_v8 = vadd.f32 %v200_v6, %v114_v50 }
  0xcb   :  { %v203_v9 = vpop.f32.mrf.mxu1 }
  0xcc   :  { %v3533_v10 = vadd.f32 %v203_v9, %v114_v50 }
  0xd3   :  { %v205_v11 = vpop.f32.mrf.mxu1 }
  0xd4   :  { %v206_v12 = vadd.f32 %v205_v11, %v114_v50 }
  0xd6   :  { %v312_v14 = vadd.f32 %v307_v62, %v206_v12 }
  0xd8   :  { %2898 = vtanh.f32 %v312_v14  ;;  %v2664_v30 = vmul.f32 -1.442695, %v312_v14 }
  0xd9   :  { %2900 = vpow2.f32 %v2663_v16 }
  0xde   :  { %v2899_v15 = vpop.eup %2898 }
  0xdf   :  { %379 = vrot.lane.b32.xlu0 %v2899_v15, %s3286_s29  ;;  %v2901_v17 = vpop.eup %2900  ;;  %v161_v15 = vpop.f32.mrf.mxu0 }
  0xe0   :  { %v319_v18 = vadd.f32 1.0, %v2901_v17  ;;  %v162_v16 = vadd.f32 %v161_v15, %v3519_v54 }
  0xe2   :  { %2902 = vrcp.f32 %v319_v18  ;;  %vm326_vm1 = vweird.f32 %v319_v18  ;;  %v332_v23 = vand.u32 2147483648, %v319_v18  ;;  %v330_v26 = vand.u32 2147483647, %v319_v18 }
  0xe3   :  { %2904 = vpow2.f32 %v2664_v30 }
  0xe4   :  { %v333_v28 = vor.u32 1.1754944e-38, %v332_v23  ;;  %vm331_vm4 = vcmp.eq.f32.partialorder %v330_v26, 8.507059e+37 }
  0xe8   :  { %v2903_v19 = vpop.eup %2902 }
  0xe9   :  { %v322_v20 = vmul.f32 %v2903_v19, %v319_v18  ;;  %vm327_vm2 = vweird.f32 %v2903_v19  ;;  %v2905_v37 = vpop.eup %2904 }
  0xea   :  { %vm328_vm3 = vmor %vm326_vm1, %vm327_vm2  ;;  %v320_v40 = vadd.f32 1.0, %v2905_v37 }
  0xeb   :  { %v323_v21 = vsub.f32 1.0, %v322_v20 }
  0xec   :  { %2906 = vrcp.f32 %v320_v40  ;;  %v347_v46 = vand.u32 2147483648, %v320_v40  ;;  %vm341_vm6 = vweird.f32 %v320_v40  ;;  %v345_v47 = vand.u32 2147483647, %v320_v40 }
  0xed   :  { %v324_v22 = vmul.f32 %v2903_v19, %v323_v21 }
  0xee   :  { %v348_v49 = vor.u32 1.1754944e-38, %v347_v46  ;;  %vm346_vm8 = vcmp.eq.f32.partialorder %v345_v47, 8.507059e+37 }
  0xef   :  { %v325_v24 = vadd.f32 %v2903_v19, %v324_v22 }
  0xf1   :  { %v329_v29 = vsel %vm328_vm3, %v2903_v19, %v325_v24 }
  0xf2   :  { %v334_v33 = vsel %vm331_vm4, %v333_v28, %v329_v29  ;;  %v2907_v41 = vpop.eup %2906 }
  0xf3   :  { %v337_v42 = vmul.f32 %v2907_v41, %v320_v40  ;;  %vm342_vm5 = vweird.f32 %v2907_v41  ;;  %v353_v56 = vmul.f32 0.0, %v334_v33 }
  0xf4   :  { %vm343_vm7 = vmor %vm341_vm6, %vm342_vm5 }
  0xf5   :  { %v338_v43 = vsub.f32 1.0, %v337_v42 }
  0xf7   :  { %v339_v44 = vmul.f32 %v2907_v41, %v338_v43 }
  0xf9   :  { %v340_v45 = vadd.f32 %v2907_v41, %v339_v44 }
  0xfb   :  { %v344_v48 = vsel %vm343_vm7, %v2907_v41, %v340_v45 }
  0xfc   :  { %v349_v50 = vsel %vm346_vm8, %v348_v49, %v344_v48 }
  0xfd   :  { %v377_v60 = vmul.f32 0.0, %v349_v50 }
 0x126   :  { %v356_v32 = vpop.permute.xlu0 %355 }
 0x127   :  { %v358_v36 = vmul.f32 %v356_v32, %v334_v33 }
 0x129   :  { %360 = vrot.lane.b32.xlu1 %v358_v36, %s3289_s0 }
 0x151   :  { %v380_v51 = vpop.permute.xlu0 %379 }
 0x152   :  { %v382_v53 = vmul.f32 %v380_v51, %v349_v50 }
 0x154   :  { %384 = vrot.lane.b32.xlu1 %v382_v53, %s3289_s0 }
 0x19b   :  { %v361_v57 = vpop.permute.xlu1 %360 }
 0x19c   :  { %v3538_v58 = vadd.f32 %v361_v57, %v353_v56 }
 0x19e   :  { %2908 = vtanh.f32 %v3538_v58 }
 0x1a4   :  { %v2909_v59 = vpop.eup %2908 }
 0x1a5   :  { %366 = vrot.lane.b32.xlu2 %v2909_v59, %s3286_s29 }
 0x1c6   :  { %v385_v62 = vpop.permute.xlu1 %384 }
 0x1c7   :  { %v3542_v63 = vadd.f32 %v385_v62, %v377_v60 }
 0x1c9   :  { %2910 = vtanh.f32 %v3542_v63 }
 0x1cf   :  { %v2911_v0 = vpop.eup %2910 }
 0x1d0   :  { %390 = vrot.lane.b32.xlu2 %v2911_v0, %s3286_s29 }
 0x1ff   :  { %v367_v1 = vpop.permute.xlu2 %366 }
 0x200   :  { %v3546_v3 = vmul.f32 %v367_v1, %v334_v33 }
 0x202   :  { %410 = vrot.lane.b32.xlu0 %v3546_v3, %s3289_s0 }
 0x22a   :  { %v391_v4 = vpop.permute.xlu2 %390 }
 0x22b   :  { %v3550_v6 = vmul.f32 %v391_v4, %v349_v50 }
 0x22d   :  { %414 = vrot.lane.b32.xlu1 %v3550_v6, %s3286_s29 }
 0x274   :  { %v411_v9 = vpop.permute.xlu0 %410 }
 0x29f   :  { %v415_v11 = vpop.permute.xlu1 %414 }
 0x2a0   :  { %v417_v12 = vsel %vm137_vm0, %v411_v9, %v415_v11 }
 0x2a1   :  { %v418_v14 = vpack.c.bf16 %v417_v12, %v417_v12 }
 0x2a3   :  { %2665 = vmatmul.msk.bf16.vlgmr.msrb.gmra.mxu2 %vm281_vm9, %v418_v14  ;;  %2666 = vmatmul.msk.bf16.vlgmr.msrb.gmra.mxu3 %vm281_vm9, %v418_v14 }
 0x2a4   :  { %700 = vmatpush.bf16.msrb.mxu2 %v3373_v7  ;;  %713 = vmatpush.bf16.msrb.mxu3 %v3420_v27 }
 0x2a8   :  { %701 = vmatpush.bf16.msrb.mxu2 %v3388_v13  ;;  %714 = vmatpush.bf16.msrb.mxu3 %v3433_v31 }
 0x2ac   :  { %702 = vmatpush.bf16.msrb.mxu2 %v3415_v25  ;;  %715 = vmatpush.bf16.msrb.mxu3 %v3448_v35 }
 0x2b0   :  { %703 = vmatpush.bf16.msrb.mxu2 %v3443_v34  ;;  %716 = vmatpush.bf16.msrb.mxu3 %v3461_v38 }
 0x326   :  { %v431_v17 = vpop.f32.mrf.mxu2  ;;  %v444_v18 = vpop.f32.mrf.mxu3 }
 0x327   :  { %v448_v19 = vadd.f32 %v431_v17, %v162_v16  ;;  %v449_v20 = vadd.f32 %v444_v18, %v3533_v10 }
 0x329   :  { %2912 = vtanh.f32 %v448_v19  ;;  %v2667_v26 = vmul.f32 -1.442695, %v448_v19  ;;  %v2668_v32 = vmul.f32 -1.442695, %v449_v20 }
 0x32a   :  { %2914 = vtanh.f32 %v449_v20 }
 0x32b   :  { %2916 = vpow2.f32 %v2667_v26  ;;  %v164_v26 = vpop.f32.mrf.mxu0 }
 0x32e   :  { %v433_v21 = vpop.f32.mrf.mxu2  ;;  %v446_v22 = vpop.f32.mrf.mxu3 }
 0x32f   :  { %v2913_v23 = vpop.eup %2912 }
 0x330   :  { %v2915_v24 = vpop.eup %2914  ;;  %492 = vrot.lane.b32.xlu2 %v2913_v23, %s3286_s29 }
 0x331   :  { %516 = vrot.lane.b32.xlu0 %v2915_v24, %s3286_s29  ;;  %v2917_v28 = vpop.eup %2916 }
 0x332   :  { %v456_v29 = vadd.f32 1.0, %v2917_v28  ;;  %v165_v28 = vadd.f32 %v164_v26, %v3519_v54 }
 0x334   :  { %2918 = vrcp.f32 %v456_v29  ;;  %v469_v42 = vand.u32 2147483648, %v456_v29  ;;  %vm463_vm11 = vweird.f32 %v456_v29  ;;  %v467_v43 = vand.u32 2147483647, %v456_v29 }
 0x335   :  { %2920 = vpow2.f32 %v2668_v32 }
 0x336   :  { %v470_v45 = vor.u32 1.1754944e-38, %v469_v42  ;;  %vm468_vm13 = vcmp.eq.f32.partialorder %v467_v43, 8.507059e+37 }
 0x33a   :  { %v2919_v30 = vpop.eup %2918 }
 0x33b   :  { %v459_v33 = vmul.f32 %v2919_v30, %v456_v29  ;;  %v2921_v37 = vpop.eup %2920  ;;  %vm464_vm10 = vweird.f32 %v2919_v30 }
 0x33c   :  { %v457_v40 = vadd.f32 1.0, %v2921_v37  ;;  %vm465_vm12 = vmor %vm463_vm11, %vm464_vm10 }
 0x33d   :  { %v460_v10 = vsub.f32 1.0, %v459_v33 }
 0x33e   :  { %2922 = vrcp.f32 %v457_v40  ;;  %v484_v57 = vand.u32 2147483648, %v457_v40  ;;  %vm478_vm15 = vweird.f32 %v457_v40  ;;  %v482_v59 = vand.u32 2147483647, %v457_v40 }
 0x33f   :  { %v461_v36 = vmul.f32 %v2919_v30, %v460_v10 }
 0x340   :  { %v485_v62 = vor.u32 1.1754944e-38, %v484_v57  ;;  %vm483_vm2 = vcmp.eq.f32.partialorder %v482_v59, 8.507059e+37 }
 0x341   :  { %v462_v41 = vadd.f32 %v2919_v30, %v461_v36 }
 0x343   :  { %v466_v44 = vsel %vm465_vm12, %v2919_v30, %v462_v41 }
 0x344   :  { %v471_v47 = vsel %vm468_vm13, %v470_v45, %v466_v44  ;;  %v2923_v49 = vpop.eup %2922 }
 0x345   :  { %v474_v50 = vmul.f32 %v2923_v49, %v457_v40  ;;  %vm479_vm14 = vweird.f32 %v2923_v49  ;;  %v490_v9 = vmul.f32 %v471_v47, %v3538_v58 }
 0x346   :  { %vm480_vm1 = vmor %vm478_vm15, %vm479_vm14 }
 0x347   :  { %v475_v51 = vsub.f32 1.0, %v474_v50 }
 0x349   :  { %v476_v53 = vmul.f32 %v2923_v49, %v475_v51 }
 0x34b   :  { %v477_v56 = vadd.f32 %v2923_v49, %v476_v53 }
 0x34d   :  { %v481_v60 = vsel %vm480_vm1, %v2923_v49, %v477_v56 }
 0x34e   :  { %v486_v1 = vsel %vm483_vm2, %v485_v62, %v481_v60 }
 0x34f   :  { %v514_v11 = vmul.f32 %v486_v1, %v3542_v63 }
 0x38a   :  { %v493_v46 = vpop.permute.xlu2 %492 }
 0x38b   :  { %v495_v48 = vmul.f32 %v493_v46, %v471_v47 }
 0x38d   :  { %497 = vrot.lane.b32.xlu1 %v495_v48, %s3289_s0 }
 0x3a3   :  { %v517_v0 = vpop.permute.xlu0 %516 }
 0x3a4   :  { %v519_v4 = vmul.f32 %v517_v0, %v486_v1 }
 0x3a6   :  { %521 = vrot.lane.b32.xlu2 %v519_v4, %s3289_s0 }
 0x3ff   :  { %v498_v12 = vpop.permute.xlu1 %497 }
 0x400   :  { %v522_v14 = vpop.permute.xlu2 %521  ;;  %v3573_v15 = vadd.f32 %v498_v12, %v490_v9 }
 0x401   :  { %v3575_v16 = vadd.f32 %v522_v14, %v514_v11 }
 0x402   :  { %2924 = vtanh.f32 %v3573_v15 }
 0x403   :  { %2926 = vtanh.f32 %v3575_v16 }
 0x408   :  { %v2925_v17 = vpop.eup %2924 }
 0x409   :  { %v2927_v18 = vpop.eup %2926  ;;  %503 = vrot.lane.b32.xlu0 %v2925_v17, %s3286_s29 }
 0x40a   :  { %527 = vrot.lane.b32.xlu1 %v2927_v18, %s3286_s29 }
 0x47b   :  { %v504_v19 = vpop.permute.xlu0 %503 }
 0x47c   :  { %v528_v58 = vpop.permute.xlu1 %527  ;;  %v3581_v20 = vmul.f32 %v504_v19, %v471_v47 }
 0x47d   :  { %v3583_v63 = vmul.f32 %v528_v58, %v486_v1 }
 0x47e   :  { %547 = vrot.lane.b32.xlu2 %v3581_v20, %s3289_s0 }
 0x47f   :  { %551 = vrot.lane.b32.xlu0 %v3583_v63, %s3286_s29 }
 0x4d8   :  { %v548_v21 = vpop.permute.xlu2 %547 }
 0x4f1   :  { %v552_v22 = vpop.permute.xlu0 %551 }
 0x4f2   :  { %v554_v23 = vsel %vm137_vm0, %v548_v21, %v552_v22 }
 0x4f3   :  { %v555_v24 = vpack.c.bf16 %v554_v23, %v554_v23 }
 0x4f5   :  { %2669 = vmatmul.msk.bf16.vlgmr.msra.gmra.mxu2 %vm281_vm9, %v555_v24  ;;  %2670 = vmatmul.msk.bf16.vlgmr.msra.gmra.mxu3 %vm281_vm9, %v555_v24 }
 0x4f6   :  { %962 = vmatpush.bf16.msra.mxu2 %v3373_v7  ;;  %975 = vmatpush.bf16.msra.mxu3 %v3420_v27 }
 0x4fa   :  { %963 = vmatpush.bf16.msra.mxu2 %v3388_v13  ;;  %976 = vmatpush.bf16.msra.mxu3 %v3433_v31 }
 0x4fe   :  { %964 = vmatpush.bf16.msra.mxu2 %v3415_v25  ;;  %977 = vmatpush.bf16.msra.mxu3 %v3448_v35 }
 0x502   :  { %965 = vmatpush.bf16.msra.mxu2 %v3443_v34  ;;  %978 = vmatpush.bf16.msra.mxu3 %v3461_v38 }
 0x578   :  { %v568_v29 = vpop.f32.mrf.mxu2  ;;  %v581_v30 = vpop.f32.mrf.mxu3 }
 0x579   :  { %v585_v32 = vadd.f32 %v568_v29, %v165_v28  ;;  %v586_v33 = vadd.f32 %v581_v30, %v3531_v8 }
 0x57b   :  { %2928 = vtanh.f32 %v585_v32  ;;  %v2672_v41 = vmul.f32 -1.442695, %v586_v33  ;;  %v2671_v45 = vmul.f32 -1.442695, %v585_v32 }
 0x57c   :  { %2930 = vtanh.f32 %v586_v33 }
 0x57d   :  { %2932 = vpow2.f32 %v2672_v41 }
 0x580   :  { %v570_v10 = vpop.f32.mrf.mxu2  ;;  %v583_v36 = vpop.f32.mrf.mxu3 }
 0x581   :  { %v2929_v37 = vpop.eup %2928 }
 0x582   :  { %v2931_v40 = vpop.eup %2930  ;;  %629 = vrot.lane.b32.xlu1 %v2929_v37, %s3286_s29 }
 0x583   :  { %653 = vrot.lane.b32.xlu2 %v2931_v40, %s3286_s29  ;;  %v2933_v42 = vpop.eup %2932 }
 0x584   :  { %v594_v43 = vadd.f32 1.0, %v2933_v42  ;;  %v166_v42 = vpop.f32.mrf.mxu0 }
 0x586   :  { %2934 = vrcp.f32 %v594_v43  ;;  %v621_v51 = vand.u32 2147483648, %v594_v43  ;;  %vm615_vm4 = vweird.f32 %v594_v43  ;;  %v619_v53 = vand.u32 2147483647, %v594_v43 }
 0x587   :  { %2936 = vpow2.f32 %v2671_v45 }
 0x588   :  { %v622_v57 = vor.u32 1.1754944e-38, %v621_v51  ;;  %vm620_vm6 = vcmp.eq.f32.partialorder %v619_v53, 8.507059e+37 }
 0x58c   :  { %v2935_v44 = vpop.eup %2934 }
 0x58d   :  { %v611_v46 = vmul.f32 %v2935_v44, %v594_v43  ;;  %v2937_v47 = vpop.eup %2936  ;;  %vm616_vm3 = vweird.f32 %v2935_v44  ;;  %v167_v43 = vadd.f32 %v166_v42, %v3519_v54 }
 0x58e   :  { %v593_v49 = vadd.f32 1.0, %v2937_v47  ;;  %vm617_vm5 = vmor %vm615_vm4, %vm616_vm3 }
 0x58f   :  { %v612_v8 = vsub.f32 1.0, %v611_v46 }
 0x590   :  { %2938 = vrcp.f32 %v593_v49  ;;  %v606_v12 = vand.u32 2147483648, %v593_v49  ;;  %vm600_vm8 = vweird.f32 %v593_v49  ;;  %v604_v14 = vand.u32 2147483647, %v593_v49 }
 0x591   :  { %v613_v48 = vmul.f32 %v2935_v44, %v612_v8 }
 0x592   :  { %v607_v18 = vor.u32 1.1754944e-38, %v606_v12  ;;  %vm605_vm11 = vcmp.eq.f32.partialorder %v604_v14, 8.507059e+37 }
 0x593   :  { %v614_v50 = vadd.f32 %v2935_v44, %v613_v48 }
 0x595   :  { %v618_v56 = vsel %vm617_vm5, %v2935_v44, %v614_v50 }
 0x596   :  { %v623_v60 = vsel %vm620_vm6, %v622_v57, %v618_v56  ;;  %v2939_v62 = vpop.eup %2938 }
 0x597   :  { %v596_v1 = vmul.f32 %v2939_v62, %v593_v49  ;;  %vm601_vm7 = vweird.f32 %v2939_v62  ;;  %v651_v22 = vmul.f32 %v623_v60, %v3575_v16 }
 0x598   :  { %vm602_vm10 = vmor %vm600_vm8, %vm601_vm7 }
 0x599   :  { %v597_v4 = vsub.f32 1.0, %v596_v1 }
 0x59b   :  { %v598_v9 = vmul.f32 %v2939_v62, %v597_v4 }
 0x59d   :  { %v599_v11 = vadd.f32 %v2939_v62, %v598_v9 }
 0x59f   :  { %v603_v17 = vsel %vm602_vm10, %v2939_v62, %v599_v11 }
 0x5a0   :  { %v608_v58 = vsel %vm605_vm11, %v607_v18, %v603_v17 }
 0x5a1   :  { %v627_v28 = vmul.f32 %v608_v58, %v3573_v15 }
 0x5dd   :  { %v654_v59 = vpop.permute.xlu2 %653 }
 0x5de   :  { %v656_v0 = vmul.f32 %v654_v59, %v623_v60 }
 0x5e0   :  { %658 = vrot.lane.b32.xlu1 %v656_v0, %s3289_s0 }
 0x5f4   :  { %v630_v19 = vpop.permute.xlu1 %629 }
 0x5f5   :  { %v632_v21 = vmul.f32 %v630_v19, %v608_v58 }
 0x5f7   :  { %634 = vrot.lane.b32.xlu0 %v632_v21, %s3289_s0 }
 0x652   :  { %v659_v23 = vpop.permute.xlu1 %658 }
 0x653   :  { %v3607_v24 = vadd.f32 %v659_v23, %v651_v22 }
 0x655   :  { %2940 = vtanh.f32 %v3607_v24 }
 0x65b   :  { %v2941_v26 = vpop.eup %2940 }
 0x65c   :  { %664 = vrot.lane.b32.xlu0 %v2941_v26, %s3286_s29 }
 0x669   :  { %v635_v29 = vpop.permute.xlu0 %634 }
 0x66a   :  { %v3612_v30 = vadd.f32 %v635_v29, %v627_v28 }
 0x66c   :  { %2942 = vtanh.f32 %v3612_v30 }
 0x672   :  { %v2943_v32 = vpop.eup %2942 }
 0x673   :  { %640 = vrot.lane.b32.xlu2 %v2943_v32, %s3286_s29 }
 0x6cd   :  { %v641_v33 = vpop.permute.xlu2 %640 }
 0x6ce   :  { %v665_v16 = vpop.permute.xlu0 %664  ;;  %v3616_v10 = vmul.f32 %v641_v33, %v608_v58 }
 0x6cf   :  { %v3618_v36 = vmul.f32 %v665_v16, %v623_v60 }
 0x6d0   :  { %684 = vrot.lane.b32.xlu1 %v3616_v10, %s3289_s0 }
 0x6d1   :  { %688 = vrot.lane.b32.xlu2 %v3618_v36, %s3286_s29 }
 0x72b   :  { %v689_v15 = vpop.permute.xlu2 %688 }
 0x742   :  { %v685_v37 = vpop.permute.xlu1 %684 }
 0x743   :  { %v691_v40 = vsel %vm137_vm0, %v685_v37, %v689_v15 }
 0x744   :  { %v692_v41 = vpack.c.bf16 %v691_v40, %v691_v40 }
 0x746   :  { %2673 = vmatmul.msk.bf16.vlgmr.msrb.gmra.mxu2 %vm281_vm9, %v692_v41  ;;  %2674 = vmatmul.msk.bf16.vlgmr.msrb.gmra.mxu3 %vm281_vm9, %v692_v41 }
 0x747   :  { %1237 = vmatpush.bf16.msrb.mxu3 %v3420_v27  ;;  %1224 = vmatpush.bf16.msrb.mxu2 %v3373_v7 }
 0x74b   :  { %1238 = vmatpush.bf16.msrb.mxu3 %v3433_v31  ;;  %1225 = vmatpush.bf16.msrb.mxu2 %v3388_v13 }
 0x74f   :  { %1239 = vmatpush.bf16.msrb.mxu3 %v3448_v35  ;;  %1226 = vmatpush.bf16.msrb.mxu2 %v3415_v25 }
 0x753   :  { %1240 = vmatpush.bf16.msrb.mxu3 %v3461_v38  ;;  %1227 = vmatpush.bf16.msrb.mxu2 %v3443_v34 }
 0x7c9   :  { %v705_v44 = vpop.f32.mrf.mxu2  ;;  %v718_v45 = vpop.f32.mrf.mxu3 }
 0x7ca   :  { %v722_v27 = vadd.f32 %v705_v44, %v167_v43  ;;  %v723_v7 = vadd.f32 %v718_v45, %v3529_v5 }
 0x7cc   :  { %2944 = vtanh.f32 %v722_v27  ;;  %v2675_v25 = vmul.f32 -1.442695, %v722_v27  ;;  %v2676_v34 = vmul.f32 -1.442695, %v723_v7  ;;  %v169_v27 = vpop.f32.mrf.mxu0 }
 0x7cd   :  { %2946 = vtanh.f32 %v723_v7 }
 0x7ce   :  { %2948 = vpow2.f32 %v2675_v25 }
 0x7cf   :  { %2950 = vpow2.f32 %v2676_v34 }
 0x7d1   :  { %v707_v31 = vpop.f32.mrf.mxu2  ;;  %v720_v13 = vpop.f32.mrf.mxu3 }
 0x7d2   :  { %v2945_v46 = vpop.eup %2944 }
 0x7d3   :  { %v2947_v35 = vpop.eup %2946  ;;  %766 = vrot.lane.b32.xlu0 %v2945_v46, %s3286_s29  ;;  %v170_v46 = vadd.f32 %v169_v27, %v3519_v54 }
 0x7d4   :  { %790 = vrot.lane.b32.xlu1 %v2947_v35, %s3286_s29  ;;  %v2949_v38 = vpop.eup %2948  ;;  %v3662_v7 = vpop.f32.mrf.mxu0 }
 0x7d5   :  { %v2951_v8 = vpop.eup %2950  ;;  %v730_v47 = vadd.f32 1.0, %v2949_v38 }
 0x7d6   :  { %v731_v48 = vadd.f32 1.0, %v2951_v8 }
 0x7d7   :  { %2952 = vrcp.f32 %v730_v47  ;;  %v743_v0 = vand.u32 2147483648, %v730_v47  ;;  %vm737_vm14 = vweird.f32 %v730_v47  ;;  %v741_v4 = vand.u32 2147483647, %v730_v47 }
 0x7d8   :  { %2954 = vrcp.f32 %v731_v48  ;;  %v758_v1 = vand.u32 2147483648, %v731_v48  ;;  %vm752_vm15 = vweird.f32 %v731_v48  ;;  %v756_v9 = vand.u32 2147483647, %v731_v48 }
 0x7d9   :  { %v744_v14 = vor.u32 1.1754944e-38, %v743_v0  ;;  %vm742_vm3 = vcmp.eq.f32.partialorder %v741_v4, 8.507059e+37 }
 0x7da   :  { %v759_v17 = vor.u32 1.1754944e-38, %v758_v1  ;;  %vm757_vm4 = vcmp.eq.f32.partialorder %v756_v9, 8.507059e+37 }
 0x7dc   :  { %v3664_v31 = vpop.f32.mrf.mxu0 }
 0x7dd   :  { %v2953_v5 = vpop.eup %2952 }
 0x7de   :  { %v2955_v49 = vpop.eup %2954  ;;  %v733_v50 = vmul.f32 %v2953_v5, %v730_v47  ;;  %vm738_vm12 = vweird.f32 %v2953_v5 }
 0x7df   :  { %v748_v51 = vmul.f32 %v2955_v49, %v731_v48  ;;  %vm753_vm13 = vweird.f32 %v2955_v49  ;;  %vm739_vm1 = vmor %vm737_vm14, %vm738_vm12 }
 0x7e0   :  { %v734_v53 = vsub.f32 1.0, %v733_v50  ;;  %vm754_vm2 = vmor %vm752_vm15, %vm753_vm13 }
 0x7e1   :  { %v749_v56 = vsub.f32 1.0, %v748_v51 }
 0x7e2   :  { %v735_v57 = vmul.f32 %v2953_v5, %v734_v53 }
 0x7e3   :  { %v750_v59 = vmul.f32 %v2955_v49, %v749_v56 }
 0x7e4   :  { %v736_v60 = vadd.f32 %v2953_v5, %v735_v57  ;;  %v3666_v13 = vpop.f32.mrf.mxu0 }
 0x7e5   :  { %v751_v62 = vadd.f32 %v2955_v49, %v750_v59 }
 0x7e6   :  { %v740_v11 = vsel %vm739_vm1, %v2953_v5, %v736_v60 }
 0x7e7   :  { %v755_v12 = vsel %vm754_vm2, %v2955_v49, %v751_v62  ;;  %v745_v19 = vsel %vm742_vm3, %v744_v14, %v740_v11 }
 0x7e8   :  { %v760_v21 = vsel %vm757_vm4, %v759_v17, %v755_v12  ;;  %v764_v26 = vmul.f32 %v745_v19, %v3612_v30 }
 0x7e9   :  { %v788_v33 = vmul.f32 %v760_v21, %v3607_v24 }
 0x845   :  { %v767_v18 = vpop.permute.xlu0 %766 }
 0x846   :  { %v791_v58 = vpop.permute.xlu1 %790  ;;  %v769_v22 = vmul.f32 %v767_v18, %v745_v19 }
 0x847   :  { %v793_v23 = vmul.f32 %v791_v58, %v760_v21 }
 0x848   :  { %771 = vrot.lane.b32.xlu2 %v769_v22, %s3289_s0 }
 0x849   :  { %795 = vrot.lane.b32.xlu0 %v793_v23, %s3289_s0 }
 0x8a2   :  { %v772_v28 = vpop.permute.xlu2 %771 }
 0x8a3   :  { %v3642_v29 = vadd.f32 %v772_v28, %v764_v26 }
 0x8a5   :  { %2956 = vtanh.f32 %v3642_v29 }
 0x8ab   :  { %v2957_v32 = vpop.eup %2956 }
 0x8ac   :  { %777 = vrot.lane.b32.xlu1 %v2957_v32, %s3286_s29 }
 0x8bb   :  { %v796_v16 = vpop.permute.xlu0 %795 }
 0x8bc   :  { %v3647_v15 = vadd.f32 %v796_v16, %v788_v33 }
 0x8be   :  { %2958 = vtanh.f32 %v3647_v15 }
 0x8c4   :  { %v2959_v37 = vpop.eup %2958 }
 0x8c5   :  { %801 = vrot.lane.b32.xlu2 %v2959_v37, %s3286_s29 }
 0x91e   :  { %v778_v40 = vpop.permute.xlu1 %777 }
 0x91f   :  { %v802_v30 = vpop.permute.xlu2 %801  ;;  %v3651_v41 = vmul.f32 %v778_v40, %v745_v19 }
 0x920   :  { %v3653_v42 = vmul.f32 %v802_v30, %v760_v21 }
 0x921   :  { %815 = vrot.lane.b32.xlu0 %v3651_v41, %s3289_s0 }
 0x922   :  { %819 = vrot.lane.b32.xlu1 %v3653_v42, %s3286_s29 }
 0x993   :  { %v816_v24 = vpop.permute.xlu0 %815 }
 0x994   :  { %v820_v43 = vpop.permute.xlu1 %819 }
 0x995   :  { %v822_v44 = vsel %vm137_vm0, %v816_v24, %v820_v43 }
 0x996   :  { %v823_v45 = vpack.c.bf16 %v822_v44, %v822_v44 }
 0x998   :  { %2677 = vmatmul.msk.bf16.vlgmr.msrb.gmra.mxu0 %vm281_vm9, %v823_v45  ;;  %2678 = vmatmul.msk.bf16.vlgmr.msrb.gmra.mxu1 %vm281_vm9, %v823_v45 }
 0xa15   :  { %v836_v35 = vpop.f32.mrf.mxu0  ;;  %v849_v25 = vpop.f32.mrf.mxu1 }
 0xa16   :  { %v853_v34 = vadd.f32 %v836_v35, %v170_v46  ;;  %v854_v38 = vadd.f32 %v849_v25, %v3526_v2 }
 0xa18   :  { %2960 = vtanh.f32 %v853_v34  ;;  %v2679_v49 = vmul.f32 -1.442695, %v853_v34  ;;  %v2680_v56 = vmul.f32 -1.442695, %v854_v38 }
 0xa19   :  { %2962 = vtanh.f32 %v854_v38 }
 0xa1a   :  { %2964 = vpow2.f32 %v2679_v49 }
 0xa1d   :  { %v838_v8 = vpop.f32.mrf.mxu0  ;;  %v851_v47 = vpop.f32.mrf.mxu1 }
 0xa1e   :  { %v2961_v48 = vpop.eup %2960 }
 0xa1f   :  { %v2963_v5 = vpop.eup %2962  ;;  %897 = vrot.lane.b32.xlu2 %v2961_v48, %s3286_s29  ;;  %v172_v48 = vadd.f32 %v3662_v7, %v3519_v54 }
 0xa20   :  { %921 = vrot.lane.b32.xlu0 %v2963_v5, %s3286_s29  ;;  %v2965_v50 = vpop.eup %2964 }
 0xa21   :  { %v861_v51 = vadd.f32 1.0, %v2965_v50 }
 0xa23   :  { %2966 = vrcp.f32 %v861_v51  ;;  %v874_v1 = vand.u32 2147483648, %v861_v51  ;;  %vm868_vm6 = vweird.f32 %v861_v51  ;;  %v872_v4 = vand.u32 2147483647, %v861_v51 }
 0xa24   :  { %2968 = vpow2.f32 %v2680_v56 }
 0xa25   :  { %v875_v11 = vor.u32 1.1754944e-38, %v874_v1  ;;  %vm873_vm8 = vcmp.eq.f32.partialorder %v872_v4, 8.507059e+37 }
 0xa29   :  { %v2967_v53 = vpop.eup %2966 }
 0xa2a   :  { %v864_v57 = vmul.f32 %v2967_v53, %v861_v51  ;;  %v2969_v60 = vpop.eup %2968  ;;  %vm869_vm5 = vweird.f32 %v2967_v53 }
 0xa2b   :  { %v862_v62 = vadd.f32 1.0, %v2969_v60  ;;  %vm870_vm7 = vmor %vm868_vm6, %vm869_vm5 }
 0xa2c   :  { %v865_v2 = vsub.f32 1.0, %v864_v57 }
 0xa2d   :  { %2970 = vrcp.f32 %v862_v62  ;;  %v889_v23 = vand.u32 2147483648, %v862_v62  ;;  %vm883_vm11 = vweird.f32 %v862_v62  ;;  %v887_v26 = vand.u32 2147483647, %v862_v62 }
 0xa2e   :  { %v866_v59 = vmul.f32 %v2967_v53, %v865_v2 }
 0xa2f   :  { %v890_v32 = vor.u32 1.1754944e-38, %v889_v23  ;;  %vm888_vm13 = vcmp.eq.f32.partialorder %v887_v26, 8.507059e+37 }
 0xa30   :  { %v867_v0 = vadd.f32 %v2967_v53, %v866_v59 }
 0xa32   :  { %v871_v9 = vsel %vm870_vm7, %v2967_v53, %v867_v0 }
 0xa33   :  { %v876_v14 = vsel %vm873_vm8, %v875_v11, %v871_v9  ;;  %v2971_v18 = vpop.eup %2970 }
 0xa34   :  { %v879_v19 = vmul.f32 %v2971_v18, %v862_v62  ;;  %vm884_vm10 = vweird.f32 %v2971_v18  ;;  %v895_v40 = vmul.f32 %v876_v14, %v3642_v29 }
 0xa35   :  { %vm885_vm12 = vmor %vm883_vm11, %vm884_vm10 }
 0xa36   :  { %v880_v58 = vsub.f32 1.0, %v879_v19 }
 0xa38   :  { %v881_v21 = vmul.f32 %v2971_v18, %v880_v58 }
 0xa3a   :  { %v882_v22 = vadd.f32 %v2971_v18, %v881_v21 }
 0xa3c   :  { %v886_v28 = vsel %vm885_vm12, %v2971_v18, %v882_v22 }
 0xa3d   :  { %v891_v16 = vsel %vm888_vm13, %v890_v32, %v886_v28 }
 0xa3e   :  { %v919_v30 = vmul.f32 %v891_v16, %v3647_v15 }
 0xa79   :  { %v898_v12 = vpop.permute.xlu2 %897 }
 0xa7a   :  { %v900_v17 = vmul.f32 %v898_v12, %v876_v14 }
 0xa7c   :  { %902 = vrot.lane.b32.xlu1 %v900_v17, %s3289_s0 }
 0xa92   :  { %v922_v33 = vpop.permute.xlu0 %921 }
 0xa93   :  { %v924_v37 = vmul.f32 %v922_v33, %v891_v16 }
 0xa95   :  { %926 = vrot.lane.b32.xlu2 %v924_v37, %s3289_s0 }
 0xaee   :  { %v903_v24 = vpop.permute.xlu1 %902 }
 0xaef   :  { %v927_v43 = vpop.permute.xlu2 %926  ;;  %v3676_v44 = vadd.f32 %v903_v24, %v895_v40 }
 0xaf0   :  { %v3678_v45 = vadd.f32 %v927_v43, %v919_v30 }
 0xaf1   :  { %2972 = vtanh.f32 %v3676_v44 }
 0xaf2   :  { %2974 = vtanh.f32 %v3678_v45 }
 0xaf7   :  { %v2973_v27 = vpop.eup %2972 }
 0xaf8   :  { %v2975_v46 = vpop.eup %2974  ;;  %908 = vrot.lane.b32.xlu0 %v2973_v27, %s3286_s29 }
 0xaf9   :  { %932 = vrot.lane.b32.xlu1 %v2975_v46, %s3286_s29 }
 0xb6a   :  { %v909_v35 = vpop.permute.xlu0 %908 }
 0xb6b   :  { %v933_v29 = vpop.permute.xlu1 %932  ;;  %v3684_v25 = vmul.f32 %v909_v35, %v876_v14 }
 0xb6c   :  { %v3686_v15 = vmul.f32 %v933_v29, %v891_v16 }
 0xb6d   :  { %946 = vrot.lane.b32.xlu2 %v3684_v25, %s3289_s0 }
 0xb6e   :  { %950 = vrot.lane.b32.xlu0 %v3686_v15, %s3286_s29 }
 0xbc7   :  { %v947_v34 = vpop.permute.xlu2 %946 }
 0xbe0   :  { %v951_v38 = vpop.permute.xlu0 %950 }
 0xbe1   :  { %v953_v8 = vsel %vm137_vm0, %v947_v34, %v951_v38 }
 0xbe2   :  { %v954_v47 = vpack.c.bf16 %v953_v8, %v953_v8 }
 0xbe4   :  { %2681 = vmatmul.msk.bf16.vlgmr.msra.gmra.mxu2 %vm281_vm9, %v954_v47  ;;  %2682 = vmatmul.msk.bf16.vlgmr.msra.gmra.mxu3 %vm281_vm9, %v954_v47 }
 0xc67   :  { %v967_v5 = vpop.f32.mrf.mxu2  ;;  %v980_v49 = vpop.f32.mrf.mxu3 }
 0xc68   :  { %v984_v50 = vadd.f32 %v967_v5, %v172_v48  ;;  %v985_v51 = vadd.f32 %v980_v49, %v3524_v61 }
 0xc6a   :  { %2976 = vtanh.f32 %v984_v50  ;;  %v2684_v59 = vmul.f32 -1.442695, %v985_v51  ;;  %v2683_v0 = vmul.f32 -1.442695, %v984_v50 }
 0xc6b   :  { %2978 = vtanh.f32 %v985_v51 }
 0xc6c   :  { %2980 = vpow2.f32 %v2684_v59 }
 0xc6f   :  { %v969_v53 = vpop.f32.mrf.mxu2  ;;  %v982_v56 = vpop.f32.mrf.mxu3 }
 0xc70   :  { %v2977_v57 = vpop.eup %2976 }
 0xc71   :  { %v2979_v2 = vpop.eup %2978  ;;  %1028 = vrot.lane.b32.xlu1 %v2977_v57, %s3286_s29  ;;  %v175_v57 = vadd.f32 %v3664_v31, %v3519_v54 }
 0xc72   :  { %1052 = vrot.lane.b32.xlu2 %v2979_v2, %s3286_s29  ;;  %v2981_v60 = vpop.eup %2980 }
 0xc73   :  { %v993_v62 = vadd.f32 1.0, %v2981_v60 }
 0xc75   :  { %2982 = vrcp.f32 %v993_v62  ;;  %v1020_v14 = vand.u32 2147483648, %v993_v62  ;;  %vm1014_vm15 = vweird.f32 %v993_v62  ;;  %v1018_v17 = vand.u32 2147483647, %v993_v62 }
 0xc76   :  { %2984 = vpow2.f32 %v2683_v0 }
 0xc77   :  { %v1021_v19 = vor.u32 1.1754944e-38, %v1020_v14  ;;  %vm1019_vm2 = vcmp.eq.f32.partialorder %v1018_v17, 8.507059e+37 }
 0xc7b   :  { %v2983_v7 = vpop.eup %2982 }
 0xc7c   :  { %v1010_v1 = vmul.f32 %v2983_v7, %v993_v62  ;;  %v2985_v4 = vpop.eup %2984  ;;  %vm1015_vm14 = vweird.f32 %v2983_v7 }
 0xc7d   :  { %v992_v11 = vadd.f32 1.0, %v2985_v4  ;;  %vm1016_vm1 = vmor %vm1014_vm15, %vm1015_vm14 }
 0xc7e   :  { %v1011_v61 = vsub.f32 1.0, %v1010_v1 }
 0xc7f   :  { %2986 = vrcp.f32 %v992_v11  ;;  %v1005_v16 = vand.u32 2147483648, %v992_v11  ;;  %vm999_vm4 = vweird.f32 %v992_v11  ;;  %v1003_v37 = vand.u32 2147483647, %v992_v11 }
 0xc80   :  { %v1012_v9 = vmul.f32 %v2983_v7, %v1011_v61 }
 0xc81   :  { %v1006_v30 = vor.u32 1.1754944e-38, %v1005_v16  ;;  %vm1004_vm6 = vcmp.eq.f32.partialorder %v1003_v37, 8.507059e+37 }
 0xc82   :  { %v1013_v12 = vadd.f32 %v2983_v7, %v1012_v9 }
 0xc84   :  { %v1017_v18 = vsel %vm1016_vm1, %v2983_v7, %v1013_v12 }
 0xc85   :  { %v1022_v21 = vsel %vm1019_vm2, %v1021_v19, %v1017_v18  ;;  %v2987_v22 = vpop.eup %2986 }
 0xc86   :  { %v995_v26 = vmul.f32 %v2987_v22, %v992_v11  ;;  %vm1000_vm3 = vweird.f32 %v2987_v22  ;;  %v1050_v46 = vmul.f32 %v1022_v21, %v3678_v45 }
 0xc87   :  { %vm1001_vm5 = vmor %vm999_vm4, %vm1000_vm3 }
 0xc88   :  { %v996_v28 = vsub.f32 1.0, %v995_v26 }
 0xc8a   :  { %v997_v32 = vmul.f32 %v2987_v22, %v996_v28 }
 0xc8c   :  { %v998_v33 = vadd.f32 %v2987_v22, %v997_v32 }
 0xc8e   :  { %v1002_v40 = vsel %vm1001_vm5, %v2987_v22, %v998_v33 }
 0xc8f   :  { %v1007_v43 = vsel %vm1004_vm6, %v1006_v30, %v1002_v40 }
 0xc90   :  { %v1026_v38 = vmul.f32 %v1007_v43, %v3676_v44 }
 0xccc   :  { %v1053_v58 = vpop.permute.xlu2 %1052 }
 0xccd   :  { %v1055_v23 = vmul.f32 %v1053_v58, %v1022_v21 }
 0xccf   :  { %1057 = vrot.lane.b32.xlu1 %v1055_v23, %s3289_s0 }
 0xce3   :  { %v1029_v24 = vpop.permute.xlu1 %1028 }
 0xce4   :  { %v1031_v27 = vmul.f32 %v1029_v24, %v1007_v43 }
 0xce6   :  { %1033 = vrot.lane.b32.xlu0 %v1031_v27, %s3289_s0 }
 0xd41   :  { %v1058_v35 = vpop.permute.xlu1 %1057 }
 0xd42   :  { %v3703_v29 = vadd.f32 %v1058_v35, %v1050_v46 }
 0xd44   :  { %2988 = vtanh.f32 %v3703_v29 }
 0xd4a   :  { %v2989_v34 = vpop.eup %2988 }
 0xd4b   :  { %1063 = vrot.lane.b32.xlu0 %v2989_v34, %s3286_s29 }
 0xd58   :  { %v1034_v8 = vpop.permute.xlu0 %1033 }
 0xd59   :  { %v3708_v47 = vadd.f32 %v1034_v8, %v1026_v38 }
 0xd5b   :  { %2990 = vtanh.f32 %v3708_v47 }
 0xd61   :  { %v2991_v48 = vpop.eup %2990 }
 0xd62   :  { %1039 = vrot.lane.b32.xlu2 %v2991_v48, %s3286_s29 }
 0xdbc   :  { %v1040_v5 = vpop.permute.xlu2 %1039 }
 0xdbd   :  { %v1064_v45 = vpop.permute.xlu0 %1063  ;;  %v3712_v49 = vmul.f32 %v1040_v5, %v1007_v43 }
 0xdbe   :  { %v3714_v50 = vmul.f32 %v1064_v45, %v1022_v21 }
 0xdbf   :  { %1077 = vrot.lane.b32.xlu1 %v3712_v49, %s3289_s0 }
 0xdc0   :  { %1081 = vrot.lane.b32.xlu2 %v3714_v50, %s3286_s29 }
 0xe1a   :  { %v1082_v44 = vpop.permute.xlu2 %1081 }
 0xe31   :  { %v1078_v51 = vpop.permute.xlu1 %1077 }
 0xe32   :  { %v1084_v53 = vsel %vm137_vm0, %v1078_v51, %v1082_v44 }
 0xe33   :  { %v1085_v56 = vpack.c.bf16 %v1084_v53, %v1084_v53 }
 0xe35   :  { %2685 = vmatmul.msk.bf16.vlgmr.msra.gmra.mxu0 %vm281_vm9, %v1085_v56  ;;  %2686 = vmatmul.msk.bf16.vlgmr.msra.gmra.mxu1 %vm281_vm9, %v1085_v56 }
 0xeb2   :  { %v1098_v2 = vpop.f32.mrf.mxu0  ;;  %v1111_v59 = vpop.f32.mrf.mxu1 }
 0xeb3   :  { %v1115_v60 = vadd.f32 %v1098_v2, %v175_v57  ;;  %v1116_v62 = vadd.f32 %v1111_v59, %v3521_v55 }
 0xeb5   :  { %2992 = vtanh.f32 %v1115_v60  ;;  %v2687_v4 = vmul.f32 -1.442695, %v1115_v60  ;;  %v2688_v9 = vmul.f32 -1.442695, %v1116_v62 }
 0xeb6   :  { %2994 = vtanh.f32 %v1116_v62 }
 0xeb7   :  { %2996 = vpow2.f32 %v2687_v4 }
 0xeb8   :  { %2998 = vpow2.f32 %v2688_v9 }
 0xeba   :  { %v1100_v7 = vpop.f32.mrf.mxu0  ;;  %v1113_v0 = vpop.f32.mrf.mxu1 }
 0xebb   :  { %v2993_v1 = vpop.eup %2992 }
 0xebc   :  { %v2995_v61 = vpop.eup %2994  ;;  %1159 = vrot.lane.b32.xlu0 %v2993_v1, %s3286_s29  ;;  %v177_v1 = vadd.f32 %v3666_v13, %v3519_v54  ;;  %v1067_v54 = vpack.c.bf16 %v3714_v50, %v3714_v50  ;;  %v394_v13 = vpack.c.bf16 %v3550_v6, %v3550_v6  ;;  %v912_v50 = vpack.c.bf16 %v3684_v25, %v3684_v25 }
 0xebd   :  { %1183 = vrot.lane.b32.xlu1 %v2995_v61, %s3286_s29  ;;  %v2997_v31 = vpop.eup %2996 }
 0xebe   :  { %v2999_v11 = vpop.eup %2998  ;;  %v1123_v12 = vadd.f32 1.0, %v2997_v31 }
 0xebf   :  { %v1124_v14 = vadd.f32 1.0, %v2999_v11 }
 0xec0   :  { %3000 = vrcp.f32 %v1123_v12  ;;  %v1136_v32 = vand.u32 2147483648, %v1123_v12  ;;  %vm1130_vm10 = vweird.f32 %v1123_v12  ;;  %v1134_v16 = vand.u32 2147483647, %v1123_v12 }
 0xec1   :  { %3002 = vrcp.f32 %v1124_v14  ;;  %v1151_v33 = vand.u32 2147483648, %v1124_v14  ;;  %vm1145_vm11 = vweird.f32 %v1124_v14  ;;  %v1149_v37 = vand.u32 2147483647, %v1124_v14 }
 0xec2   :  { %v1137_v24 = vor.u32 1.1754944e-38, %v1136_v32  ;;  %vm1135_vm14 = vcmp.eq.f32.partialorder %v1134_v16, 8.507059e+37 }
 0xec3   :  { %v1152_v43 = vor.u32 1.1754944e-38, %v1151_v33  ;;  %vm1150_vm15 = vcmp.eq.f32.partialorder %v1149_v37, 8.507059e+37 }
 0xec6   :  { %v3001_v55 = vpop.eup %3000 }
 0xec7   :  { %v3003_v17 = vpop.eup %3002  ;;  %v1126_v18 = vmul.f32 %v3001_v55, %v1123_v12  ;;  %vm1131_vm7 = vweird.f32 %v3001_v55 }
 0xec8   :  { %v1141_v19 = vmul.f32 %v3003_v17, %v1124_v14  ;;  %vm1146_vm8 = vweird.f32 %v3003_v17  ;;  %vm1132_vm12 = vmor %vm1130_vm10, %vm1131_vm7  ;;  %vm375_vm10 = vcmask 257024  }
 0xec9   :  { %v1127_v58 = vsub.f32 1.0, %v1126_v18  ;;  %vm1147_vm13 = vmor %vm1145_vm11, %vm1146_vm8  ;;  %v644_v18 = vpack.c.bf16 %v3616_v10, %v3616_v10 }
 0xeca   :  { %v1142_v21 = vsub.f32 1.0, %v1141_v19 }
 0xecb   :  { %v1128_v22 = vmul.f32 %v3001_v55, %v1127_v58 }
 0xecc   :  { %v1143_v23 = vmul.f32 %v3003_v17, %v1142_v21 }
 0xecd   :  { %v1129_v26 = vadd.f32 %v3001_v55, %v1128_v22 }
 0xece   :  { %v1144_v28 = vadd.f32 %v3003_v17, %v1143_v23 }
 0xecf   :  { %v1133_v40 = vsel %vm1132_vm12, %v3001_v55, %v1129_v26 }
 0xed0   :  { %v1148_v30 = vsel %vm1147_vm13, %v3003_v17, %v1144_v28  ;;  %v1138_v46 = vsel %vm1135_vm14, %v1137_v24, %v1133_v40 }
 0xed1   :  { %v1153_v34 = vsel %vm1150_vm15, %v1152_v43, %v1148_v30  ;;  %v1157_v48 = vmul.f32 %v1138_v46, %v3708_v47 }
 0xed2   :  { %v1181_v51 = vmul.f32 %v1153_v34, %v3703_v29 }
 0xf2e   :  { %v1160_v27 = vpop.permute.xlu0 %1159 }
 0xf2f   :  { %v1184_v35 = vpop.permute.xlu1 %1183  ;;  %v1162_v38 = vmul.f32 %v1160_v27, %v1138_v46 }
 0xf30   :  { %v1186_v8 = vmul.f32 %v1184_v35, %v1153_v34 }
 0xf31   :  { %1164 = vrot.lane.b32.xlu2 %v1162_v38, %s3289_s0 }
 0xf32   :  { %1188 = vrot.lane.b32.xlu0 %v1186_v8, %s3289_s0 }
 0xf8b   :  { %v1165_v5 = vpop.permute.xlu2 %1164 }
 0xf8c   :  { %v3731_v45 = vadd.f32 %v1165_v5, %v1157_v48 }
 0xf8e   :  { %3004 = vtanh.f32 %v3731_v45 }
 0xf94   :  { %v3005_v44 = vpop.eup %3004 }
 0xf95   :  { %1170 = vrot.lane.b32.xlu1 %v3005_v44, %s3286_s29 }
 0xfa4   :  { %v1189_v53 = vpop.permute.xlu0 %1188 }
 0xfa5   :  { %v3736_v56 = vadd.f32 %v1189_v53, %v1181_v51 }
 0xfa7   :  { %3006 = vtanh.f32 %v3736_v56 }
 0xfad   :  { %v3007_v57 = vpop.eup %3006 }
 0xfae   :  { %1194 = vrot.lane.b32.xlu2 %v3007_v57, %s3286_s29 }
0x1007   :  { %v1171_v2 = vpop.permute.xlu1 %1170 }
0x1008   :  { %v1195_v47 = vpop.permute.xlu2 %1194  ;;  %v1173_v59 = vmul.f32 %v1171_v2, %v1138_v46 }
0x1009   :  { %v1197_v60 = vmul.f32 %v1195_v47, %v1153_v34  ;;  %v936_v47 = vpack.c.bf16 %v3686_v15, %v3686_v15 }
0x100a   :  { %1208 = vrot.lane.b32.xlu0 %v1173_v59, %s3289_s0 }
0x100b   :  { %1212 = vrot.lane.b32.xlu1 %v1197_v60, %s3286_s29  ;;  %v1198_v17 = vpack.c.bf16 %v1197_v60, %v1197_v60  ;;  %v805_v60 = vpack.c.bf16 %v3653_v42, %v3653_v42 }
0x107c   :  { %v1209_v62 = vpop.permute.xlu0 %1208 }
0x107d   :  { %v1213_v7 = vpop.permute.xlu1 %1212 }
0x107e   :  { %v1215_v29 = vsel %vm137_vm0, %v1209_v62, %v1213_v7 }
0x107f   :  { %v1216_v0 = vpack.c.bf16 %v1215_v29, %v1215_v29 }
0x1081   :  { %2689 = vmatmul.msk.bf16.vlgmr.msrb.gmra.mxu2 %vm281_vm9, %v1216_v0  ;;  %2690 = vmatmul.msk.bf16.vlgmr.msrb.gmra.mxu3 %vm281_vm9, %v1216_v0 }
0x1104   :  { %v1229_v61 = vpop.f32.mrf.mxu2  ;;  %v1242_v4 = vpop.f32.mrf.mxu3 }
0x1105   :  { %v1246_v9 = vadd.f32 %v1229_v61, %v177_v1  ;;  %v1247_v31 = vadd.f32 %v1242_v4, %v3517_v52  ;;  %v370_v52 = vpack.c.bf16 %v3546_v3, %v3546_v3  ;;  %v1174_v3 = vpack.c.bf16 %v1173_v59, %v1173_v59 }
0x1107   :  { %3008 = vtanh.f32 %v1246_v9  ;;  %v2692_v19 = vmul.f32 -1.442695, %v1247_v31  ;;  %v2691_v22 = vmul.f32 -1.442695, %v1246_v9 }
0x1108   :  { %3010 = vtanh.f32 %v1247_v31 }
0x1109   :  { %3012 = vpow2.f32 %v2692_v19 }
0x110c   :  { %v1231_v11 = vpop.f32.mrf.mxu2  ;;  %v1244_v12 = vpop.f32.mrf.mxu3 }
0x110d   :  { %v3009_v14 = vpop.eup %3008 }
0x110e   :  { %v3011_v55 = vpop.eup %3010  ;;  %1290 = vrot.lane.b32.xlu1 %v3009_v14, %s3286_s29 }
0x110f   :  { %1314 = vrot.lane.b32.xlu2 %v3011_v55, %s3286_s29  ;;  %v3013_v58 = vpop.eup %3012 }
0x1110   :  { %v1255_v21 = vadd.f32 1.0, %v3013_v58 }
0x1112   :  { %3014 = vrcp.f32 %v1255_v21  ;;  %v1282_v25 = vand.u32 2147483648, %v1255_v21  ;;  %vm1276_vm2 = vweird.f32 %v1255_v21  ;;  %v1280_v16 = vand.u32 2147483647, %v1255_v21 }
0x1113   :  { %3016 = vpow2.f32 %v2691_v22 }
0x1114   :  { %v1283_v40 = vor.u32 1.1754944e-38, %v1282_v25  ;;  %vm1281_vm4 = vcmp.eq.f32.partialorder %v1280_v16, 8.507059e+37  ;;  %v2877_v25 = vld [vmem:[#allocation10 + $0x24] sm:$0xf0] }
0x1116   :  { %1200 = vrot.lane.b32.xlu1 %v1198_v17, %s3289_s0 }
0x1118   :  { %v3015_v6 = vpop.eup %3014 }
0x1119   :  { %v1272_v23 = vmul.f32 %v3015_v6, %v1255_v21  ;;  %v3017_v26 = vpop.eup %3016  ;;  %vm1277_vm1 = vweird.f32 %v3015_v6 }
0x111a   :  { %v1254_v32 = vadd.f32 1.0, %v3017_v26  ;;  %vm1278_vm3 = vmor %vm1276_vm2, %vm1277_vm1  ;;  %v2751_v26 = vld [vmem:[#allocation8 + $0x30] sm:$0xf] }
0x111b   :  { %v1273_v10 = vsub.f32 1.0, %v1272_v23  ;;  %v2870_v23 = vld [vmem:[#allocation8 + $0x34] sm:$0xf] }
0x111c   :  { %3018 = vrcp.f32 %v1254_v32  ;;  %v1267_v8 = vand.u32 2147483648, %v1254_v32  ;;  %vm1261_vm6 = vweird.f32 %v1254_v32  ;;  %v1265_v48 = vand.u32 2147483647, %v1254_v32 }
0x111d   :  { %v1274_v28 = vmul.f32 %v3015_v6, %v1273_v10  ;;  %v2753_v10 = vld [vmem:[#allocation8 + $0x38] sm:$0xf0] }
0x111e   :  { %1069 = vrot.lane.b32.xlu1 %v1067_v54, %s3289_s0  ;;  %v1268_v44 = vor.u32 1.1754944e-38, %v1267_v8  ;;  %vm1266_vm8 = vcmp.eq.f32.partialorder %v1265_v48, 8.507059e+37  ;;  %v2737_v8 = vld [vmem:[#allocation8 + $0x18] sm:$0xf0]  ;;  %v2735_v48 = vld [vmem:[#allocation8 + $0x10] sm:$0xf] }
0x111f   :  { %v1275_v33 = vadd.f32 %v3015_v6, %v1274_v28  ;;  %v2756_v28 = vor.u32 %v2870_v23, %v2753_v10 }
0x1121   :  { %v1279_v37 = vsel %vm1278_vm3, %v3015_v6, %v1275_v33  ;;  %v2879_v6 = vld [vmem:[#allocation10 + $0x34] sm:$0xf0]  ;;  %v2783_v33 = vld [vmem:[#allocation10 + $0x20] sm:$0xf]  ;;  %1506 = vmatpush.bf16.msrb.mxu1 %v2756_v28 }
0x1122   :  { %v1284_v24 = vsel %vm1281_vm4, %v1283_v40, %v1279_v37  ;;  %v3019_v43 = vpop.eup %3018  ;;  %v3813_v37 = vor.u32 %v2877_v25, %v2783_v33  ;;  %v2868_v40 = vld [vmem:[#allocation8 + $0x24] sm:$0xf] }
0x1123   :  { %v1257_v46 = vmul.f32 %v3019_v43, %v1254_v32  ;;  %vm1262_vm5 = vweird.f32 %v3019_v43  ;;  %v1312_v42 = vmul.f32 %v1284_v24, %v3736_v56  ;;  %v2871_v32 = vld [vmem:[#allocation8 + $0x34] sm:$0xf0] }
0x1124   :  { %vm1263_vm7 = vmor %vm1261_vm6, %vm1262_vm5  ;;  %v2752_v16 = vor.u32 %v2871_v32, %v2751_v26  ;;  %v1419_v26 = vld [vmem:[%s4120_s6] sm:$0x3] }
0x1125   :  { %v1258_v35 = vsub.f32 1.0, %v1257_v46  ;;  %v2775_v46 = vld [vmem:[#allocation10 + $0x10] sm:$0xf]  ;;  %v3889_v28 = vperm.slane %v1419_v26, 0  ;;  %v1422_v32 = vperm.slane %v1419_v26, 1 }
0x1126   :  { %372 = vrot.lane.b32.xlu1 %v370_v52, %s3289_s0  ;;  %v507_v52 = vpack.c.bf16 %v3581_v20, %v3581_v20  ;;  %1477 = vmatpush.bf16.msrb.mxu0 %v2752_v16 }
0x1127   :  { %v1259_v34 = vmul.f32 %v3019_v43, %v1258_v35  ;;  %v2875_v35 = vld [vmem:[#allocation10 + $0x14] sm:$0xf0] }
0x1129   :  { %v1260_v38 = vadd.f32 %v3019_v43, %v1259_v34 }
0x112b   :  { %v1264_v5 = vsel %vm1263_vm7, %v3019_v43, %v1260_v38  ;;  %v2866_v38 = vld [vmem:[#allocation8 + $0x14] sm:$0xf] }
0x112c   :  { %v1269_v53 = vsel %vm1266_vm8, %v1268_v44, %v1264_v5  ;;  %v2867_v5 = vld [vmem:[#allocation8 + $0x14] sm:$0xf0] }
0x112d   :  { %v1288_v9 = vmul.f32 %v1269_v53, %v3731_v45  ;;  %v668_v45 = vpack.c.bf16 %v3618_v36, %v3618_v36  ;;  %v1043_v36 = vpack.c.bf16 %v3712_v49, %v3712_v49  ;;  %v2791_v49 = vld [vmem:[#allocation10 + $0x30] sm:$0xf] }
0x112e   :  { %396 = vrot.lane.b32.xlu1 %v394_v13, %s3289_s0  ;;  %v531_v13 = vpack.c.bf16 %v3583_v63, %v3583_v63  ;;  %v3810_v22 = vor.u32 %v2879_v6, %v2791_v49 }
0x1130   :  { %1603 = vmatpush.bf16.msra.mxu2 %v3810_v22 }
0x1134   :  { %1604 = vmatpush.bf16.msra.mxu2 %v3813_v37 }
0x1136   :  { %646 = vrot.lane.b32.xlu1 %v644_v18, %s3289_s0  ;;  %v781_v18 = vpack.c.bf16 %v3651_v41, %v3651_v41 }
0x113e   :  { %914 = vrot.lane.b32.xlu1 %v912_v50, %s3289_s0 }
0x1146   :  { %1176 = vrot.lane.b32.xlu1 %v1174_v3, %s3289_s0 }
0x1169   :  { %v1315_v30 = vpop.permute.xlu2 %1314 }
0x116a   :  { %v1317_v27 = vmul.f32 %v1315_v30, %v1284_v24  ;;  %v2745_v30 = vld [vmem:[#allocation8 + $0x28] sm:$0xf0] }
0x116b   :  { %v2748_v43 = vor.u32 %v2868_v40, %v2745_v30 }
0x116c   :  { %1319 = vrot.lane.b32.xlu0 %v1317_v27, %s3289_s0  ;;  %v2869_v27 = vld [vmem:[#allocation8 + $0x24] sm:$0xf0] }
0x116d   :  { %1507 = vmatpush.bf16.msrb.mxu1 %v2748_v43 }
0x1180   :  { %v1291_v51 = vpop.permute.xlu1 %1290 }
0x1181   :  { %v1293_v57 = vmul.f32 %v1291_v51, %v1269_v53 }
0x1183   :  { %1295 = vrot.lane.b32.xlu0 %v1293_v57, %s3289_s0  ;;  %v2740_v57 = vor.u32 %v2866_v38, %v2737_v8 }
0x1185   :  { %1508 = vmatpush.bf16.msrb.mxu1 %v2740_v57 }
0x1188   :  { %v1201_v2 = vpop.permute.xlu1 %1200 }
0x1189   :  { %1204 = vst.msk [vmem:[#allocation4 + $0x4] sm:$0xf] %vm375_vm10, %v1201_v2  ;;  %v2767_v2 = vld [vmem:[#allocation10] sm:$0xf] }
0x118b   :  { %938 = vrot.lane.b32.xlu0 %v936_v47, %s3289_s0  ;;  %v2873_v47 = vld [vmem:[#allocation10 + $0x4] sm:$0xf0] }
0x1190   :  { %v1070_v59 = vpop.permute.xlu1 %1069 }
0x1191   :  { %1073 = vst.msk [vmem:[#allocation4 + $0x8] sm:$0xf] %vm375_vm10, %v1070_v59  ;;  %v2736_v59 = vor.u32 %v2867_v5, %v2735_v48 }
0x1193   :  { %807 = vrot.lane.b32.xlu0 %v805_v60, %s3289_s0  ;;  %v2864_v60 = vld [vmem:[#allocation8 + $0x4] sm:$0xf] }
0x1198   :  { %v373_v62 = vpop.permute.xlu1 %372 }
0x1199   :  { %376 = vst.msk [vmem:[#allocation3] sm:$0xf] %vm375_vm10, %v373_v62  ;;  %v2729_v62 = vld [vmem:[#allocation8 + $0x8] sm:$0xf0] }
0x11a0   :  { %v397_v7 = vpop.permute.xlu1 %396 }
0x11a1   :  { %400 = vst.msk [vmem:[#allocation4 + $0x1c] sm:$0xf] %vm375_vm10, %v397_v7  ;;  %v2727_v7 = vld [vmem:[#allocation8] sm:$0xf] }
0x11a8   :  { %v647_v29 = vpop.permute.xlu1 %646 }
0x11a9   :  { %650 = vst.msk [vmem:[#allocation3 + $0x8] sm:$0xf] %vm375_vm10, %v647_v29  ;;  %v2865_v29 = vld [vmem:[#allocation8 + $0x4] sm:$0xf0] }
0x11b0   :  { %v915_v15 = vpop.permute.xlu1 %914 }
0x11b1   :  { %918 = vst.msk [vmem:[#allocation3 + $0x10] sm:$0xf] %vm375_vm10, %v915_v15  ;;  %v3821_v15 = vor.u32 %v2873_v47, %v2767_v2 }
0x11b8   :  { %v1177_v0 = vpop.permute.xlu1 %1176 }
0x11b9   :  { %1180 = vst.msk [vmem:[#allocation3 + $0x18] sm:$0xf] %vm375_vm10, %v1177_v0  ;;  %v2732_v0 = vor.u32 %v2864_v60, %v2729_v62 }
0x11bb   :  { %1509 = vmatpush.bf16.msrb.mxu1 %v2732_v0 }
0x11de   :  { %v1320_v1 = vpop.permute.xlu0 %1319 }
0x11df   :  { %v1322_v61 = vadd.f32 %v1320_v1, %v1312_v42  ;;  %v2728_v42 = vor.u32 %v2865_v29, %v2727_v7 }
0x11e1   :  { %3020 = vtanh.f32 %v1322_v61 }
0x11e7   :  { %v3021_v4 = vpop.eup %3020 }
0x11e8   :  { %1325 = vrot.lane.b32.xlu2 %v3021_v4, %s3286_s29 }
0x11f5   :  { %v1296_v31 = vpop.permute.xlu0 %1295 }
0x11f6   :  { %v1298_v11 = vadd.f32 %v1296_v31, %v1288_v9  ;;  %v2878_v31 = vld [vmem:[#allocation10 + $0x34] sm:$0xf] }
0x11f8   :  { %3022 = vtanh.f32 %v1298_v11  ;;  %v2793_v11 = vld [vmem:[#allocation10 + $0x38] sm:$0xf0] }
0x11fd   :  { %v939_v12 = vpop.permute.xlu0 %938 }
0x11fe   :  { %v3023_v14 = vpop.eup %3022  ;;  %942 = vst.msk [vmem:[#allocation4 + $0xc] sm:$0xf] %vm375_vm10, %v939_v12  ;;  %v3841_v12 = vor.u32 %v2878_v31, %v2793_v11 }
0x11ff   :  { %1301 = vrot.lane.b32.xlu0 %v3023_v14, %s3286_s29 }
0x1200   :  { %1616 = vmatpush.bf16.msra.mxu3 %v3841_v12  ;;  %2088 = vmatpush.bf16.msra.mxu1 %v3841_v12 }
0x1205   :  { %v808_v55 = vpop.permute.xlu0 %807  ;;  %v2861_v21 = vld [vmem:[#allocation4 + $0x8] sm:$0xff] }
0x1206   :  { %811 = vst.msk [vmem:[#allocation4 + $0x10] sm:$0xf] %vm375_vm10, %v808_v55 }
0x1242   :  { %v1326_v56 = vpop.permute.xlu2 %1325 }
0x1243   :  { %v1328_v17 = vmul.f32 %v1326_v56, %v1284_v24  ;;  %v2743_v24 = vld [vmem:[#allocation8 + $0x20] sm:$0xf] }
0x1244   :  { %v2744_v34 = vor.u32 %v2869_v27, %v2743_v24 }
0x1245   :  { %v1329_v54 = vpack.c.bf16 %v1328_v17, %v1328_v17  ;;  %v2876_v17 = vld [vmem:[#allocation10 + $0x24] sm:$0xf] }
0x1246   :  { %1478 = vmatpush.bf16.msrb.mxu0 %v2744_v34 }
0x1247   :  { %1331 = vrot.lane.b32.xlu2 %v1329_v54, %s3289_s0  ;;  %v2785_v54 = vld [vmem:[#allocation10 + $0x28] sm:$0xf0] }
0x124a   :  { %1479 = vmatpush.bf16.msrb.mxu0 %v2736_v59 }
0x124e   :  { %1480 = vmatpush.bf16.msrb.mxu0 %v2728_v42 }
0x124f   :  { %670 = vrot.lane.b32.xlu2 %v668_v45, %s3289_s0  ;;  %v3848_v45 = vor.u32 %v2876_v17, %v2785_v54 }
0x1251   :  { %1617 = vmatpush.bf16.msra.mxu3 %v3848_v45  ;;  %2089 = vmatpush.bf16.msra.mxu1 %v3848_v45 }
0x1252   :  { %2075 = vmatpush.bf16.msra.mxu0 %v3810_v22 }
0x1256   :  { %2076 = vmatpush.bf16.msra.mxu0 %v3813_v37 }
0x1257   :  { %509 = vrot.lane.b32.xlu2 %v507_v52, %s3289_s0  ;;  %v2874_v52 = vld [vmem:[#allocation10 + $0x14] sm:$0xf] }
0x125f   :  { %533 = vrot.lane.b32.xlu2 %v531_v13, %s3289_s0  ;;  %v2777_v13 = vld [vmem:[#allocation10 + $0x18] sm:$0xf0] }
0x1267   :  { %783 = vrot.lane.b32.xlu2 %v781_v18, %s3289_s0  ;;  %v3852_v18 = vor.u32 %v2874_v52, %v2777_v13 }
0x1269   :  { %1618 = vmatpush.bf16.msra.mxu3 %v3852_v18  ;;  %2090 = vmatpush.bf16.msra.mxu1 %v3852_v18 }
0x126f   :  { %1045 = vrot.lane.b32.xlu2 %v1043_v36, %s3289_s0  ;;  %v2872_v36 = vld [vmem:[#allocation10 + $0x4] sm:$0xf] }
0x1271   :  { %v1302_v50 = vpop.permute.xlu0 %1301 }
0x1272   :  { %v1304_v19 = vmul.f32 %v1302_v50, %v1269_v53  ;;  %v3816_v53 = vor.u32 %v2875_v35, %v2775_v46  ;;  %v2769_v50 = vld [vmem:[#allocation10 + $0x8] sm:$0xf0] }
0x1274   :  { %v1305_v20 = vpack.c.bf16 %v1304_v19, %v1304_v19  ;;  %1605 = vmatpush.bf16.msra.mxu2 %v3816_v53  ;;  %2077 = vmatpush.bf16.msra.mxu0 %v3816_v53  ;;  %v3857_v19 = vor.u32 %v2872_v36, %v2769_v50 }
0x1276   :  { %1619 = vmatpush.bf16.msra.mxu3 %v3857_v19  ;;  %2091 = vmatpush.bf16.msra.mxu1 %v3857_v19 }
0x1277   :  { %1307 = vrot.lane.b32.xlu2 %v1305_v20, %s3289_s0 }
0x1278   :  { %1606 = vmatpush.bf16.msra.mxu2 %v3821_v15  ;;  %2078 = vmatpush.bf16.msra.mxu0 %v3821_v15 }
0x1279   :  { %1620 = vmatmul.bf16.vlgmr.msra.gmra.mxu3 %v3288_v39 }
0x127a   :  { %1735 = vmatpush.bf16.msrb.mxu3 %v3841_v12 }
0x127b   :  { %1607 = vmatmul.bf16.vlgmr.msra.gmra.mxu2 %v3288_v39 }
0x127c   :  { %1722 = vmatpush.bf16.msrb.mxu2 %v3810_v22 }
0x127e   :  { %1736 = vmatpush.bf16.msrb.mxu3 %v3848_v45 }
0x1280   :  { %1723 = vmatpush.bf16.msrb.mxu2 %v3813_v37 }
0x1282   :  { %1737 = vmatpush.bf16.msrb.mxu3 %v3852_v18 }
0x1284   :  { %1724 = vmatpush.bf16.msrb.mxu2 %v3816_v53 }
0x1286   :  { %1738 = vmatpush.bf16.msrb.mxu3 %v3857_v19 }
0x1288   :  { %1725 = vmatpush.bf16.msrb.mxu2 %v3821_v15 }
0x128a   :  { %1854 = vmatpush.bf16.msra.mxu3 %v3841_v12 }
0x128c   :  { %1841 = vmatpush.bf16.msra.mxu2 %v3810_v22 }
0x128e   :  { %1855 = vmatpush.bf16.msra.mxu3 %v3848_v45 }
0x1290   :  { %1842 = vmatpush.bf16.msra.mxu2 %v3813_v37 }
0x1292   :  { %1856 = vmatpush.bf16.msra.mxu3 %v3852_v18 }
0x1294   :  { %1843 = vmatpush.bf16.msra.mxu2 %v3816_v53 }
0x1296   :  { %1857 = vmatpush.bf16.msra.mxu3 %v3857_v19 }
0x1298   :  { %1844 = vmatpush.bf16.msra.mxu2 %v3821_v15 }
0x12a1   :  { %v1332_v3 = vpop.permute.xlu2 %1331 }
0x12a2   :  { %1334 = vst.msk [vmem:[#allocation4] sm:$0xf] %vm375_vm10, %v1332_v3 }
0x12a9   :  { %v671_v63 = vpop.permute.xlu2 %670  ;;  %v2860_v58 = vld [vmem:[#allocation4] sm:$0xff] }
0x12aa   :  { %674 = vst.msk [vmem:[#allocation4 + $0x14] sm:$0xf] %vm375_vm10, %v671_v63  ;;  %1391 = vrot.lane.b32.xlu0 %v2860_v58, %s3289_s0 }
0x12b1   :  { %v510_v41 = vpop.permute.xlu2 %509  ;;  %v2862_v51 = vld [vmem:[#allocation4 + $0x10] sm:$0xff] }
0x12b2   :  { %513 = vst.msk [vmem:[#allocation3 + $0x4] sm:$0xf] %vm375_vm10, %v510_v41  ;;  %1393 = vrot.lane.b32.xlu0 %v2861_v21, %s3289_s0 }
0x12b9   :  { %v534_v44 = vpop.permute.xlu2 %533  ;;  %v2856_v14 = vld [vmem:[#allocation3] sm:$0xff] }
0x12ba   :  { %537 = vst.msk [vmem:[#allocation4 + $0x18] sm:$0xf] %vm375_vm10, %v534_v44  ;;  %1395 = vrot.lane.b32.xlu0 %v2862_v51, %s3289_s0 }
0x12c1   :  { %v784_v1 = vpop.permute.xlu2 %783  ;;  %v2863_v61 = vld [vmem:[#allocation4 + $0x18] sm:$0xff] }
0x12c2   :  { %787 = vst.msk [vmem:[#allocation3 + $0xc] sm:$0xf] %vm375_vm10, %v784_v1  ;;  %1397 = vrot.lane.b32.xlu0 %v2863_v61, %s3289_s0 }
0x12c9   :  { %v1046_v4 = vpop.permute.xlu2 %1045  ;;  %v2857_v3 = vld [vmem:[#allocation3 + $0x8] sm:$0xff] }
0x12ca   :  { %1049 = vst.msk [vmem:[#allocation3 + $0x14] sm:$0xf] %vm375_vm10, %v1046_v4 }
0x12d1   :  { %v1308_v9 = vpop.permute.xlu2 %1307  ;;  %v2858_v58 = vld [vmem:[#allocation3 + $0x10] sm:$0xff] }
0x12d2   :  { %1311 = vst.msk [vmem:[#allocation3 + $0x1c] sm:$0xf] %vm375_vm10, %v1308_v9 }
0x12d9   :  { %v2859_v49 = vld [vmem:[#allocation3 + $0x18] sm:$0xff] }
0x12fc   :  { %v1621_v8 = vpop.f32.mrf.mxu3 }
0x12fe   :  { %v1608_v23 = vpop.f32.mrf.mxu2 }
0x1304   :  { %v1623_v51 = vpop.f32.mrf.mxu3 }
0x1306   :  { %v1610_v10 = vpop.f32.mrf.mxu2 }
0x131c   :  { %v1392_v55 = vpop.permute.xlu0 %1391 }
0x131d   :  { %v1401_v56 = vsel %vm137_vm0, %v2856_v14, %v1392_v55 }
0x131e   :  { %2757 = vmatmul.msk.bf16.vlgmr.msrb.gmra.mxu0 %vm281_vm9, %v1401_v56  ;;  %2761 = vmatmul.msk.bf16.vlgmr.msrb.gmra.mxu1 %vm281_vm9, %v1401_v56 }
0x131f   :  { %2305 = vmatpush.bf16.msrb.mxu0 %v3810_v22  ;;  %2318 = vmatpush.bf16.msrb.mxu1 %v3841_v12 }
0x1323   :  { %2306 = vmatpush.bf16.msrb.mxu0 %v3813_v37  ;;  %2319 = vmatpush.bf16.msrb.mxu1 %v3848_v45 }
0x1324   :  { %v1394_v20 = vpop.permute.xlu0 %1393 }
0x1325   :  { %v1404_v63 = vsel %vm137_vm0, %v2857_v3, %v1394_v20 }
0x1327   :  { %2307 = vmatpush.bf16.msrb.mxu0 %v3816_v53  ;;  %2320 = vmatpush.bf16.msrb.mxu1 %v3852_v18 }
0x132b   :  { %2308 = vmatpush.bf16.msrb.mxu0 %v3821_v15  ;;  %2321 = vmatpush.bf16.msrb.mxu1 %v3857_v19 }
0x132c   :  { %v1396_v39 = vpop.permute.xlu0 %1395 }
0x132d   :  { %v1407_v41 = vsel %vm137_vm0, %v2858_v58, %v1396_v39 }
0x132e   :  { %2758 = vmatmul.msk.bf16.gmra.mxu0 %vm281_vm9, %v1404_v63  ;;  %2762 = vmatmul.msk.bf16.gmra.mxu1 %vm281_vm9, %v1404_v63 }
0x1334   :  { %v1398_v21 = vpop.permute.xlu0 %1397 }
0x1335   :  { %v1410_v6 = vsel %vm137_vm0, %v2859_v49, %v1398_v21 }
0x133e   :  { %2759 = vmatmul.msk.bf16.gmra.mxu0 %vm281_vm9, %v1407_v41  ;;  %2763 = vmatmul.msk.bf16.gmra.mxu1 %vm281_vm9, %v1407_v41 }
0x134e   :  { %2760 = vmatmul.msk.bf16.gmra.mxu0 %vm281_vm9, %v1410_v6  ;;  %2764 = vmatmul.msk.bf16.gmra.mxu1 %vm281_vm9, %v1410_v6 }
0x139b   :  { %v1482_v33 = vpop.f32.mrf.mxu0  ;;  %v1511_v25 = vpop.f32.mrf.mxu1 }
0x139c   :  { %v1483_v16 = vadd.f32 %v1482_v33, %v3889_v28  ;;  %v3892_v40 = vadd.f32 %v1511_v25, %v1422_v32 }
0x139e   :  { %v1625_v30 = vadd.f32 %v1608_v23, %v1483_v16 }
0x13a0   :  { %3024 = vtanh.f32 %v1625_v30  ;;  %v2797_v11 = vmul.f32 -1.442695, %v1625_v30 }
0x13a3   :  { %v3894_v24 = vpop.f32.mrf.mxu0  ;;  %v1513_v43 = vpop.f32.mrf.mxu1 }
0x13a4   :  { %v3896_v27 = vadd.f32 %v1513_v43, %v1422_v32 }
0x13a6   :  { %v3025_v46 = vpop.eup %3024 }
0x13a7   :  { %1669 = vrot.lane.b32.xlu1 %v3025_v46, %s3286_s29 }
0x13ab   :  { %v3899_v35 = vpop.f32.mrf.mxu0  ;;  %v1516_v34 = vpop.f32.mrf.mxu1 }
0x13ac   :  { %v3901_v38 = vadd.f32 %v1516_v34, %v1422_v32 }
0x13b3   :  { %v3903_v48 = vpop.f32.mrf.mxu0  ;;  %v1518_v5 = vpop.f32.mrf.mxu1 }
0x13b4   :  { %v3905_v44 = vadd.f32 %v1518_v5, %v1422_v32 }
0x13bb   :  { %v3907_v57 = vpop.f32.mrf.mxu0  ;;  %v1521_v2 = vpop.f32.mrf.mxu1 }
0x13bc   :  { %v3909_v47 = vadd.f32 %v1521_v2, %v1422_v32 }
0x13c3   :  { %v1494_v59 = vpop.f32.mrf.mxu0  ;;  %v1523_v60 = vpop.f32.mrf.mxu1 }
0x13c4   :  { %v3912_v62 = vadd.f32 %v1494_v59, %v3889_v28  ;;  %v3914_v7 = vadd.f32 %v1523_v60, %v1422_v32 }
0x13cb   :  { %v1497_v29 = vpop.f32.mrf.mxu0  ;;  %v1526_v0 = vpop.f32.mrf.mxu1 }
0x13cc   :  { %v3917_v42 = vadd.f32 %v1497_v29, %v3889_v28  ;;  %v3919_v1 = vadd.f32 %v1526_v0, %v1422_v32 }
0x13d3   :  { %v1528_v61 = vpop.f32.mrf.mxu1 }
0x13d4   :  { %v1529_v4 = vadd.f32 %v1528_v61, %v1422_v32 }
0x13d6   :  { %v1626_v9 = vadd.f32 %v1621_v8, %v1529_v4 }
0x13d8   :  { %3026 = vtanh.f32 %v1626_v9  ;;  %v2798_v52 = vmul.f32 -1.442695, %v1626_v9 }
0x13d9   :  { %3028 = vpow2.f32 %v2797_v11 }
0x13de   :  { %v3027_v31 = vpop.eup %3026 }
0x13df   :  { %1686 = vrot.lane.b32.xlu2 %v3027_v31, %s3286_s29  ;;  %v3029_v14 = vpop.eup %3028 }
0x13e0   :  { %v1633_v55 = vadd.f32 1.0, %v3029_v14 }
0x13e2   :  { %3030 = vrcp.f32 %v1633_v55  ;;  %v1646_v50 = vand.u32 2147483648, %v1633_v55  ;;  %vm1640_vm12 = vweird.f32 %v1633_v55  ;;  %v1644_v20 = vand.u32 2147483647, %v1633_v55 }
0x13e3   :  { %3032 = vpow2.f32 %v2798_v52 }
0x13e4   :  { %v1647_v39 = vor.u32 1.1754944e-38, %v1646_v50  ;;  %vm1645_vm14 = vcmp.eq.f32.partialorder %v1644_v20, 8.507059e+37 }
0x13e8   :  { %v3031_v56 = vpop.eup %3030 }
0x13e9   :  { %v1636_v17 = vmul.f32 %v3031_v56, %v1633_v55  ;;  %vm1641_vm11 = vweird.f32 %v3031_v56  ;;  %v3033_v3 = vpop.eup %3032 }
0x13ea   :  { %vm1642_vm13 = vmor %vm1640_vm12, %vm1641_vm11  ;;  %v1634_v58 = vadd.f32 1.0, %v3033_v3 }
0x13eb   :  { %v1637_v54 = vsub.f32 1.0, %v1636_v17  ;;  %v1485_v17 = vadd.f32 %v3894_v24, %v3889_v28 }
0x13ec   :  { %3034 = vrcp.f32 %v1634_v58  ;;  %v1661_v33 = vand.u32 2147483648, %v1634_v58  ;;  %vm1655_vm1 = vweird.f32 %v1634_v58  ;;  %v1659_v25 = vand.u32 2147483647, %v1634_v58 }
0x13ed   :  { %v1638_v13 = vmul.f32 %v3031_v56, %v1637_v54 }
0x13ee   :  { %v1662_v30 = vor.u32 1.1754944e-38, %v1661_v33  ;;  %vm1660_vm3 = vcmp.eq.f32.partialorder %v1659_v25, 8.507059e+37 }
0x13ef   :  { %v1639_v36 = vadd.f32 %v3031_v56, %v1638_v13 }
0x13f1   :  { %v1643_v63 = vsel %vm1642_vm13, %v3031_v56, %v1639_v36 }
0x13f2   :  { %v1648_v41 = vsel %vm1645_vm14, %v1647_v39, %v1643_v63  ;;  %v3035_v6 = vpop.eup %3034 }
0x13f3   :  { %v1651_v23 = vmul.f32 %v3035_v6, %v1634_v58  ;;  %vm1656_vm15 = vweird.f32 %v3035_v6  ;;  %v1667_v8 = vmul.f32 0.0, %v1648_v41 }
0x13f4   :  { %vm1657_vm2 = vmor %vm1655_vm1, %vm1656_vm15 }
0x13f5   :  { %v1652_v10 = vsub.f32 1.0, %v1651_v23 }
0x13f7   :  { %v1653_v26 = vmul.f32 %v3035_v6, %v1652_v10 }
0x13f9   :  { %v1654_v32 = vadd.f32 %v3035_v6, %v1653_v26 }
0x13fb   :  { %v1658_v16 = vsel %vm1657_vm2, %v3035_v6, %v1654_v32 }
0x13fc   :  { %v1663_v46 = vsel %vm1660_vm3, %v1662_v30, %v1658_v16 }
0x13fd   :  { %v1684_v59 = vmul.f32 0.0, %v1663_v46 }
0x1419   :  { %v1670_v21 = vpop.permute.xlu1 %1669 }
0x141a   :  { %v1672_v49 = vmul.f32 %v1670_v21, %v1648_v41 }
0x141c   :  { %1674 = vrot.lane.b32.xlu0 %v1672_v49, %s3289_s0 }
0x1439   :  { %v1687_v43 = vpop.permute.xlu2 %1686 }
0x143a   :  { %v1689_v34 = vmul.f32 %v1687_v43, %v1663_v46 }
0x143c   :  { %1691 = vrot.lane.b32.xlu1 %v1689_v34, %s3289_s0 }
0x148e   :  { %v1675_v5 = vpop.permute.xlu0 %1674 }
0x148f   :  { %v3924_v51 = vadd.f32 %v1675_v5, %v1667_v8 }
0x1491   :  { %3036 = vtanh.f32 %v3924_v51 }
0x1497   :  { %v3037_v2 = vpop.eup %3036 }
0x1498   :  { %1680 = vrot.lane.b32.xlu2 %v3037_v2, %s3286_s29 }
0x14ae   :  { %v1692_v60 = vpop.permute.xlu1 %1691 }
0x14af   :  { %v3928_v29 = vadd.f32 %v1692_v60, %v1684_v59 }
0x14b1   :  { %3038 = vtanh.f32 %v3928_v29 }
0x14b7   :  { %v3039_v0 = vpop.eup %3038 }
0x14b8   :  { %1697 = vrot.lane.b32.xlu0 %v3039_v0, %s3286_s29 }
0x14f2   :  { %v1681_v61 = vpop.permute.xlu2 %1680 }
0x14f3   :  { %v1683_v4 = vmul.f32 %v1681_v61, %v1648_v41 }
0x14f5   :  { %1706 = vrot.lane.b32.xlu1 %v1683_v4, %s3289_s0 }
0x152a   :  { %v1698_v9 = vpop.permute.xlu0 %1697 }
0x152b   :  { %v1700_v31 = vmul.f32 %v1698_v9, %v1663_v46 }
0x152d   :  { %1710 = vrot.lane.b32.xlu2 %v1700_v31, %s3286_s29 }
0x1567   :  { %v1707_v11 = vpop.permute.xlu1 %1706 }
0x1587   :  { %v1711_v14 = vpop.permute.xlu2 %1710 }
0x1588   :  { %v1713_v55 = vsel %vm137_vm0, %v1707_v11, %v1711_v14 }
0x1589   :  { %v1714_v56 = vpack.c.bf16 %v1713_v55, %v1713_v55 }
0x158b   :  { %2799 = vmatmul.msk.bf16.vlgmr.msrb.gmra.mxu2 %vm281_vm9, %v1714_v56  ;;  %2800 = vmatmul.msk.bf16.vlgmr.msrb.gmra.mxu3 %vm281_vm9, %v1714_v56 }
0x158c   :  { %1960 = vmatpush.bf16.msrb.mxu2 %v3810_v22  ;;  %1973 = vmatpush.bf16.msrb.mxu3 %v3841_v12 }
0x1590   :  { %1961 = vmatpush.bf16.msrb.mxu2 %v3813_v37  ;;  %1974 = vmatpush.bf16.msrb.mxu3 %v3848_v45 }
0x1594   :  { %1962 = vmatpush.bf16.msrb.mxu2 %v3816_v53  ;;  %1975 = vmatpush.bf16.msrb.mxu3 %v3852_v18 }
0x1598   :  { %1963 = vmatpush.bf16.msrb.mxu2 %v3821_v15  ;;  %1976 = vmatpush.bf16.msrb.mxu3 %v3857_v19 }
0x160e   :  { %v1727_v54 = vpop.f32.mrf.mxu2  ;;  %v1740_v52 = vpop.f32.mrf.mxu3 }
0x160f   :  { %v1744_v13 = vadd.f32 %v1727_v54, %v1485_v17  ;;  %v1745_v36 = vadd.f32 %v1740_v52, %v3919_v1 }
0x1611   :  { %3040 = vtanh.f32 %v1744_v13  ;;  %v2801_v39 = vmul.f32 -1.442695, %v1744_v13  ;;  %v2802_v58 = vmul.f32 -1.442695, %v1745_v36 }
0x1612   :  { %3042 = vtanh.f32 %v1745_v36 }
0x1613   :  { %3044 = vpow2.f32 %v2801_v39 }
0x1614   :  { %3046 = vpow2.f32 %v2802_v58 }
0x1616   :  { %v1729_v50 = vpop.f32.mrf.mxu2  ;;  %v1742_v20 = vpop.f32.mrf.mxu3 }
0x1617   :  { %v3041_v3 = vpop.eup %3040 }
0x1618   :  { %v3043_v63 = vpop.eup %3042  ;;  %1788 = vrot.lane.b32.xlu0 %v3041_v3, %s3286_s29 }
0x1619   :  { %1805 = vrot.lane.b32.xlu1 %v3043_v63, %s3286_s29  ;;  %v3045_v24 = vpop.eup %3044 }
0x161a   :  { %v3047_v41 = vpop.eup %3046  ;;  %v1752_v21 = vadd.f32 1.0, %v3045_v24  ;;  %v1488_v24 = vadd.f32 %v3899_v35, %v3889_v28 }
0x161b   :  { %v1753_v49 = vadd.f32 1.0, %v3047_v41 }
0x161c   :  { %3048 = vrcp.f32 %v1752_v21  ;;  %v1765_v43 = vand.u32 2147483648, %v1752_v21  ;;  %vm1759_vm6 = vweird.f32 %v1752_v21  ;;  %v1763_v34 = vand.u32 2147483647, %v1752_v21 }
0x161d   :  { %3050 = vrcp.f32 %v1753_v49  ;;  %v1780_v46 = vand.u32 2147483648, %v1753_v49  ;;  %vm1774_vm7 = vweird.f32 %v1753_v49  ;;  %v1778_v8 = vand.u32 2147483647, %v1753_v49 }
0x161e   :  { %v1766_v59 = vor.u32 1.1754944e-38, %v1765_v43  ;;  %vm1764_vm11 = vcmp.eq.f32.partialorder %v1763_v34, 8.507059e+37 }
0x161f   :  { %v1781_v60 = vor.u32 1.1754944e-38, %v1780_v46  ;;  %vm1779_vm12 = vcmp.eq.f32.partialorder %v1778_v8, 8.507059e+37 }
0x1622   :  { %v3049_v1 = vpop.eup %3048 }
0x1623   :  { %v3051_v6 = vpop.eup %3050  ;;  %v1755_v23 = vmul.f32 %v3049_v1, %v1752_v21  ;;  %vm1760_vm4 = vweird.f32 %v3049_v1 }
0x1624   :  { %v1770_v10 = vmul.f32 %v3051_v6, %v1753_v49  ;;  %vm1775_vm5 = vweird.f32 %v3051_v6  ;;  %vm1761_vm8 = vmor %vm1759_vm6, %vm1760_vm4 }
0x1625   :  { %v1756_v26 = vsub.f32 1.0, %v1755_v23  ;;  %vm1776_vm10 = vmor %vm1774_vm7, %vm1775_vm5 }
0x1626   :  { %v1771_v32 = vsub.f32 1.0, %v1770_v10 }
0x1627   :  { %v1757_v33 = vmul.f32 %v3049_v1, %v1756_v26 }
0x1628   :  { %v1772_v25 = vmul.f32 %v3051_v6, %v1771_v32 }
0x1629   :  { %v1758_v16 = vadd.f32 %v3049_v1, %v1757_v33 }
0x162a   :  { %v1773_v30 = vadd.f32 %v3051_v6, %v1772_v25 }
0x162b   :  { %v1762_v5 = vsel %vm1761_vm8, %v3049_v1, %v1758_v16 }
0x162c   :  { %v1777_v2 = vsel %vm1776_vm10, %v3051_v6, %v1773_v30  ;;  %v1767_v61 = vsel %vm1764_vm11, %v1766_v59, %v1762_v5 }
0x162d   :  { %v1782_v9 = vsel %vm1779_vm12, %v1781_v60, %v1777_v2  ;;  %v1786_v14 = vmul.f32 %v1767_v61, %v3924_v51 }
0x162e   :  { %v1803_v54 = vmul.f32 %v1782_v9, %v3928_v29 }
0x168a   :  { %v1789_v0 = vpop.permute.xlu0 %1788 }
0x168b   :  { %v1806_v4 = vpop.permute.xlu1 %1805  ;;  %v1791_v31 = vmul.f32 %v1789_v0, %v1767_v61 }
0x168c   :  { %v1808_v11 = vmul.f32 %v1806_v4, %v1782_v9 }
0x168d   :  { %1793 = vrot.lane.b32.xlu2 %v1791_v31, %s3289_s0 }
0x168e   :  { %1810 = vrot.lane.b32.xlu0 %v1808_v11, %s3289_s0 }
0x16e7   :  { %v1794_v55 = vpop.permute.xlu2 %1793 }
0x16e8   :  { %v3953_v56 = vadd.f32 %v1794_v55, %v1786_v14 }
0x16ea   :  { %3052 = vtanh.f32 %v3953_v56 }
0x16f0   :  { %v3053_v17 = vpop.eup %3052 }
0x16f1   :  { %1799 = vrot.lane.b32.xlu1 %v3053_v17, %s3286_s29 }
0x1700   :  { %v1811_v52 = vpop.permute.xlu0 %1810 }
0x1701   :  { %v3958_v13 = vadd.f32 %v1811_v52, %v1803_v54 }
0x1703   :  { %3054 = vtanh.f32 %v3958_v13 }
0x1709   :  { %v3055_v36 = vpop.eup %3054 }
0x170a   :  { %1816 = vrot.lane.b32.xlu2 %v3055_v36, %s3286_s29 }
0x1763   :  { %v1800_v50 = vpop.permute.xlu1 %1799 }
0x1764   :  { %v1817_v51 = vpop.permute.xlu2 %1816  ;;  %v1802_v20 = vmul.f32 %v1800_v50, %v1767_v61 }
0x1765   :  { %v1819_v3 = vmul.f32 %v1817_v51, %v1782_v9 }
0x1766   :  { %1825 = vrot.lane.b32.xlu0 %v1802_v20, %s3289_s0 }
0x1767   :  { %1829 = vrot.lane.b32.xlu1 %v1819_v3, %s3286_s29 }
0x17d8   :  { %v1826_v63 = vpop.permute.xlu0 %1825 }
0x17d9   :  { %v1830_v39 = vpop.permute.xlu1 %1829 }
0x17da   :  { %v1832_v29 = vsel %vm137_vm0, %v1826_v63, %v1830_v39 }
0x17db   :  { %v1833_v58 = vpack.c.bf16 %v1832_v29, %v1832_v29 }
0x17dd   :  { %2803 = vmatmul.msk.bf16.vlgmr.msra.gmra.mxu2 %vm281_vm9, %v1833_v58  ;;  %2804 = vmatmul.msk.bf16.vlgmr.msra.gmra.mxu3 %vm281_vm9, %v1833_v58 }
0x17de   :  { %2203 = vmatpush.bf16.msra.mxu3 %v3841_v12  ;;  %2190 = vmatpush.bf16.msra.mxu2 %v3810_v22 }
0x17e2   :  { %2204 = vmatpush.bf16.msra.mxu3 %v3848_v45  ;;  %2191 = vmatpush.bf16.msra.mxu2 %v3813_v37 }
0x17e6   :  { %2205 = vmatpush.bf16.msra.mxu3 %v3852_v18  ;;  %2192 = vmatpush.bf16.msra.mxu2 %v3816_v53 }
0x17ea   :  { %2206 = vmatpush.bf16.msra.mxu3 %v3857_v19  ;;  %2193 = vmatpush.bf16.msra.mxu2 %v3821_v15 }
0x1860   :  { %v1846_v41 = vpop.f32.mrf.mxu2  ;;  %v1859_v21 = vpop.f32.mrf.mxu3 }
0x1861   :  { %v1863_v49 = vadd.f32 %v1846_v41, %v1488_v24  ;;  %v1864_v1 = vadd.f32 %v1859_v21, %v3914_v7 }
0x1863   :  { %3056 = vtanh.f32 %v1863_v49  ;;  %v2805_v32 = vmul.f32 -1.442695, %v1863_v49  ;;  %v2806_v16 = vmul.f32 -1.442695, %v1864_v1 }
0x1864   :  { %3058 = vtanh.f32 %v1864_v1 }
0x1865   :  { %3060 = vpow2.f32 %v2805_v32  ;;  %v1490_v32 = vadd.f32 %v3903_v48, %v3889_v28 }
0x1868   :  { %v1848_v6 = vpop.f32.mrf.mxu2  ;;  %v1861_v23 = vpop.f32.mrf.mxu3 }
0x1869   :  { %v3057_v10 = vpop.eup %3056 }
0x186a   :  { %v3059_v26 = vpop.eup %3058  ;;  %1907 = vrot.lane.b32.xlu2 %v3057_v10, %s3286_s29 }
0x186b   :  { %1924 = vrot.lane.b32.xlu0 %v3059_v26, %s3286_s29  ;;  %v3061_v33 = vpop.eup %3060 }
0x186c   :  { %v1871_v25 = vadd.f32 1.0, %v3061_v33 }
0x186e   :  { %3062 = vrcp.f32 %v1871_v25  ;;  %v1884_v5 = vand.u32 2147483648, %v1871_v25  ;;  %vm1878_vm14 = vweird.f32 %v1871_v25  ;;  %v1882_v2 = vand.u32 2147483647, %v1871_v25 }
0x186f   :  { %3064 = vpow2.f32 %v2806_v16 }
0x1870   :  { %v1885_v60 = vor.u32 1.1754944e-38, %v1884_v5  ;;  %vm1883_vm1 = vcmp.eq.f32.partialorder %v1882_v2, 8.507059e+37 }
0x1874   :  { %v3063_v35 = vpop.eup %3062 }
0x1875   :  { %v1874_v30 = vmul.f32 %v3063_v35, %v1871_v25  ;;  %v3065_v46 = vpop.eup %3064  ;;  %vm1879_vm13 = vweird.f32 %v3063_v35 }
0x1876   :  { %v1872_v34 = vadd.f32 1.0, %v3065_v46  ;;  %vm1880_vm15 = vmor %vm1878_vm14, %vm1879_vm13 }
0x1877   :  { %v1875_v7 = vsub.f32 1.0, %v1874_v30 }
0x1878   :  { %3066 = vrcp.f32 %v1872_v34  ;;  %v1899_v17 = vand.u32 2147483648, %v1872_v34  ;;  %vm1893_vm3 = vweird.f32 %v1872_v34  ;;  %v1897_v54 = vand.u32 2147483647, %v1872_v34 }
0x1879   :  { %v1876_v43 = vmul.f32 %v3063_v35, %v1875_v7 }
0x187a   :  { %v1900_v36 = vor.u32 1.1754944e-38, %v1899_v17  ;;  %vm1898_vm5 = vcmp.eq.f32.partialorder %v1897_v54, 8.507059e+37 }
0x187b   :  { %v1877_v8 = vadd.f32 %v3063_v35, %v1876_v43 }
0x187d   :  { %v1881_v59 = vsel %vm1880_vm15, %v3063_v35, %v1877_v8 }
0x187e   :  { %v1886_v61 = vsel %vm1883_vm1, %v1885_v60, %v1881_v59  ;;  %v3067_v9 = vpop.eup %3066 }
0x187f   :  { %v1889_v31 = vmul.f32 %v3067_v9, %v1872_v34  ;;  %vm1894_vm2 = vweird.f32 %v3067_v9  ;;  %v1905_v3 = vmul.f32 %v1886_v61, %v3953_v56 }
0x1880   :  { %vm1895_vm4 = vmor %vm1893_vm3, %vm1894_vm2 }
0x1881   :  { %v1890_v11 = vsub.f32 1.0, %v1889_v31 }
0x1883   :  { %v1891_v14 = vmul.f32 %v3067_v9, %v1890_v11 }
0x1885   :  { %v1892_v55 = vadd.f32 %v3067_v9, %v1891_v14 }
0x1887   :  { %v1896_v52 = vsel %vm1895_vm4, %v3067_v9, %v1892_v55 }
0x1888   :  { %v1901_v51 = vsel %vm1898_vm5, %v1900_v36, %v1896_v52 }
0x1889   :  { %v1922_v63 = vmul.f32 %v1901_v51, %v3958_v13 }
0x18c4   :  { %v1908_v0 = vpop.permute.xlu2 %1907 }
0x18c5   :  { %v1910_v4 = vmul.f32 %v1908_v0, %v1886_v61 }
0x18c7   :  { %1912 = vrot.lane.b32.xlu1 %v1910_v4, %s3289_s0 }
0x18dd   :  { %v1925_v50 = vpop.permute.xlu0 %1924 }
0x18de   :  { %v1927_v20 = vmul.f32 %v1925_v50, %v1901_v51 }
0x18e0   :  { %1929 = vrot.lane.b32.xlu2 %v1927_v20, %s3289_s0 }
0x1939   :  { %v1913_v39 = vpop.permute.xlu1 %1912 }
0x193a   :  { %v1930_v29 = vpop.permute.xlu2 %1929  ;;  %v3984_v58 = vadd.f32 %v1913_v39, %v1905_v3 }
0x193b   :  { %v3986_v24 = vadd.f32 %v1930_v29, %v1922_v63 }
0x193c   :  { %3068 = vtanh.f32 %v3984_v58 }
0x193d   :  { %3070 = vtanh.f32 %v3986_v24 }
0x1942   :  { %v3069_v41 = vpop.eup %3068 }
0x1943   :  { %v3071_v21 = vpop.eup %3070  ;;  %1918 = vrot.lane.b32.xlu0 %v3069_v41, %s3286_s29 }
0x1944   :  { %1935 = vrot.lane.b32.xlu1 %v3071_v21, %s3286_s29 }
0x19b5   :  { %v1919_v49 = vpop.permute.xlu0 %1918 }
0x19b6   :  { %v1936_v56 = vpop.permute.xlu1 %1935  ;;  %v1921_v1 = vmul.f32 %v1919_v49, %v1886_v61 }
0x19b7   :  { %v1938_v13 = vmul.f32 %v1936_v56, %v1901_v51 }
0x19b8   :  { %1944 = vrot.lane.b32.xlu2 %v1921_v1, %s3289_s0 }
0x19b9   :  { %1948 = vrot.lane.b32.xlu0 %v1938_v13, %s3286_s29 }
0x1a12   :  { %v1945_v6 = vpop.permute.xlu2 %1944 }
0x1a2b   :  { %v1949_v23 = vpop.permute.xlu0 %1948 }
0x1a2c   :  { %v1951_v10 = vsel %vm137_vm0, %v1945_v6, %v1949_v23 }
0x1a2d   :  { %v1952_v26 = vpack.c.bf16 %v1951_v10, %v1951_v10 }
0x1a2f   :  { %2807 = vmatmul.msk.bf16.vlgmr.msrb.gmra.mxu2 %vm281_vm9, %v1952_v26  ;;  %2808 = vmatmul.msk.bf16.vlgmr.msrb.gmra.mxu3 %vm281_vm9, %v1952_v26  ;;  %v4027_v26 = vpop.f32.mrf.mxu0 }
0x1a30   :  { %2420 = vmatpush.bf16.msrb.mxu2 %v3810_v22  ;;  %2433 = vmatpush.bf16.msrb.mxu3 %v3841_v12 }
0x1a34   :  { %2421 = vmatpush.bf16.msrb.mxu2 %v3813_v37  ;;  %2434 = vmatpush.bf16.msrb.mxu3 %v3848_v45 }
0x1a38   :  { %2422 = vmatpush.bf16.msrb.mxu2 %v3816_v53  ;;  %2435 = vmatpush.bf16.msrb.mxu3 %v3852_v18 }
0x1a3c   :  { %2423 = vmatpush.bf16.msrb.mxu2 %v3821_v15  ;;  %2436 = vmatpush.bf16.msrb.mxu3 %v3857_v19 }
0x1ab2   :  { %v1965_v33 = vpop.f32.mrf.mxu2  ;;  %v1978_v25 = vpop.f32.mrf.mxu3 }
0x1ab3   :  { %v1982_v22 = vadd.f32 %v1965_v33, %v1490_v32  ;;  %v1983_v12 = vadd.f32 %v1978_v25, %v3909_v47  ;;  %v1493_v32 = vadd.f32 %v3907_v57, %v3889_v28 }
0x1ab5   :  { %3072 = vtanh.f32 %v1982_v22  ;;  %v2810_v15 = vmul.f32 -1.442695, %v1983_v12  ;;  %v2809_v16 = vmul.f32 -1.442695, %v1982_v22 }
0x1ab6   :  { %3074 = vtanh.f32 %v1983_v12 }
0x1ab7   :  { %3076 = vpow2.f32 %v2810_v15 }
0x1aba   :  { %v1967_v37 = vpop.f32.mrf.mxu2  ;;  %v1980_v45 = vpop.f32.mrf.mxu3 }
0x1abb   :  { %v3073_v35 = vpop.eup %3072 }
0x1abc   :  { %v3075_v53 = vpop.eup %3074  ;;  %2026 = vrot.lane.b32.xlu1 %v3073_v35, %s3286_s29 }
0x1abd   :  { %2043 = vrot.lane.b32.xlu2 %v3075_v53, %s3286_s29  ;;  %v3077_v18 = vpop.eup %3076 }
0x1abe   :  { %v1991_v19 = vadd.f32 1.0, %v3077_v18 }
0x1ac0   :  { %3078 = vrcp.f32 %v1991_v19  ;;  %v2018_v8 = vand.u32 2147483648, %v1991_v19  ;;  %vm2012_vm7 = vweird.f32 %v1991_v19  ;;  %v2016_v5 = vand.u32 2147483647, %v1991_v19 }
0x1ac1   :  { %3080 = vpow2.f32 %v2809_v16 }
0x1ac2   :  { %v2019_v59 = vor.u32 1.1754944e-38, %v2018_v8  ;;  %vm2017_vm10 = vcmp.eq.f32.partialorder %v2016_v5, 8.507059e+37 }
0x1ac6   :  { %v3079_v48 = vpop.eup %3078 }
0x1ac7   :  { %v2008_v30 = vmul.f32 %v3079_v48, %v1991_v19  ;;  %v3081_v7 = vpop.eup %3080  ;;  %vm2013_vm6 = vweird.f32 %v3079_v48 }
0x1ac8   :  { %v1990_v46 = vadd.f32 1.0, %v3081_v7  ;;  %vm2014_vm8 = vmor %vm2012_vm7, %vm2013_vm6 }
0x1ac9   :  { %v2009_v47 = vsub.f32 1.0, %v2008_v30 }
0x1aca   :  { %3082 = vrcp.f32 %v1990_v46  ;;  %v2003_v55 = vand.u32 2147483648, %v1990_v46  ;;  %vm1997_vm12 = vweird.f32 %v1990_v46  ;;  %v2001_v17 = vand.u32 2147483647, %v1990_v46 }
0x1acb   :  { %v2010_v43 = vmul.f32 %v3079_v48, %v2009_v47 }
0x1acc   :  { %v2004_v52 = vor.u32 1.1754944e-38, %v2003_v55  ;;  %vm2002_vm14 = vcmp.eq.f32.partialorder %v2001_v17, 8.507059e+37 }
0x1acd   :  { %v2011_v34 = vadd.f32 %v3079_v48, %v2010_v43 }
0x1acf   :  { %v2015_v2 = vsel %vm2014_vm8, %v3079_v48, %v2011_v34 }
0x1ad0   :  { %v2020_v0 = vsel %vm2017_vm10, %v2019_v59, %v2015_v2  ;;  %v3083_v61 = vpop.eup %3082 }
0x1ad1   :  { %v1993_v9 = vmul.f32 %v3083_v61, %v1990_v46  ;;  %vm1998_vm11 = vweird.f32 %v3083_v61  ;;  %v2041_v20 = vmul.f32 %v2020_v0, %v3986_v24 }
0x1ad2   :  { %vm1999_vm13 = vmor %vm1997_vm12, %vm1998_vm11 }
0x1ad3   :  { %v1994_v31 = vsub.f32 1.0, %v1993_v9 }
0x1ad5   :  { %v1995_v11 = vmul.f32 %v3083_v61, %v1994_v31 }
0x1ad7   :  { %v1996_v14 = vadd.f32 %v3083_v61, %v1995_v11 }
0x1ad9   :  { %v2000_v54 = vsel %vm1999_vm13, %v3083_v61, %v1996_v14 }
0x1ada   :  { %v2005_v50 = vsel %vm2002_vm14, %v2004_v52, %v2000_v54 }
0x1adb   :  { %v2024_v29 = vmul.f32 %v2005_v50, %v3984_v58 }
0x1b17   :  { %v2044_v60 = vpop.permute.xlu2 %2043 }
0x1b18   :  { %v2046_v4 = vmul.f32 %v2044_v60, %v2020_v0 }
0x1b1a   :  { %2048 = vrot.lane.b32.xlu1 %v2046_v4, %s3289_s0 }
0x1b2e   :  { %v2027_v36 = vpop.permute.xlu1 %2026 }
0x1b2f   :  { %v2029_v51 = vmul.f32 %v2027_v36, %v2005_v50 }
0x1b31   :  { %2031 = vrot.lane.b32.xlu0 %v2029_v51, %s3289_s0 }
0x1b8c   :  { %v2049_v3 = vpop.permute.xlu1 %2048 }
0x1b8d   :  { %v4013_v63 = vadd.f32 %v2049_v3, %v2041_v20 }
0x1b8f   :  { %3084 = vtanh.f32 %v4013_v63 }
0x1b95   :  { %v3085_v39 = vpop.eup %3084 }
0x1b96   :  { %2054 = vrot.lane.b32.xlu0 %v3085_v39, %s3286_s29 }
0x1ba3   :  { %v2032_v41 = vpop.permute.xlu0 %2031 }
0x1ba4   :  { %v4018_v21 = vadd.f32 %v2032_v41, %v2024_v29 }
0x1ba6   :  { %3086 = vtanh.f32 %v4018_v21 }
0x1bac   :  { %v3087_v49 = vpop.eup %3086 }
0x1bad   :  { %2037 = vrot.lane.b32.xlu2 %v3087_v49, %s3286_s29 }
0x1c07   :  { %v2038_v56 = vpop.permute.xlu2 %2037 }
0x1c08   :  { %v2055_v24 = vpop.permute.xlu0 %2054  ;;  %v2040_v1 = vmul.f32 %v2038_v56, %v2005_v50 }
0x1c09   :  { %v2057_v13 = vmul.f32 %v2055_v24, %v2020_v0 }
0x1c0a   :  { %2059 = vrot.lane.b32.xlu1 %v2040_v1, %s3289_s0 }
0x1c0b   :  { %2063 = vrot.lane.b32.xlu2 %v2057_v13, %s3286_s29 }
0x1c65   :  { %v2064_v6 = vpop.permute.xlu2 %2063 }
0x1c7c   :  { %v2060_v23 = vpop.permute.xlu1 %2059 }
0x1c7d   :  { %v2066_v58 = vsel %vm137_vm0, %v2060_v23, %v2064_v6 }
0x1c7e   :  { %v2067_v10 = vpack.c.bf16 %v2066_v58, %v2066_v58 }
0x1c80   :  { %2811 = vmatmul.msk.bf16.vlgmr.msra.gmra.mxu0 %vm281_vm9, %v2067_v10  ;;  %2812 = vmatmul.msk.bf16.vlgmr.msra.gmra.mxu1 %vm281_vm9, %v2067_v10 }
0x1cfd   :  { %v2080_v33 = vpop.f32.mrf.mxu0  ;;  %v2093_v25 = vpop.f32.mrf.mxu1 }
0x1cfe   :  { %v2097_v22 = vadd.f32 %v2080_v33, %v1493_v32  ;;  %v2098_v12 = vadd.f32 %v2093_v25, %v3905_v44 }
0x1d00   :  { %3088 = vtanh.f32 %v2097_v22  ;;  %v2813_v15 = vmul.f32 -1.442695, %v2097_v22  ;;  %v2814_v18 = vmul.f32 -1.442695, %v2098_v12 }
0x1d01   :  { %3090 = vtanh.f32 %v2098_v12 }
0x1d02   :  { %3092 = vpow2.f32 %v2813_v15 }
0x1d03   :  { %3094 = vpow2.f32 %v2814_v18 }
0x1d05   :  { %v2082_v37 = vpop.f32.mrf.mxu0  ;;  %v2095_v45 = vpop.f32.mrf.mxu1 }
0x1d06   :  { %v3089_v35 = vpop.eup %3088 }
0x1d07   :  { %v3091_v53 = vpop.eup %3090  ;;  %2141 = vrot.lane.b32.xlu0 %v3089_v35, %s3286_s29 }
0x1d08   :  { %2158 = vrot.lane.b32.xlu1 %v3091_v53, %s3286_s29  ;;  %v3093_v57 = vpop.eup %3092 }
0x1d09   :  { %v3095_v19 = vpop.eup %3094  ;;  %v2105_v48 = vadd.f32 1.0, %v3093_v57 }
0x1d0a   :  { %v2106_v16 = vadd.f32 1.0, %v3095_v19 }
0x1d0b   :  { %3096 = vrcp.f32 %v2105_v48  ;;  %v2118_v59 = vand.u32 2147483648, %v2105_v48  ;;  %vm2112_vm2 = vweird.f32 %v2105_v48  ;;  %v2116_v0 = vand.u32 2147483647, %v2105_v48 }
0x1d0c   :  { %3098 = vrcp.f32 %v2106_v16  ;;  %v2133_v60 = vand.u32 2147483648, %v2106_v16  ;;  %vm2127_vm3 = vweird.f32 %v2106_v16  ;;  %v2131_v61 = vand.u32 2147483647, %v2106_v16 }
0x1d0d   :  { %v2119_v31 = vor.u32 1.1754944e-38, %v2118_v59  ;;  %vm2117_vm6 = vcmp.eq.f32.partialorder %v2116_v0, 8.507059e+37 }
0x1d0e   :  { %v2134_v11 = vor.u32 1.1754944e-38, %v2133_v60  ;;  %vm2132_vm7 = vcmp.eq.f32.partialorder %v2131_v61, 8.507059e+37 }
0x1d11   :  { %v3097_v44 = vpop.eup %3096 }
0x1d12   :  { %v3099_v30 = vpop.eup %3098  ;;  %v2108_v47 = vmul.f32 %v3097_v44, %v2105_v48  ;;  %vm2113_vm15 = vweird.f32 %v3097_v44 }
0x1d13   :  { %v2123_v7 = vmul.f32 %v3099_v30, %v2106_v16  ;;  %vm2128_vm1 = vweird.f32 %v3099_v30  ;;  %vm2114_vm4 = vmor %vm2112_vm2, %vm2113_vm15 }
0x1d14   :  { %v2109_v43 = vsub.f32 1.0, %v2108_v47  ;;  %vm2129_vm5 = vmor %vm2127_vm3, %vm2128_vm1 }
0x1d15   :  { %v2124_v46 = vsub.f32 1.0, %v2123_v7 }
0x1d16   :  { %v2110_v34 = vmul.f32 %v3097_v44, %v2109_v43 }
0x1d17   :  { %v2125_v8 = vmul.f32 %v3099_v30, %v2124_v46 }
0x1d18   :  { %v2111_v5 = vadd.f32 %v3097_v44, %v2110_v34 }
0x1d19   :  { %v2126_v2 = vadd.f32 %v3099_v30, %v2125_v8 }
0x1d1a   :  { %v2115_v4 = vsel %vm2114_vm4, %v3097_v44, %v2111_v5 }
0x1d1b   :  { %v2130_v9 = vsel %vm2129_vm5, %v3099_v30, %v2126_v2  ;;  %v2120_v55 = vsel %vm2117_vm6, %v2119_v31, %v2115_v4 }
0x1d1c   :  { %v2135_v54 = vsel %vm2132_vm7, %v2134_v11, %v2130_v9  ;;  %v2139_v50 = vmul.f32 %v2120_v55, %v4018_v21 }
0x1d1d   :  { %v2156_v39 = vmul.f32 %v2135_v54, %v4013_v63 }
0x1d79   :  { %v2142_v14 = vpop.permute.xlu0 %2141 }
0x1d7a   :  { %v2159_v17 = vpop.permute.xlu1 %2158  ;;  %v2144_v52 = vmul.f32 %v2142_v14, %v2120_v55 }
0x1d7b   :  { %v2161_v36 = vmul.f32 %v2159_v17, %v2135_v54 }
0x1d7c   :  { %2146 = vrot.lane.b32.xlu2 %v2144_v52, %s3289_s0 }
0x1d7d   :  { %2163 = vrot.lane.b32.xlu0 %v2161_v36, %s3289_s0 }
0x1dd6   :  { %v2147_v51 = vpop.permute.xlu2 %2146 }
0x1dd7   :  { %v4037_v20 = vadd.f32 %v2147_v51, %v2139_v50 }
0x1dd9   :  { %3100 = vtanh.f32 %v4037_v20 }
0x1ddf   :  { %v3101_v3 = vpop.eup %3100 }
0x1de0   :  { %2152 = vrot.lane.b32.xlu1 %v3101_v3, %s3286_s29 }
0x1def   :  { %v2164_v29 = vpop.permute.xlu0 %2163 }
0x1df0   :  { %v4042_v41 = vadd.f32 %v2164_v29, %v2156_v39 }
0x1df2   :  { %3102 = vtanh.f32 %v4042_v41 }
0x1df8   :  { %v3103_v49 = vpop.eup %3102 }
0x1df9   :  { %2169 = vrot.lane.b32.xlu2 %v3103_v49, %s3286_s29 }
0x1e52   :  { %v2153_v56 = vpop.permute.xlu1 %2152 }
0x1e53   :  { %v2170_v21 = vpop.permute.xlu2 %2169  ;;  %v2155_v24 = vmul.f32 %v2153_v56, %v2120_v55 }
0x1e54   :  { %v2172_v1 = vmul.f32 %v2170_v21, %v2135_v54 }
0x1e55   :  { %2174 = vrot.lane.b32.xlu0 %v2155_v24, %s3289_s0 }
0x1e56   :  { %2178 = vrot.lane.b32.xlu1 %v2172_v1, %s3286_s29 }
0x1ec7   :  { %v2175_v13 = vpop.permute.xlu0 %2174 }
0x1ec8   :  { %v2179_v6 = vpop.permute.xlu1 %2178 }
0x1ec9   :  { %v2181_v63 = vsel %vm137_vm0, %v2175_v13, %v2179_v6 }
0x1eca   :  { %v2182_v23 = vpack.c.bf16 %v2181_v63, %v2181_v63 }
0x1ecc   :  { %2815 = vmatmul.msk.bf16.vlgmr.msra.gmra.mxu2 %vm281_vm9, %v2182_v23  ;;  %2816 = vmatmul.msk.bf16.vlgmr.msra.gmra.mxu3 %vm281_vm9, %v2182_v23 }
0x1f4f   :  { %v2195_v58 = vpop.f32.mrf.mxu2  ;;  %v2208_v10 = vpop.f32.mrf.mxu3 }
0x1f50   :  { %v2212_v32 = vadd.f32 %v2195_v58, %v3912_v62  ;;  %v2213_v33 = vadd.f32 %v2208_v10, %v3901_v38 }
0x1f52   :  { %3104 = vtanh.f32 %v2212_v32  ;;  %v2817_v45 = vmul.f32 -1.442695, %v2212_v32  ;;  %v2818_v18 = vmul.f32 -1.442695, %v2213_v33 }
0x1f53   :  { %3106 = vtanh.f32 %v2213_v33 }
0x1f54   :  { %3108 = vpow2.f32 %v2817_v45 }
0x1f57   :  { %v2197_v25 = vpop.f32.mrf.mxu2  ;;  %v2210_v22 = vpop.f32.mrf.mxu3 }
0x1f58   :  { %v3105_v12 = vpop.eup %3104 }
0x1f59   :  { %v3107_v37 = vpop.eup %3106  ;;  %2256 = vrot.lane.b32.xlu2 %v3105_v12, %s3286_s29 }
0x1f5a   :  { %2273 = vrot.lane.b32.xlu0 %v3107_v37, %s3286_s29  ;;  %v3109_v35 = vpop.eup %3108 }
0x1f5b   :  { %v2220_v53 = vadd.f32 1.0, %v3109_v35 }
0x1f5d   :  { %3110 = vrcp.f32 %v2220_v53  ;;  %v2233_v44 = vand.u32 2147483648, %v2220_v53  ;;  %vm2227_vm10 = vweird.f32 %v2220_v53  ;;  %v2231_v30 = vand.u32 2147483647, %v2220_v53 }
0x1f5e   :  { %3112 = vpow2.f32 %v2818_v18 }
0x1f5f   :  { %v2234_v7 = vor.u32 1.1754944e-38, %v2233_v44  ;;  %vm2232_vm12 = vcmp.eq.f32.partialorder %v2231_v30, 8.507059e+37 }
0x1f63   :  { %v3111_v15 = vpop.eup %3110 }
0x1f64   :  { %v2223_v62 = vmul.f32 %v3111_v15, %v2220_v53  ;;  %v3113_v19 = vpop.eup %3112  ;;  %vm2228_vm8 = vweird.f32 %v3111_v15 }
0x1f65   :  { %v2221_v48 = vadd.f32 1.0, %v3113_v19  ;;  %vm2229_vm11 = vmor %vm2227_vm10, %vm2228_vm8 }
0x1f66   :  { %v2224_v38 = vsub.f32 1.0, %v2223_v62 }
0x1f67   :  { %3114 = vrcp.f32 %v2221_v48  ;;  %v2248_v0 = vand.u32 2147483648, %v2221_v48  ;;  %vm2242_vm14 = vweird.f32 %v2221_v48  ;;  %v2246_v61 = vand.u32 2147483647, %v2221_v48 }
0x1f68   :  { %v2225_v57 = vmul.f32 %v3111_v15, %v2224_v38 }
0x1f69   :  { %v2249_v9 = vor.u32 1.1754944e-38, %v2248_v0  ;;  %vm2247_vm1 = vcmp.eq.f32.partialorder %v2246_v61, 8.507059e+37 }
0x1f6a   :  { %v2226_v16 = vadd.f32 %v3111_v15, %v2225_v57 }
0x1f6c   :  { %v2230_v47 = vsel %vm2229_vm11, %v3111_v15, %v2226_v16 }
0x1f6d   :  { %v2235_v46 = vsel %vm2232_vm12, %v2234_v7, %v2230_v47  ;;  %v3115_v8 = vpop.eup %3114 }
0x1f6e   :  { %v2238_v5 = vmul.f32 %v3115_v8, %v2221_v48  ;;  %vm2243_vm13 = vweird.f32 %v3115_v8  ;;  %v2254_v55 = vmul.f32 %v2235_v46, %v4037_v20 }
0x1f6f   :  { %vm2244_vm15 = vmor %vm2242_vm14, %vm2243_vm13 }
0x1f70   :  { %v2239_v2 = vsub.f32 1.0, %v2238_v5 }
0x1f72   :  { %v2240_v59 = vmul.f32 %v3115_v8, %v2239_v2 }
0x1f74   :  { %v2241_v60 = vadd.f32 %v3115_v8, %v2240_v59 }
0x1f76   :  { %v2245_v4 = vsel %vm2244_vm15, %v3115_v8, %v2241_v60 }
0x1f77   :  { %v2250_v11 = vsel %vm2247_vm1, %v2249_v9, %v2245_v4 }
0x1f78   :  { %v2271_v17 = vmul.f32 %v2250_v11, %v4042_v41 }
0x1fb3   :  { %v2257_v43 = vpop.permute.xlu2 %2256 }
0x1fb4   :  { %v2259_v34 = vmul.f32 %v2257_v43, %v2235_v46 }
0x1fb6   :  { %2261 = vrot.lane.b32.xlu1 %v2259_v34, %s3289_s0 }
0x1fcc   :  { %v2274_v31 = vpop.permute.xlu0 %2273 }
0x1fcd   :  { %v2276_v14 = vmul.f32 %v2274_v31, %v2250_v11 }
0x1fcf   :  { %2278 = vrot.lane.b32.xlu2 %v2276_v14, %s3289_s0 }
0x2028   :  { %v2262_v54 = vpop.permute.xlu1 %2261 }
0x2029   :  { %v2279_v52 = vpop.permute.xlu2 %2278  ;;  %v4059_v36 = vadd.f32 %v2262_v54, %v2254_v55 }
0x202a   :  { %v4061_v50 = vadd.f32 %v2279_v52, %v2271_v17 }
0x202b   :  { %3116 = vtanh.f32 %v4059_v36 }
0x202c   :  { %3118 = vtanh.f32 %v4061_v50 }
0x2031   :  { %v3117_v51 = vpop.eup %3116 }
0x2032   :  { %v3119_v3 = vpop.eup %3118  ;;  %2267 = vrot.lane.b32.xlu0 %v3117_v51, %s3286_s29 }
0x2033   :  { %2284 = vrot.lane.b32.xlu1 %v3119_v3, %s3286_s29 }
0x20a4   :  { %v2268_v39 = vpop.permute.xlu0 %2267 }
0x20a5   :  { %v2285_v20 = vpop.permute.xlu1 %2284  ;;  %v2270_v29 = vmul.f32 %v2268_v39, %v2235_v46 }
0x20a6   :  { %v2287_v41 = vmul.f32 %v2285_v20, %v2250_v11  ;;  %v1500_v20 = vadd.f32 %v4027_v26, %v3889_v28 }
0x20a7   :  { %2289 = vrot.lane.b32.xlu2 %v2270_v29, %s3289_s0 }
0x20a8   :  { %2293 = vrot.lane.b32.xlu0 %v2287_v41, %s3286_s29 }
0x2101   :  { %v2290_v49 = vpop.permute.xlu2 %2289 }
0x211a   :  { %v2294_v56 = vpop.permute.xlu0 %2293 }
0x211b   :  { %v2296_v21 = vsel %vm137_vm0, %v2290_v49, %v2294_v56 }
0x211c   :  { %v2297_v24 = vpack.c.bf16 %v2296_v21, %v2296_v21 }
0x211e   :  { %2819 = vmatmul.msk.bf16.vlgmr.msrb.gmra.mxu0 %vm281_vm9, %v2297_v24  ;;  %2820 = vmatmul.msk.bf16.vlgmr.msrb.gmra.mxu1 %vm281_vm9, %v2297_v24 }
0x219b   :  { %v2310_v1 = vpop.f32.mrf.mxu0  ;;  %v2323_v13 = vpop.f32.mrf.mxu1 }
0x219c   :  { %v2327_v6 = vadd.f32 %v2310_v1, %v3917_v42  ;;  %v2328_v63 = vadd.f32 %v2323_v13, %v3896_v27 }
0x219e   :  { %3120 = vtanh.f32 %v2327_v6  ;;  %v2822_v33 = vmul.f32 -1.442695, %v2328_v63  ;;  %v2821_v37 = vmul.f32 -1.442695, %v2327_v6 }
0x219f   :  { %3122 = vtanh.f32 %v2328_v63 }
0x21a0   :  { %3124 = vpow2.f32 %v2822_v33 }
0x21a3   :  { %v2312_v23 = vpop.f32.mrf.mxu0  ;;  %v2325_v58 = vpop.f32.mrf.mxu1 }
0x21a4   :  { %v3121_v10 = vpop.eup %3120 }
0x21a5   :  { %v3123_v32 = vpop.eup %3122  ;;  %2371 = vrot.lane.b32.xlu1 %v3121_v10, %s3286_s29 }
0x21a6   :  { %2388 = vrot.lane.b32.xlu2 %v3123_v32, %s3286_s29  ;;  %v3125_v25 = vpop.eup %3124 }
0x21a7   :  { %v2336_v22 = vadd.f32 1.0, %v3125_v25 }
0x21a9   :  { %3126 = vrcp.f32 %v2336_v22  ;;  %v2363_v18 = vand.u32 2147483648, %v2336_v22  ;;  %vm2357_vm3 = vweird.f32 %v2336_v22  ;;  %v2361_v62 = vand.u32 2147483647, %v2336_v22 }
0x21aa   :  { %3128 = vpow2.f32 %v2821_v37 }
0x21ab   :  { %v2364_v57 = vor.u32 1.1754944e-38, %v2363_v18  ;;  %vm2362_vm5 = vcmp.eq.f32.partialorder %v2361_v62, 8.507059e+37 }
0x21af   :  { %v3127_v12 = vpop.eup %3126 }
0x21b0   :  { %v2353_v42 = vmul.f32 %v3127_v12, %v2336_v22  ;;  %v3129_v45 = vpop.eup %3128  ;;  %vm2358_vm2 = vweird.f32 %v3127_v12 }
0x21b1   :  { %v2335_v53 = vadd.f32 1.0, %v3129_v45  ;;  %vm2359_vm4 = vmor %vm2357_vm3, %vm2358_vm2 }
0x21b2   :  { %v2354_v27 = vsub.f32 1.0, %v2353_v42 }
0x21b3   :  { %3130 = vrcp.f32 %v2335_v53  ;;  %v2348_v46 = vand.u32 2147483648, %v2335_v53  ;;  %vm2342_vm7 = vweird.f32 %v2335_v53  ;;  %v2346_v34 = vand.u32 2147483647, %v2335_v53 }
0x21b4   :  { %v2355_v35 = vmul.f32 %v3127_v12, %v2354_v27 }
0x21b5   :  { %v2349_v5 = vor.u32 1.1754944e-38, %v2348_v46  ;;  %vm2347_vm10 = vcmp.eq.f32.partialorder %v2346_v34, 8.507059e+37 }
0x21b6   :  { %v2356_v15 = vadd.f32 %v3127_v12, %v2355_v35 }
0x21b8   :  { %v2360_v38 = vsel %vm2359_vm4, %v3127_v12, %v2356_v15 }
0x21b9   :  { %v2365_v48 = vsel %vm2362_vm5, %v2364_v57, %v2360_v38  ;;  %v3131_v16 = vpop.eup %3130 }
0x21ba   :  { %v2338_v30 = vmul.f32 %v3131_v16, %v2335_v53  ;;  %vm2343_vm6 = vweird.f32 %v3131_v16  ;;  %v2386_v0 = vmul.f32 %v2365_v48, %v4061_v50 }
0x21bb   :  { %vm2344_vm8 = vmor %vm2342_vm7, %vm2343_vm6 }
0x21bc   :  { %v2339_v47 = vsub.f32 1.0, %v2338_v30 }
0x21be   :  { %v2340_v7 = vmul.f32 %v3131_v16, %v2339_v47 }
0x21c0   :  { %v2341_v43 = vadd.f32 %v3131_v16, %v2340_v7 }
0x21c2   :  { %v2345_v8 = vsel %vm2344_vm8, %v3131_v16, %v2341_v43 }
0x21c3   :  { %v2350_v59 = vsel %vm2347_vm10, %v2349_v5, %v2345_v8 }
0x21c4   :  { %v2369_v31 = vmul.f32 %v2350_v59, %v4059_v36 }
0x2200   :  { %v2389_v19 = vpop.permute.xlu2 %2388 }
0x2201   :  { %v2391_v44 = vmul.f32 %v2389_v19, %v2365_v48 }
0x2203   :  { %2393 = vrot.lane.b32.xlu1 %v2391_v44, %s3289_s0 }
0x2217   :  { %v2372_v2 = vpop.permute.xlu1 %2371 }
0x2218   :  { %v2374_v60 = vmul.f32 %v2372_v2, %v2350_v59 }
0x221a   :  { %2376 = vrot.lane.b32.xlu0 %v2374_v60, %s3289_s0  ;;  %v2883_v60 = vld [vmem:[#allocation11 + $0x18] sm:$0xff] }
0x221b   :  { %2571 = vmatpush.bf16.msra.mxu0 %v2883_v60 }
0x2275   :  { %v2394_v61 = vpop.permute.xlu1 %2393 }
0x2276   :  { %v4079_v4 = vadd.f32 %v2394_v61, %v2386_v0  ;;  %v2882_v0 = vld [vmem:[#allocation11 + $0x10] sm:$0xff]  ;;  %v2881_v61 = vld [vmem:[#allocation11 + $0x8] sm:$0xff] }
0x2277   :  { %2572 = vmatpush.bf16.msra.mxu0 %v2882_v0 }
0x2278   :  { %3132 = vtanh.f32 %v4079_v4 }
0x227b   :  { %2573 = vmatpush.bf16.msra.mxu0 %v2881_v61 }
0x227e   :  { %v3133_v9 = vpop.eup %3132 }
0x227f   :  { %2399 = vrot.lane.b32.xlu0 %v3133_v9, %s3286_s29  ;;  %v2880_v9 = vld [vmem:[#allocation11] sm:$0xff] }
0x2280   :  { %2574 = vmatpush.bf16.msra.mxu0 %v2880_v9 }
0x228c   :  { %v2377_v11 = vpop.permute.xlu0 %2376 }
0x228d   :  { %v4084_v14 = vadd.f32 %v2377_v11, %v2369_v31 }
0x228f   :  { %3134 = vtanh.f32 %v4084_v14 }
0x2295   :  { %v3135_v55 = vpop.eup %3134 }
0x2296   :  { %2382 = vrot.lane.b32.xlu2 %v3135_v55, %s3286_s29 }
0x22f0   :  { %v2383_v17 = vpop.permute.xlu2 %2382 }
0x22f1   :  { %v2400_v54 = vpop.permute.xlu0 %2399  ;;  %v2385_v52 = vmul.f32 %v2383_v17, %v2350_v59 }
0x22f2   :  { %v2402_v50 = vmul.f32 %v2400_v54, %v2365_v48 }
0x22f3   :  { %2404 = vrot.lane.b32.xlu1 %v2385_v52, %s3289_s0 }
0x22f4   :  { %2408 = vrot.lane.b32.xlu2 %v2402_v50, %s3286_s29  ;;  %v2895_v50 = vld [vmem:[%s4122_s8] ss:$0 sm:$0xff] }
0x234e   :  { %v2409_v51 = vpop.permute.xlu2 %2408 }
0x2365   :  { %v2405_v3 = vpop.permute.xlu1 %2404 }
0x2366   :  { %v2411_v36 = vsel %vm137_vm0, %v2405_v3, %v2409_v51 }
0x2367   :  { %v2412_v39 = vpack.c.bf16 %v2411_v36, %v2411_v36 }
0x2369   :  { %2823 = vmatmul.msk.bf16.vlgmr.msrb.gmra.mxu2 %vm281_vm9, %v2412_v39  ;;  %2824 = vmatmul.msk.bf16.vlgmr.msrb.gmra.mxu3 %vm281_vm9, %v2412_v39 }
0x23ec   :  { %v2425_v29 = vpop.f32.mrf.mxu2  ;;  %v2438_v41 = vpop.f32.mrf.mxu3 }
0x23ed   :  { %v2442_v49 = vadd.f32 %v2425_v29, %v1500_v20  ;;  %v2443_v56 = vadd.f32 %v2438_v41, %v3892_v40 }
0x23ef   :  { %3136 = vtanh.f32 %v2442_v49  ;;  %v2825_v6 = vmul.f32 -1.442695, %v2442_v49  ;;  %v2826_v63 = vmul.f32 -1.442695, %v2443_v56 }
0x23f0   :  { %3138 = vtanh.f32 %v2443_v56 }
0x23f1   :  { %3140 = vpow2.f32 %v2825_v6 }
0x23f2   :  { %3142 = vpow2.f32 %v2826_v63 }
0x23f4   :  { %v2427_v21 = vpop.f32.mrf.mxu2  ;;  %v2440_v24 = vpop.f32.mrf.mxu3 }
0x23f5   :  { %v3137_v1 = vpop.eup %3136 }
0x23f6   :  { %v3139_v13 = vpop.eup %3138  ;;  %2486 = vrot.lane.b32.xlu0 %v3137_v1, %s3286_s29 }
0x23f7   :  { %2503 = vrot.lane.b32.xlu1 %v3139_v13, %s3286_s29  ;;  %v3141_v28 = vpop.eup %3140 }
0x23f8   :  { %v3143_v26 = vpop.eup %3142  ;;  %v2450_v23 = vadd.f32 1.0, %v3141_v28 }
0x23f9   :  { %v2451_v58 = vadd.f32 1.0, %v3143_v26 }
0x23fa   :  { %3144 = vrcp.f32 %v2450_v23  ;;  %v2463_v45 = vand.u32 2147483648, %v2450_v23  ;;  %vm2457_vm13 = vweird.f32 %v2450_v23  ;;  %v2461_v53 = vand.u32 2147483647, %v2450_v23 }
0x23fb   :  { %3146 = vrcp.f32 %v2451_v58  ;;  %v2478_v35 = vand.u32 2147483648, %v2451_v58  ;;  %vm2472_vm14 = vweird.f32 %v2451_v58  ;;  %v2476_v15 = vand.u32 2147483647, %v2451_v58 }
0x23fc   :  { %v2464_v38 = vor.u32 1.1754944e-38, %v2463_v45  ;;  %vm2462_vm2 = vcmp.eq.f32.partialorder %v2461_v53, 8.507059e+37 }
0x23fd   :  { %v2479_v57 = vor.u32 1.1754944e-38, %v2478_v35  ;;  %vm2477_vm3 = vcmp.eq.f32.partialorder %v2476_v15, 8.507059e+37 }
0x2400   :  { %v3145_v40 = vpop.eup %3144 }
0x2401   :  { %v3147_v10 = vpop.eup %3146  ;;  %v2453_v32 = vmul.f32 %v3145_v40, %v2450_v23  ;;  %vm2458_vm11 = vweird.f32 %v3145_v40 }
0x2402   :  { %v2468_v33 = vmul.f32 %v3147_v10, %v2451_v58  ;;  %vm2473_vm12 = vweird.f32 %v3147_v10  ;;  %vm2459_vm15 = vmor %vm2457_vm13, %vm2458_vm11 }
0x2403   :  { %v2454_v25 = vsub.f32 1.0, %v2453_v32  ;;  %vm2474_vm1 = vmor %vm2472_vm14, %vm2473_vm12 }
0x2404   :  { %v2469_v22 = vsub.f32 1.0, %v2468_v33 }
0x2405   :  { %v2455_v12 = vmul.f32 %v3145_v40, %v2454_v25 }
0x2406   :  { %v2470_v37 = vmul.f32 %v3147_v10, %v2469_v22 }
0x2407   :  { %v2456_v42 = vadd.f32 %v3145_v40, %v2455_v12 }
0x2408   :  { %v2471_v27 = vadd.f32 %v3147_v10, %v2470_v37 }
0x2409   :  { %v2460_v18 = vsel %vm2459_vm15, %v3145_v40, %v2456_v42 }
0x240a   :  { %v2475_v62 = vsel %vm2474_vm1, %v3147_v10, %v2471_v27  ;;  %v2465_v48 = vsel %vm2462_vm2, %v2464_v38, %v2460_v18 }
0x240b   :  { %v2480_v44 = vsel %vm2477_vm3, %v2479_v57, %v2475_v62  ;;  %v2484_v7 = vmul.f32 %v2465_v48, %v4084_v14 }
0x240c   :  { %v2501_v8 = vmul.f32 %v2480_v44, %v4079_v4 }
0x2468   :  { %v2487_v19 = vpop.permute.xlu0 %2486 }
0x2469   :  { %v2504_v16 = vpop.permute.xlu1 %2503  ;;  %v2489_v30 = vmul.f32 %v2487_v19, %v2465_v48 }
0x246a   :  { %v2506_v47 = vmul.f32 %v2504_v16, %v2480_v44 }
0x246b   :  { %2491 = vrot.lane.b32.xlu2 %v2489_v30, %s3289_s0 }
0x246c   :  { %2508 = vrot.lane.b32.xlu0 %v2506_v47, %s3289_s0 }
0x24c5   :  { %v2492_v43 = vpop.permute.xlu2 %2491 }
0x24c6   :  { %v2494_v46 = vadd.f32 %v2492_v43, %v2484_v7 }
0x24c8   :  { %3148 = vtanh.f32 %v2494_v46 }
0x24ce   :  { %v3149_v34 = vpop.eup %3148 }
0x24cf   :  { %2497 = vrot.lane.b32.xlu1 %v3149_v34, %s3286_s29 }
0x24de   :  { %v2509_v5 = vpop.permute.xlu0 %2508 }
0x24df   :  { %v2511_v2 = vadd.f32 %v2509_v5, %v2501_v8 }
0x24e1   :  { %3150 = vtanh.f32 %v2511_v2 }
0x24e7   :  { %v3151_v59 = vpop.eup %3150 }
0x24e8   :  { %2514 = vrot.lane.b32.xlu2 %v3151_v59, %s3286_s29 }
0x2541   :  { %v2498_v31 = vpop.permute.xlu1 %2497 }
0x2542   :  { %v2515_v11 = vpop.permute.xlu2 %2514  ;;  %v2500_v14 = vmul.f32 %v2498_v31, %v2465_v48 }
0x2543   :  { %v2517_v55 = vmul.f32 %v2515_v11, %v2480_v44 }
0x2544   :  { %2519 = vrot.lane.b32.xlu0 %v2500_v14, %s3289_s0 }
0x2545   :  { %2523 = vrot.lane.b32.xlu1 %v2517_v55, %s3286_s29 }
0x25b6   :  { %v2520_v4 = vpop.permute.xlu0 %2519 }
0x25b7   :  { %v2524_v17 = vpop.permute.xlu1 %2523 }
0x25b8   :  { %v2526_v54 = vsel %vm137_vm0, %v2520_v4, %v2524_v17 }
0x25b9   :  { %v2527_v52 = vpack.c.bf16 %v2526_v54, %v2526_v54 }
0x25bb   :  { %2843 = vmatmul.msk.bf16.vlgmr.msra.gmra.mxu0 %vm281_vm9, %v2527_v52 }
0x2638   :  { %v2576_v51 = vpop.f32.mrf.mxu0 }
0x2639   :  { %v2577_v3 = vadd.f32 %v2895_v50, %v2576_v51 }
0x263b   :  { %2580 = vst [vmem:[#allocation13] sm:$0xff] %v2577_v3 }
0x263c   :  { %2591 = dma.vmem_to_hbm [thread:$0]  %s2587_s24, 128, %s2589_s27, [#allocation7]  }
0x2640   :  { %v2578_v36 = vpop.f32.mrf.mxu0 }
0x2641   :  { %3278 = dma.done.wait [#allocation7], 128  }
0x2642   :  { %3279 = vsyncadd [#allocation7], 4294967168 }
0x2643   :  { %2596 = vsyncpa [#allocation6], 1 }
0x2644   :  { %2597 = vsyncpa [#allocation9], 1 }
0x2645   :  { %2598 = vsyncpa [#allocation12], 1 }
0x2646   :  { %2599 = vsyncpa [#allocation7], 1 }

</bundles_post_ra>
